<compile_context>
chip_gen: v5e
topology: v5e:2x2
jax: 0.10.0
libtpu: 0.0.40
codegen_flags: <defaults>
</compile_context>

<pallas_src>
import jax
import jax.numpy as jnp
from jax.experimental import pallas as pl
from jax.experimental.pallas import tpu as pltpu


# ----------------------------------------------------------------------------
# Pallas kernels
# ----------------------------------------------------------------------------
def _matmul_affine_kernel(w_ref, x_ref, s_ref, b_ref, o_ref):
    # w_ref: (Cout, K)        bf16  -- conv weight, taps*channels flattened
    # x_ref: (1, K, T)        bf16  -- per-image im2col patches, spatial tile in lanes
    # s_ref, b_ref: (Cout, 1) f32   -- folded BN scale / bias (or 1 / conv bias)
    # o_ref: (1, Cout, T)     f32   -- lane-dense transposed output
    y = jnp.dot(w_ref[...], x_ref[0], preferred_element_type=jnp.float32)
    o_ref[0] = (y * s_ref[...] + b_ref[...]).astype(o_ref.dtype)


def _upsample_mm_kernel(x_ref, k_ref, o_ref):
    # x_ref: (1, C, HWin) f32; k_ref: (HWin, T) f32; o_ref: (1, C, T) f32
    o_ref[0] = jnp.dot(x_ref[0], k_ref[...],
                       preferred_element_type=jnp.float32).astype(o_ref.dtype)


# ----------------------------------------------------------------------------
# Wrappers
# ----------------------------------------------------------------------------
_COMPILER_PARAMS = pltpu.CompilerParams(
    dimension_semantics=("parallel", "parallel"),
    vmem_limit_bytes=32 * 1024 * 1024,
)


def _spatial_tile(hw):
    for t in (512, 256, 128):
        if hw % t == 0:
            return t
    return hw


def matmul_affine(w_t, x_flat, scale, bias):
    """out[b] = (w_t @ x_flat[b]) * scale[:, None] + bias[:, None].

    w_t: (Cout, K); x_flat: (B, K, HW); scale/bias: (Cout,).
    Returns (B, Cout, HW) float32.  MXU runs in bf16, epilogue in f32.
    """
    B, K, HW = x_flat.shape
    Cout = w_t.shape[0]
    T = _spatial_tile(HW)
    return pl.pallas_call(
        _matmul_affine_kernel,
        out_shape=jax.ShapeDtypeStruct((B, Cout, HW), jnp.float32),
        grid=(B, HW // T),
        in_specs=[
            pl.BlockSpec((Cout, K), lambda b, t: (0, 0)),
            pl.BlockSpec((1, K, T), lambda b, t: (b, 0, t)),
            pl.BlockSpec((Cout, 1), lambda b, t: (0, 0)),
            pl.BlockSpec((Cout, 1), lambda b, t: (0, 0)),
        ],
        out_specs=pl.BlockSpec((1, Cout, T), lambda b, t: (b, 0, t)),
        compiler_params=_COMPILER_PARAMS,
    )(w_t.astype(jnp.bfloat16), x_flat.astype(jnp.bfloat16),
      scale.reshape(Cout, 1).astype(jnp.float32),
      bias.reshape(Cout, 1).astype(jnp.float32))


def _im2col_3x3(x):
    """(B, C, H, W) -> (B, 9*C, H*W) patches for a 3x3, stride-1, pad-1 conv.

    Row order is tap-major (tap = 3*dh + dw), channel-minor, matching
    w.reshape(9*Cin, Cout).  Thin XLA glue; subsumes the zero-padding.
    """
    B, C, H, W = x.shape
    xp = jnp.pad(x, ((0, 0), (0, 0), (1, 1), (1, 1)))
    taps = []
    for dh in range(3):
        for dw in range(3):
            taps.append(xp[:, :, dh:dh + H, dw:dw + W].reshape(B, C, H * W))
    return jnp.concatenate(taps, axis=1)


def conv3x3_bn(x, w, scale, bias):
    """3x3 conv (stride 1, pad 1, no conv bias) + folded BatchNorm.

    x: (B, Cin, H, W) NCHW; w: (9, Cin, Cout); scale/bias: (Cout,).
    Returns (B, Cout, H, W) float32.
    """
    B, C, H, W = x.shape
    Cout = w.shape[-1]
    patches = _im2col_3x3(x.astype(jnp.bfloat16))       # (B, 9C, H*W) bf16
    w_t = w.reshape(9 * C, Cout).T                       # (Cout, 9C)
    y = matmul_affine(w_t, patches, scale, bias)         # (B, Cout, H*W)
    return y.reshape(B, Cout, H, W)


def conv1x1_bias(x, w, b):
    """1x1 conv with bias.  x: (B, Cin, H, W); w: (Cin, Cout); b: (Cout,)."""
    B, C, H, W = x.shape
    Cout = w.shape[-1]
    xf = x.reshape(B, C, H * W)
    ones = jnp.ones((Cout,), jnp.float32)
    y = matmul_affine(w.T, xf, ones, b)                  # (B, Cout, H*W)
    return y.reshape(B, Cout, H, W)


def _interp_matrix(n_in, n_out):
    """Bilinear interpolation operator (n_out, n_in), align_corners=True."""
    if n_in == 1:
        return jnp.ones((n_out, 1), jnp.float32)
    pos = jnp.arange(n_out, dtype=jnp.float32) * (n_in - 1) / (n_out - 1)
    idx = jnp.arange(n_in, dtype=jnp.float32)
    return jnp.maximum(0.0, 1.0 - jnp.abs(pos[:, None] - idx[None, :]))


def upsample2x_bilinear(x):
    """2x bilinear upsample, align_corners=True (matches nn.Upsample).

    Implemented as a lane-dense Pallas matmul against kron(Mh, Mw)^T.
    x: (B, C, H, W) -> (B, C, 2H, 2W), float32 throughout.
    """
    B, C, H, W = x.shape
    Ho, Wo = 2 * H, 2 * W
    Kt = jnp.kron(_interp_matrix(H, Ho), _interp_matrix(W, Wo)).T  # (H*W, Ho*Wo)
    xf = x.astype(jnp.float32).reshape(B, C, H * W)
    HWo = Ho * Wo
    T = _spatial_tile(HWo)
    y = pl.pallas_call(
        _upsample_mm_kernel,
        out_shape=jax.ShapeDtypeStruct((B, C, HWo), jnp.float32),
        grid=(B, HWo // T),
        in_specs=[
            pl.BlockSpec((1, C, H * W), lambda b, t: (b, 0, 0)),
            pl.BlockSpec((H * W, T), lambda b, t: (0, t)),
        ],
        out_specs=pl.BlockSpec((1, C, T), lambda b, t: (b, 0, t)),
        compiler_params=_COMPILER_PARAMS,
    )(xf, Kt)
    return y.reshape(B, C, Ho, Wo)


# ----------------------------------------------------------------------------
# Parameter initialization (deterministic, synthetic)
# ----------------------------------------------------------------------------
def init_basic_conv(key, cin, cout):
    k1, k2, k3, k4, k5 = jax.random.split(key, 5)
    w = jax.random.normal(k1, (9, cin, cout), jnp.float32) / jnp.sqrt(9.0 * cin)
    gamma = 1.0 + 0.1 * jax.random.normal(k2, (cout,), jnp.float32)
    beta = 0.1 * jax.random.normal(k3, (cout,), jnp.float32)
    mean = 0.1 * jax.random.normal(k4, (cout,), jnp.float32)
    var = jax.random.uniform(k5, (cout,), jnp.float32, minval=0.5, maxval=1.5)
    scale = gamma / jnp.sqrt(var + 1e-5)
    bias = beta - mean * scale
    return (w, scale, bias)


def init_edg_params(key, channel):
    names_io = {
        'conv_upsample1': (channel, channel),
        'conv_upsample2': (channel, channel),
        'conv_upsample3': (2 * channel, 2 * channel),
        'conv_1': (channel, channel),
        'conv_2': (channel, channel),
        'conv_3': (2 * channel, 2 * channel),
        'conv_concat2': (2 * channel, 2 * channel),
        'conv_concat3': (2 * channel, 2 * channel),
        'conv_concat4': (4 * channel, 4 * channel),
    }
    keys = jax.random.split(key, len(names_io) + 2)
    params = {}
    for k, (name, (cin, cout)) in zip(keys[:-2], names_io.items()):
        params[name] = init_basic_conv(k, cin, cout)
    params['conv5_w'] = (jax.random.normal(keys[-2], (4 * channel, 50),
                                           jnp.float32)
                         / jnp.sqrt(4.0 * channel))
    params['conv5_b'] = 0.1 * jax.random.normal(keys[-1], (50,), jnp.float32)
    return params


# ----------------------------------------------------------------------------
# EDGModule forward (NCHW in / NCHW out; kernels run channels-first-flat)
# ----------------------------------------------------------------------------
def edg_forward(params, x1, x2, x3):
    up_x1 = conv3x3_bn(upsample2x_bilinear(x1), *params['conv_upsample1'])
    conv_x2 = conv3x3_bn(x2, *params['conv_1'])
    cat_x2 = conv3x3_bn(jnp.concatenate([up_x1, conv_x2], axis=1),
                        *params['conv_concat2'])

    up_x2 = conv3x3_bn(upsample2x_bilinear(x2), *params['conv_upsample2'])
    conv_x3 = conv3x3_bn(x3, *params['conv_2'])
    cat_x3 = conv3x3_bn(jnp.concatenate([up_x2, conv_x3], axis=1),
                        *params['conv_concat3'])

    up_cat_x2 = conv3x3_bn(upsample2x_bilinear(cat_x2),
                           *params['conv_upsample3'])
    conv_cat_x3 = conv3x3_bn(cat_x3, *params['conv_3'])
    cat_x4 = conv3x3_bn(jnp.concatenate([up_cat_x2, conv_cat_x3], axis=1),
                        *params['conv_concat4'])

    return conv1x1_bias(cat_x4, params['conv5_w'], params['conv5_b'])


if __name__ == "__main__":
    key = jax.random.PRNGKey(0)
    k_p, k1, k2, k3 = jax.random.split(key, 4)

    channel = 4
    B = 2
    # Pyramid inputs (NCHW): x2 is 2x x1, x3 is 2x x2 (required by the module).
    x1 = jax.random.normal(k1, (B, channel, 8, 8), jnp.float32)
    x2 = jax.random.normal(k2, (B, channel, 16, 16), jnp.float32)
    x3 = jax.random.normal(k3, (B, channel, 32, 32), jnp.float32)

    params = init_edg_params(k_p, channel)

    fwd = jax.jit(edg_forward)
    out = jax.block_until_ready(fwd(params, x1, x2, x3))

    assert out.shape == (B, 50, 32, 32), out.shape
    assert bool(jnp.all(jnp.isfinite(out)))
    print("KERNEL_OK")
</pallas_src>

<mosaic_0001>
module attributes {stable_mosaic.version = 11 : i64} {
  func.func @_upsample_mm_kernel(%arg0: i32, %arg1: i32, %arg2: memref<1x4x64xf32, #tpu.memory_space<vmem>>, %arg3: memref<64x256xf32, #tpu.memory_space<vmem>>, %arg4: memref<1x4x256xf32, #tpu.memory_space<vmem>>) attributes {dimension_semantics = [#tpu.dimension_semantics<parallel>, #tpu.dimension_semantics<parallel>], iteration_bounds = array<i64: 2, 1>, scalar_prefetch = 0 : i64, scratch_operands = 0 : i64, tpu.core_type = #tpu.core_type<tc>, window_params = [{transform_indices = @transform_0, window_bounds = array<i64: 1, 4, 64>}, {transform_indices = @transform_1, window_bounds = array<i64: 64, 256>}, {transform_indices = @transform_2, window_bounds = array<i64: 1, 4, 256>}]} {
    %c0 = arith.constant 0 : index
    %c0_0 = arith.constant 0 : index
    %c0_1 = arith.constant 0 : index
    %0 = vector.load %arg2[%c0, %c0_0, %c0_1] : memref<1x4x64xf32, #tpu.memory_space<vmem>>, vector<1x4x64xf32>
    %1 = vector.shape_cast %0 : vector<1x4x64xf32> to vector<4x64xf32>
    %c0_2 = arith.constant 0 : index
    %c0_3 = arith.constant 0 : index
    %2 = vector.load %arg3[%c0_2, %c0_3] : memref<64x256xf32, #tpu.memory_space<vmem>>, vector<64x256xf32>
    %cst = arith.constant dense<0.000000e+00> : vector<4x256xf32>
    %3 = tpu.matmul %1, %2, %cst {dimension_numbers = #tpu.dot_dimension_numbers<[1], [0], [0], [1], [0, 0, 1, 1], [], []>} : vector<4x64xf32>, vector<64x256xf32>, vector<4x256xf32> -> vector<4x256xf32>
    %c0_4 = arith.constant 0 : index
    %c0_5 = arith.constant 0 : index
    %c0_6 = arith.constant 0 : index
    %4 = vector.load %arg4[%c0_4, %c0_5, %c0_6] : memref<1x4x256xf32, #tpu.memory_space<vmem>>, vector<1x4x256xf32>
    %5 = vector.shape_cast %4 : vector<1x4x256xf32> to vector<4x256xf32>
    %6 = vector.shape_cast %3 : vector<4x256xf32> to vector<1x4x256xf32>
    tpu.vector_store %arg4[%c0_4, %c0_5, %c0_6], %6 {strides = array<i32>} : memref<1x4x256xf32, #tpu.memory_space<vmem>>, vector<1x4x256xf32>,
    return
  }
  func.func @transform_0(%arg0: i32, %arg1: i32) -> (i32, i32, i32) {
    %c0_i32 = arith.constant 0 : i32
    %c0_i32_0 = arith.constant 0 : i32
    %c0_i32_1 = arith.constant 0 : i32
    return %arg0, %c0_i32, %c0_i32_0 : i32, i32, i32
  }
  func.func @transform_1(%arg0: i32, %arg1: i32) -> (i32, i32) {
    %c0_i32 = arith.constant 0 : i32
    %c0_i32_0 = arith.constant 0 : i32
    return %c0_i32, %arg1 : i32, i32
  }
  func.func @transform_2(%arg0: i32, %arg1: i32) -> (i32, i32, i32) {
    %c0_i32 = arith.constant 0 : i32
    %c0_i32_0 = arith.constant 0 : i32
    return %arg0, %c0_i32, %arg1 : i32, i32, i32
  }
}

module attributes {stable_mosaic.version = 11 : i64} {
  func.func @_matmul_affine_kernel(%arg0: i32, %arg1: i32, %arg2: memref<4x36xbf16, #tpu.memory_space<vmem>>, %arg3: memref<1x36x256xbf16, #tpu.memory_space<vmem>>, %arg4: memref<4x1xf32, #tpu.memory_space<vmem>>, %arg5: memref<4x1xf32, #tpu.memory_space<vmem>>, %arg6: memref<1x4x256xf32, #tpu.memory_space<vmem>>) attributes {dimension_semantics = [#tpu.dimension_semantics<parallel>, #tpu.dimension_semantics<parallel>], iteration_bounds = array<i64: 2, 1>, scalar_prefetch = 0 : i64, scratch_operands = 0 : i64, tpu.core_type = #tpu.core_type<tc>, window_params = [{pipeline_mode = #tpu.pipeline_mode<synchronous>, transform_indices = @transform_0, window_bounds = array<i64: 4, 36>}, {transform_indices = @transform_1, window_bounds = array<i64: 1, 36, 256>}, {pipeline_mode = #tpu.pipeline_mode<synchronous>, transform_indices = @transform_2, window_bounds = array<i64: 4, 1>}, {pipeline_mode = #tpu.pipeline_mode<synchronous>, transform_indices = @transform_3, window_bounds = array<i64: 4, 1>}, {transform_indices = @transform_4, window_bounds = array<i64: 1, 4, 256>}]} {
    %c0 = arith.constant 0 : index
    %c0_0 = arith.constant 0 : index
    %0 = vector.load %arg2[%c0, %c0_0] : memref<4x36xbf16, #tpu.memory_space<vmem>>, vector<4x36xbf16>
    %c0_1 = arith.constant 0 : index
    %c0_2 = arith.constant 0 : index
    %c0_3 = arith.constant 0 : index
    %1 = vector.load %arg3[%c0_1, %c0_2, %c0_3] : memref<1x36x256xbf16, #tpu.memory_space<vmem>>, vector<1x36x256xbf16>
    %2 = vector.shape_cast %1 : vector<1x36x256xbf16> to vector<36x256xbf16>
    %cst = arith.constant dense<0.000000e+00> : vector<4x256xf32>
    %3 = tpu.matmul %0, %2, %cst {dimension_numbers = #tpu.dot_dimension_numbers<[1], [0], [0], [1], [0, 0, 1, 1], [], []>} : vector<4x36xbf16>, vector<36x256xbf16>, vector<4x256xf32> -> vector<4x256xf32>
    %c0_4 = arith.constant 0 : index
    %c0_5 = arith.constant 0 : index
    %4 = vector.load %arg4[%c0_4, %c0_5] : memref<4x1xf32, #tpu.memory_space<vmem>>, vector<4x1xf32>
    %5 = vector.broadcast %4 : vector<4x1xf32> to vector<4x256xf32>
    %6 = arith.mulf %3, %5 : vector<4x256xf32>
    %c0_6 = arith.constant 0 : index
    %c0_7 = arith.constant 0 : index
    %7 = vector.load %arg5[%c0_6, %c0_7] : memref<4x1xf32, #tpu.memory_space<vmem>>, vector<4x1xf32>
    %8 = vector.broadcast %7 : vector<4x1xf32> to vector<4x256xf32>
    %9 = arith.addf %6, %8 : vector<4x256xf32>
    %c0_8 = arith.constant 0 : index
    %c0_9 = arith.constant 0 : index
    %c0_10 = arith.constant 0 : index
    %10 = vector.load %arg6[%c0_8, %c0_9, %c0_10] : memref<1x4x256xf32, #tpu.memory_space<vmem>>, vector<1x4x256xf32>
    %11 = vector.shape_cast %10 : vector<1x4x256xf32> to vector<4x256xf32>
    %12 = vector.shape_cast %9 : vector<4x256xf32> to vector<1x4x256xf32>
    tpu.vector_store %arg6[%c0_8, %c0_9, %c0_10], %12 {strides = array<i32>} : memref<1x4x256xf32, #tpu.memory_space<vmem>>, vector<1x4x256xf32>,
    return
  }
  func.func @transform_0(%arg0: i32, %arg1: i32) -> (i32, i32) {
    %c0_i32 = arith.constant 0 : i32
    %c0_i32_0 = arith.constant 0 : i32
    %c0_i32_1 = arith.constant 0 : i32
    return %c0_i32, %c0_i32_0 : i32, i32
  }
  func.func @transform_1(%arg0: i32, %arg1: i32) -> (i32, i32, i32) {
    %c0_i32 = arith.constant 0 : i32
    %c0_i32_0 = arith.constant 0 : i32
    return %arg0, %c0_i32, %arg1 : i32, i32, i32
  }
  func.func @transform_2(%arg0: i32, %arg1: i32) -> (i32, i32) {
    %c0_i32 = arith.constant 0 : i32
    %c0_i32_0 = arith.constant 0 : i32
    %c0_i32_1 = arith.constant 0 : i32
    return %c0_i32, %c0_i32_0 : i32, i32
  }
  func.func @transform_3(%arg0: i32, %arg1: i32) -> (i32, i32) {
    %c0_i32 = arith.constant 0 : i32
    %c0_i32_0 = arith.constant 0 : i32
    %c0_i32_1 = arith.constant 0 : i32
    return %c0_i32, %c0_i32_0 : i32, i32
  }
  func.func @transform_4(%arg0: i32, %arg1: i32) -> (i32, i32, i32) {
    %c0_i32 = arith.constant 0 : i32
    %c0_i32_0 = arith.constant 0 : i32
    return %arg0, %c0_i32, %arg1 : i32, i32, i32
  }
}

module attributes {stable_mosaic.version = 11 : i64} {
  func.func @_matmul_affine_kernel(%arg0: i32, %arg1: i32, %arg2: memref<8x72xbf16, #tpu.memory_space<vmem>>, %arg3: memref<1x72x256xbf16, #tpu.memory_space<vmem>>, %arg4: memref<8x1xf32, #tpu.memory_space<vmem>>, %arg5: memref<8x1xf32, #tpu.memory_space<vmem>>, %arg6: memref<1x8x256xf32, #tpu.memory_space<vmem>>) attributes {dimension_semantics = [#tpu.dimension_semantics<parallel>, #tpu.dimension_semantics<parallel>], iteration_bounds = array<i64: 2, 1>, scalar_prefetch = 0 : i64, scratch_operands = 0 : i64, tpu.core_type = #tpu.core_type<tc>, window_params = [{pipeline_mode = #tpu.pipeline_mode<synchronous>, transform_indices = @transform_0, window_bounds = array<i64: 8, 72>}, {transform_indices = @transform_1, window_bounds = array<i64: 1, 72, 256>}, {pipeline_mode = #tpu.pipeline_mode<synchronous>, transform_indices = @transform_2, window_bounds = array<i64: 8, 1>}, {pipeline_mode = #tpu.pipeline_mode<synchronous>, transform_indices = @transform_3, window_bounds = array<i64: 8, 1>}, {transform_indices = @transform_4, window_bounds = array<i64: 1, 8, 256>}]} {
    %c0 = arith.constant 0 : index
    %c0_0 = arith.constant 0 : index
    %0 = vector.load %arg2[%c0, %c0_0] : memref<8x72xbf16, #tpu.memory_space<vmem>>, vector<8x72xbf16>
    %c0_1 = arith.constant 0 : index
    %c0_2 = arith.constant 0 : index
    %c0_3 = arith.constant 0 : index
    %1 = vector.load %arg3[%c0_1, %c0_2, %c0_3] : memref<1x72x256xbf16, #tpu.memory_space<vmem>>, vector<1x72x256xbf16>
    %2 = vector.shape_cast %1 : vector<1x72x256xbf16> to vector<72x256xbf16>
    %cst = arith.constant dense<0.000000e+00> : vector<8x256xf32>
    %3 = tpu.matmul %0, %2, %cst {dimension_numbers = #tpu.dot_dimension_numbers<[1], [0], [0], [1], [0, 0, 1, 1], [], []>} : vector<8x72xbf16>, vector<72x256xbf16>, vector<8x256xf32> -> vector<8x256xf32>
    %c0_4 = arith.constant 0 : index
    %c0_5 = arith.constant 0 : index
    %4 = vector.load %arg4[%c0_4, %c0_5] : memref<8x1xf32, #tpu.memory_space<vmem>>, vector<8x1xf32>
    %5 = vector.broadcast %4 : vector<8x1xf32> to vector<8x256xf32>
    %6 = arith.mulf %3, %5 : vector<8x256xf32>
    %c0_6 = arith.constant 0 : index
    %c0_7 = arith.constant 0 : index
    %7 = vector.load %arg5[%c0_6, %c0_7] : memref<8x1xf32, #tpu.memory_space<vmem>>, vector<8x1xf32>
    %8 = vector.broadcast %7 : vector<8x1xf32> to vector<8x256xf32>
    %9 = arith.addf %6, %8 : vector<8x256xf32>
    %c0_8 = arith.constant 0 : index
    %c0_9 = arith.constant 0 : index
    %c0_10 = arith.constant 0 : index
    %10 = vector.load %arg6[%c0_8, %c0_9, %c0_10] : memref<1x8x256xf32, #tpu.memory_space<vmem>>, vector<1x8x256xf32>
    %11 = vector.shape_cast %10 : vector<1x8x256xf32> to vector<8x256xf32>
    %12 = vector.shape_cast %9 : vector<8x256xf32> to vector<1x8x256xf32>
    tpu.vector_store %arg6[%c0_8, %c0_9, %c0_10], %12 {strides = array<i32>} : memref<1x8x256xf32, #tpu.memory_space<vmem>>, vector<1x8x256xf32>,
    return
  }
  func.func @transform_0(%arg0: i32, %arg1: i32) -> (i32, i32) {
    %c0_i32 = arith.constant 0 : i32
    %c0_i32_0 = arith.constant 0 : i32
    %c0_i32_1 = arith.constant 0 : i32
    return %c0_i32, %c0_i32_0 : i32, i32
  }
  func.func @transform_1(%arg0: i32, %arg1: i32) -> (i32, i32, i32) {
    %c0_i32 = arith.constant 0 : i32
    %c0_i32_0 = arith.constant 0 : i32
    return %arg0, %c0_i32, %arg1 : i32, i32, i32
  }
  func.func @transform_2(%arg0: i32, %arg1: i32) -> (i32, i32) {
    %c0_i32 = arith.constant 0 : i32
    %c0_i32_0 = arith.constant 0 : i32
    %c0_i32_1 = arith.constant 0 : i32
    return %c0_i32, %c0_i32_0 : i32, i32
  }
  func.func @transform_3(%arg0: i32, %arg1: i32) -> (i32, i32) {
    %c0_i32 = arith.constant 0 : i32
    %c0_i32_0 = arith.constant 0 : i32
    %c0_i32_1 = arith.constant 0 : i32
    return %c0_i32, %c0_i32_0 : i32, i32
  }
  func.func @transform_4(%arg0: i32, %arg1: i32) -> (i32, i32, i32) {
    %c0_i32 = arith.constant 0 : i32
    %c0_i32_0 = arith.constant 0 : i32
    return %arg0, %c0_i32, %arg1 : i32, i32, i32
  }
}

module attributes {stable_mosaic.version = 11 : i64} {
  func.func @_upsample_mm_kernel(%arg0: i32, %arg1: i32, %arg2: memref<1x8x256xf32, #tpu.memory_space<vmem>>, %arg3: memref<256x512xf32, #tpu.memory_space<vmem>>, %arg4: memref<1x8x512xf32, #tpu.memory_space<vmem>>) attributes {dimension_semantics = [#tpu.dimension_semantics<parallel>, #tpu.dimension_semantics<parallel>], iteration_bounds = array<i64: 2, 2>, scalar_prefetch = 0 : i64, scratch_operands = 0 : i64, tpu.core_type = #tpu.core_type<tc>, window_params = [{transform_indices = @transform_0, window_bounds = array<i64: 1, 8, 256>}, {transform_indices = @transform_1, window_bounds = array<i64: 256, 512>}, {transform_indices = @transform_2, window_bounds = array<i64: 1, 8, 512>}]} {
    %c0 = arith.constant 0 : index
    %c0_0 = arith.constant 0 : index
    %c0_1 = arith.constant 0 : index
    %0 = vector.load %arg2[%c0, %c0_0, %c0_1] : memref<1x8x256xf32, #tpu.memory_space<vmem>>, vector<1x8x256xf32>
    %1 = vector.shape_cast %0 : vector<1x8x256xf32> to vector<8x256xf32>
    %c0_2 = arith.constant 0 : index
    %c0_3 = arith.constant 0 : index
    %2 = vector.load %arg3[%c0_2, %c0_3] : memref<256x512xf32, #tpu.memory_space<vmem>>, vector<256x512xf32>
    %cst = arith.constant dense<0.000000e+00> : vector<8x512xf32>
    %3 = tpu.matmul %1, %2, %cst {dimension_numbers = #tpu.dot_dimension_numbers<[1], [0], [0], [1], [0, 0, 1, 1], [], []>} : vector<8x256xf32>, vector<256x512xf32>, vector<8x512xf32> -> vector<8x512xf32>
    %c0_4 = arith.constant 0 : index
    %c0_5 = arith.constant 0 : index
    %c0_6 = arith.constant 0 : index
    %4 = vector.load %arg4[%c0_4, %c0_5, %c0_6] : memref<1x8x512xf32, #tpu.memory_space<vmem>>, vector<1x8x512xf32>
    %5 = vector.shape_cast %4 : vector<1x8x512xf32> to vector<8x512xf32>
    %6 = vector.shape_cast %3 : vector<8x512xf32> to vector<1x8x512xf32>
    tpu.vector_store %arg4[%c0_4, %c0_5, %c0_6], %6 {strides = array<i32>} : memref<1x8x512xf32, #tpu.memory_space<vmem>>, vector<1x8x512xf32>,
    return
  }
  func.func @transform_0(%arg0: i32, %arg1: i32) -> (i32, i32, i32) {
    %c0_i32 = arith.constant 0 : i32
    %c0_i32_0 = arith.constant 0 : i32
    %c0_i32_1 = arith.constant 0 : i32
    return %arg0, %c0_i32, %c0_i32_0 : i32, i32, i32
  }
  func.func @transform_1(%arg0: i32, %arg1: i32) -> (i32, i32) {
    %c0_i32 = arith.constant 0 : i32
    %c0_i32_0 = arith.constant 0 : i32
    return %c0_i32, %arg1 : i32, i32
  }
  func.func @transform_2(%arg0: i32, %arg1: i32) -> (i32, i32, i32) {
    %c0_i32 = arith.constant 0 : i32
    %c0_i32_0 = arith.constant 0 : i32
    return %arg0, %c0_i32, %arg1 : i32, i32, i32
  }
}

module attributes {stable_mosaic.version = 11 : i64} {
  func.func @_matmul_affine_kernel(%arg0: i32, %arg1: i32, %arg2: memref<8x72xbf16, #tpu.memory_space<vmem>>, %arg3: memref<1x72x512xbf16, #tpu.memory_space<vmem>>, %arg4: memref<8x1xf32, #tpu.memory_space<vmem>>, %arg5: memref<8x1xf32, #tpu.memory_space<vmem>>, %arg6: memref<1x8x512xf32, #tpu.memory_space<vmem>>) attributes {dimension_semantics = [#tpu.dimension_semantics<parallel>, #tpu.dimension_semantics<parallel>], iteration_bounds = array<i64: 2, 2>, scalar_prefetch = 0 : i64, scratch_operands = 0 : i64, tpu.core_type = #tpu.core_type<tc>, window_params = [{pipeline_mode = #tpu.pipeline_mode<synchronous>, transform_indices = @transform_0, window_bounds = array<i64: 8, 72>}, {transform_indices = @transform_1, window_bounds = array<i64: 1, 72, 512>}, {pipeline_mode = #tpu.pipeline_mode<synchronous>, transform_indices = @transform_2, window_bounds = array<i64: 8, 1>}, {pipeline_mode = #tpu.pipeline_mode<synchronous>, transform_indices = @transform_3, window_bounds = array<i64: 8, 1>}, {transform_indices = @transform_4, window_bounds = array<i64: 1, 8, 512>}]} {
    %c0 = arith.constant 0 : index
    %c0_0 = arith.constant 0 : index
    %0 = vector.load %arg2[%c0, %c0_0] : memref<8x72xbf16, #tpu.memory_space<vmem>>, vector<8x72xbf16>
    %c0_1 = arith.constant 0 : index
    %c0_2 = arith.constant 0 : index
    %c0_3 = arith.constant 0 : index
    %1 = vector.load %arg3[%c0_1, %c0_2, %c0_3] : memref<1x72x512xbf16, #tpu.memory_space<vmem>>, vector<1x72x512xbf16>
    %2 = vector.shape_cast %1 : vector<1x72x512xbf16> to vector<72x512xbf16>
    %cst = arith.constant dense<0.000000e+00> : vector<8x512xf32>
    %3 = tpu.matmul %0, %2, %cst {dimension_numbers = #tpu.dot_dimension_numbers<[1], [0], [0], [1], [0, 0, 1, 1], [], []>} : vector<8x72xbf16>, vector<72x512xbf16>, vector<8x512xf32> -> vector<8x512xf32>
    %c0_4 = arith.constant 0 : index
    %c0_5 = arith.constant 0 : index
    %4 = vector.load %arg4[%c0_4, %c0_5] : memref<8x1xf32, #tpu.memory_space<vmem>>, vector<8x1xf32>
    %5 = vector.broadcast %4 : vector<8x1xf32> to vector<8x512xf32>
    %6 = arith.mulf %3, %5 : vector<8x512xf32>
    %c0_6 = arith.constant 0 : index
    %c0_7 = arith.constant 0 : index
    %7 = vector.load %arg5[%c0_6, %c0_7] : memref<8x1xf32, #tpu.memory_space<vmem>>, vector<8x1xf32>
    %8 = vector.broadcast %7 : vector<8x1xf32> to vector<8x512xf32>
    %9 = arith.addf %6, %8 : vector<8x512xf32>
    %c0_8 = arith.constant 0 : index
    %c0_9 = arith.constant 0 : index
    %c0_10 = arith.constant 0 : index
    %10 = vector.load %arg6[%c0_8, %c0_9, %c0_10] : memref<1x8x512xf32, #tpu.memory_space<vmem>>, vector<1x8x512xf32>
    %11 = vector.shape_cast %10 : vector<1x8x512xf32> to vector<8x512xf32>
    %12 = vector.shape_cast %9 : vector<8x512xf32> to vector<1x8x512xf32>
    tpu.vector_store %arg6[%c0_8, %c0_9, %c0_10], %12 {strides = array<i32>} : memref<1x8x512xf32, #tpu.memory_space<vmem>>, vector<1x8x512xf32>,
    return
  }
  func.func @transform_0(%arg0: i32, %arg1: i32) -> (i32, i32) {
    %c0_i32 = arith.constant 0 : i32
    %c0_i32_0 = arith.constant 0 : i32
    %c0_i32_1 = arith.constant 0 : i32
    return %c0_i32, %c0_i32_0 : i32, i32
  }
  func.func @transform_1(%arg0: i32, %arg1: i32) -> (i32, i32, i32) {
    %c0_i32 = arith.constant 0 : i32
    %c0_i32_0 = arith.constant 0 : i32
    return %arg0, %c0_i32, %arg1 : i32, i32, i32
  }
  func.func @transform_2(%arg0: i32, %arg1: i32) -> (i32, i32) {
    %c0_i32 = arith.constant 0 : i32
    %c0_i32_0 = arith.constant 0 : i32
    %c0_i32_1 = arith.constant 0 : i32
    return %c0_i32, %c0_i32_0 : i32, i32
  }
  func.func @transform_3(%arg0: i32, %arg1: i32) -> (i32, i32) {
    %c0_i32 = arith.constant 0 : i32
    %c0_i32_0 = arith.constant 0 : i32
    %c0_i32_1 = arith.constant 0 : i32
    return %c0_i32, %c0_i32_0 : i32, i32
  }
  func.func @transform_4(%arg0: i32, %arg1: i32) -> (i32, i32, i32) {
    %c0_i32 = arith.constant 0 : i32
    %c0_i32_0 = arith.constant 0 : i32
    return %arg0, %c0_i32, %arg1 : i32, i32, i32
  }
}

module attributes {stable_mosaic.version = 11 : i64} {
  func.func @_upsample_mm_kernel(%arg0: i32, %arg1: i32, %arg2: memref<1x4x256xf32, #tpu.memory_space<vmem>>, %arg3: memref<256x512xf32, #tpu.memory_space<vmem>>, %arg4: memref<1x4x512xf32, #tpu.memory_space<vmem>>) attributes {dimension_semantics = [#tpu.dimension_semantics<parallel>, #tpu.dimension_semantics<parallel>], iteration_bounds = array<i64: 2, 2>, scalar_prefetch = 0 : i64, scratch_operands = 0 : i64, tpu.core_type = #tpu.core_type<tc>, window_params = [{transform_indices = @transform_0, window_bounds = array<i64: 1, 4, 256>}, {transform_indices = @transform_1, window_bounds = array<i64: 256, 512>}, {transform_indices = @transform_2, window_bounds = array<i64: 1, 4, 512>}]} {
    %c0 = arith.constant 0 : index
    %c0_0 = arith.constant 0 : index
    %c0_1 = arith.constant 0 : index
    %0 = vector.load %arg2[%c0, %c0_0, %c0_1] : memref<1x4x256xf32, #tpu.memory_space<vmem>>, vector<1x4x256xf32>
    %1 = vector.shape_cast %0 : vector<1x4x256xf32> to vector<4x256xf32>
    %c0_2 = arith.constant 0 : index
    %c0_3 = arith.constant 0 : index
    %2 = vector.load %arg3[%c0_2, %c0_3] : memref<256x512xf32, #tpu.memory_space<vmem>>, vector<256x512xf32>
    %cst = arith.constant dense<0.000000e+00> : vector<4x512xf32>
    %3 = tpu.matmul %1, %2, %cst {dimension_numbers = #tpu.dot_dimension_numbers<[1], [0], [0], [1], [0, 0, 1, 1], [], []>} : vector<4x256xf32>, vector<256x512xf32>, vector<4x512xf32> -> vector<4x512xf32>
    %c0_4 = arith.constant 0 : index
    %c0_5 = arith.constant 0 : index
    %c0_6 = arith.constant 0 : index
    %4 = vector.load %arg4[%c0_4, %c0_5, %c0_6] : memref<1x4x512xf32, #tpu.memory_space<vmem>>, vector<1x4x512xf32>
    %5 = vector.shape_cast %4 : vector<1x4x512xf32> to vector<4x512xf32>
    %6 = vector.shape_cast %3 : vector<4x512xf32> to vector<1x4x512xf32>
    tpu.vector_store %arg4[%c0_4, %c0_5, %c0_6], %6 {strides = array<i32>} : memref<1x4x512xf32, #tpu.memory_space<vmem>>, vector<1x4x512xf32>,
    return
  }
  func.func @transform_0(%arg0: i32, %arg1: i32) -> (i32, i32, i32) {
    %c0_i32 = arith.constant 0 : i32
    %c0_i32_0 = arith.constant 0 : i32
    %c0_i32_1 = arith.constant 0 : i32
    return %arg0, %c0_i32, %c0_i32_0 : i32, i32, i32
  }
  func.func @transform_1(%arg0: i32, %arg1: i32) -> (i32, i32) {
    %c0_i32 = arith.constant 0 : i32
    %c0_i32_0 = arith.constant 0 : i32
    return %c0_i32, %arg1 : i32, i32
  }
  func.func @transform_2(%arg0: i32, %arg1: i32) -> (i32, i32, i32) {
    %c0_i32 = arith.constant 0 : i32
    %c0_i32_0 = arith.constant 0 : i32
    return %arg0, %c0_i32, %arg1 : i32, i32, i32
  }
}

module attributes {stable_mosaic.version = 11 : i64} {
  func.func @_matmul_affine_kernel(%arg0: i32, %arg1: i32, %arg2: memref<4x36xbf16, #tpu.memory_space<vmem>>, %arg3: memref<1x36x512xbf16, #tpu.memory_space<vmem>>, %arg4: memref<4x1xf32, #tpu.memory_space<vmem>>, %arg5: memref<4x1xf32, #tpu.memory_space<vmem>>, %arg6: memref<1x4x512xf32, #tpu.memory_space<vmem>>) attributes {dimension_semantics = [#tpu.dimension_semantics<parallel>, #tpu.dimension_semantics<parallel>], iteration_bounds = array<i64: 2, 2>, scalar_prefetch = 0 : i64, scratch_operands = 0 : i64, tpu.core_type = #tpu.core_type<tc>, window_params = [{pipeline_mode = #tpu.pipeline_mode<synchronous>, transform_indices = @transform_0, window_bounds = array<i64: 4, 36>}, {transform_indices = @transform_1, window_bounds = array<i64: 1, 36, 512>}, {pipeline_mode = #tpu.pipeline_mode<synchronous>, transform_indices = @transform_2, window_bounds = array<i64: 4, 1>}, {pipeline_mode = #tpu.pipeline_mode<synchronous>, transform_indices = @transform_3, window_bounds = array<i64: 4, 1>}, {transform_indices = @transform_4, window_bounds = array<i64: 1, 4, 512>}]} {
    %c0 = arith.constant 0 : index
    %c0_0 = arith.constant 0 : index
    %0 = vector.load %arg2[%c0, %c0_0] : memref<4x36xbf16, #tpu.memory_space<vmem>>, vector<4x36xbf16>
    %c0_1 = arith.constant 0 : index
    %c0_2 = arith.constant 0 : index
    %c0_3 = arith.constant 0 : index
    %1 = vector.load %arg3[%c0_1, %c0_2, %c0_3] : memref<1x36x512xbf16, #tpu.memory_space<vmem>>, vector<1x36x512xbf16>
    %2 = vector.shape_cast %1 : vector<1x36x512xbf16> to vector<36x512xbf16>
    %cst = arith.constant dense<0.000000e+00> : vector<4x512xf32>
    %3 = tpu.matmul %0, %2, %cst {dimension_numbers = #tpu.dot_dimension_numbers<[1], [0], [0], [1], [0, 0, 1, 1], [], []>} : vector<4x36xbf16>, vector<36x512xbf16>, vector<4x512xf32> -> vector<4x512xf32>
    %c0_4 = arith.constant 0 : index
    %c0_5 = arith.constant 0 : index
    %4 = vector.load %arg4[%c0_4, %c0_5] : memref<4x1xf32, #tpu.memory_space<vmem>>, vector<4x1xf32>
    %5 = vector.broadcast %4 : vector<4x1xf32> to vector<4x512xf32>
    %6 = arith.mulf %3, %5 : vector<4x512xf32>
    %c0_6 = arith.constant 0 : index
    %c0_7 = arith.constant 0 : index
    %7 = vector.load %arg5[%c0_6, %c0_7] : memref<4x1xf32, #tpu.memory_space<vmem>>, vector<4x1xf32>
    %8 = vector.broadcast %7 : vector<4x1xf32> to vector<4x512xf32>
    %9 = arith.addf %6, %8 : vector<4x512xf32>
    %c0_8 = arith.constant 0 : index
    %c0_9 = arith.constant 0 : index
    %c0_10 = arith.constant 0 : index
    %10 = vector.load %arg6[%c0_8, %c0_9, %c0_10] : memref<1x4x512xf32, #tpu.memory_space<vmem>>, vector<1x4x512xf32>
    %11 = vector.shape_cast %10 : vector<1x4x512xf32> to vector<4x512xf32>
    %12 = vector.shape_cast %9 : vector<4x512xf32> to vector<1x4x512xf32>
    tpu.vector_store %arg6[%c0_8, %c0_9, %c0_10], %12 {strides = array<i32>} : memref<1x4x512xf32, #tpu.memory_space<vmem>>, vector<1x4x512xf32>,
    return
  }
  func.func @transform_0(%arg0: i32, %arg1: i32) -> (i32, i32) {
    %c0_i32 = arith.constant 0 : i32
    %c0_i32_0 = arith.constant 0 : i32
    %c0_i32_1 = arith.constant 0 : i32
    return %c0_i32, %c0_i32_0 : i32, i32
  }
  func.func @transform_1(%arg0: i32, %arg1: i32) -> (i32, i32, i32) {
    %c0_i32 = arith.constant 0 : i32
    %c0_i32_0 = arith.constant 0 : i32
    return %arg0, %c0_i32, %arg1 : i32, i32, i32
  }
  func.func @transform_2(%arg0: i32, %arg1: i32) -> (i32, i32) {
    %c0_i32 = arith.constant 0 : i32
    %c0_i32_0 = arith.constant 0 : i32
    %c0_i32_1 = arith.constant 0 : i32
    return %c0_i32, %c0_i32_0 : i32, i32
  }
  func.func @transform_3(%arg0: i32, %arg1: i32) -> (i32, i32) {
    %c0_i32 = arith.constant 0 : i32
    %c0_i32_0 = arith.constant 0 : i32
    %c0_i32_1 = arith.constant 0 : i32
    return %c0_i32, %c0_i32_0 : i32, i32
  }
  func.func @transform_4(%arg0: i32, %arg1: i32) -> (i32, i32, i32) {
    %c0_i32 = arith.constant 0 : i32
    %c0_i32_0 = arith.constant 0 : i32
    return %arg0, %c0_i32, %arg1 : i32, i32, i32
  }
}

module attributes {stable_mosaic.version = 11 : i64} {
  func.func @_matmul_affine_kernel(%arg0: i32, %arg1: i32, %arg2: memref<16x144xbf16, #tpu.memory_space<vmem>>, %arg3: memref<1x144x512xbf16, #tpu.memory_space<vmem>>, %arg4: memref<16x1xf32, #tpu.memory_space<vmem>>, %arg5: memref<16x1xf32, #tpu.memory_space<vmem>>, %arg6: memref<1x16x512xf32, #tpu.memory_space<vmem>>) attributes {dimension_semantics = [#tpu.dimension_semantics<parallel>, #tpu.dimension_semantics<parallel>], iteration_bounds = array<i64: 2, 2>, scalar_prefetch = 0 : i64, scratch_operands = 0 : i64, tpu.core_type = #tpu.core_type<tc>, window_params = [{pipeline_mode = #tpu.pipeline_mode<synchronous>, transform_indices = @transform_0, window_bounds = array<i64: 16, 144>}, {transform_indices = @transform_1, window_bounds = array<i64: 1, 144, 512>}, {pipeline_mode = #tpu.pipeline_mode<synchronous>, transform_indices = @transform_2, window_bounds = array<i64: 16, 1>}, {pipeline_mode = #tpu.pipeline_mode<synchronous>, transform_indices = @transform_3, window_bounds = array<i64: 16, 1>}, {transform_indices = @transform_4, window_bounds = array<i64: 1, 16, 512>}]} {
    %c0 = arith.constant 0 : index
    %c0_0 = arith.constant 0 : index
    %0 = vector.load %arg2[%c0, %c0_0] : memref<16x144xbf16, #tpu.memory_space<vmem>>, vector<16x144xbf16>
    %c0_1 = arith.constant 0 : index
    %c0_2 = arith.constant 0 : index
    %c0_3 = arith.constant 0 : index
    %1 = vector.load %arg3[%c0_1, %c0_2, %c0_3] : memref<1x144x512xbf16, #tpu.memory_space<vmem>>, vector<1x144x512xbf16>
    %2 = vector.shape_cast %1 : vector<1x144x512xbf16> to vector<144x512xbf16>
    %cst = arith.constant dense<0.000000e+00> : vector<16x512xf32>
    %3 = tpu.matmul %0, %2, %cst {dimension_numbers = #tpu.dot_dimension_numbers<[1], [0], [0], [1], [0, 0, 1, 1], [], []>} : vector<16x144xbf16>, vector<144x512xbf16>, vector<16x512xf32> -> vector<16x512xf32>
    %c0_4 = arith.constant 0 : index
    %c0_5 = arith.constant 0 : index
    %4 = vector.load %arg4[%c0_4, %c0_5] : memref<16x1xf32, #tpu.memory_space<vmem>>, vector<16x1xf32>
    %5 = vector.broadcast %4 : vector<16x1xf32> to vector<16x512xf32>
    %6 = arith.mulf %3, %5 : vector<16x512xf32>
    %c0_6 = arith.constant 0 : index
    %c0_7 = arith.constant 0 : index
    %7 = vector.load %arg5[%c0_6, %c0_7] : memref<16x1xf32, #tpu.memory_space<vmem>>, vector<16x1xf32>
    %8 = vector.broadcast %7 : vector<16x1xf32> to vector<16x512xf32>
    %9 = arith.addf %6, %8 : vector<16x512xf32>
    %c0_8 = arith.constant 0 : index
    %c0_9 = arith.constant 0 : index
    %c0_10 = arith.constant 0 : index
    %10 = vector.load %arg6[%c0_8, %c0_9, %c0_10] : memref<1x16x512xf32, #tpu.memory_space<vmem>>, vector<1x16x512xf32>
    %11 = vector.shape_cast %10 : vector<1x16x512xf32> to vector<16x512xf32>
    %12 = vector.shape_cast %9 : vector<16x512xf32> to vector<1x16x512xf32>
    tpu.vector_store %arg6[%c0_8, %c0_9, %c0_10], %12 {strides = array<i32>} : memref<1x16x512xf32, #tpu.memory_space<vmem>>, vector<1x16x512xf32>,
    return
  }
  func.func @transform_0(%arg0: i32, %arg1: i32) -> (i32, i32) {
    %c0_i32 = arith.constant 0 : i32
    %c0_i32_0 = arith.constant 0 : i32
    %c0_i32_1 = arith.constant 0 : i32
    return %c0_i32, %c0_i32_0 : i32, i32
  }
  func.func @transform_1(%arg0: i32, %arg1: i32) -> (i32, i32, i32) {
    %c0_i32 = arith.constant 0 : i32
    %c0_i32_0 = arith.constant 0 : i32
    return %arg0, %c0_i32, %arg1 : i32, i32, i32
  }
  func.func @transform_2(%arg0: i32, %arg1: i32) -> (i32, i32) {
    %c0_i32 = arith.constant 0 : i32
    %c0_i32_0 = arith.constant 0 : i32
    %c0_i32_1 = arith.constant 0 : i32
    return %c0_i32, %c0_i32_0 : i32, i32
  }
  func.func @transform_3(%arg0: i32, %arg1: i32) -> (i32, i32) {
    %c0_i32 = arith.constant 0 : i32
    %c0_i32_0 = arith.constant 0 : i32
    %c0_i32_1 = arith.constant 0 : i32
    return %c0_i32, %c0_i32_0 : i32, i32
  }
  func.func @transform_4(%arg0: i32, %arg1: i32) -> (i32, i32, i32) {
    %c0_i32 = arith.constant 0 : i32
    %c0_i32_0 = arith.constant 0 : i32
    return %arg0, %c0_i32, %arg1 : i32, i32, i32
  }
}

module attributes {stable_mosaic.version = 11 : i64} {
  func.func @_matmul_affine_kernel(%arg0: i32, %arg1: i32, %arg2: memref<50x16xbf16, #tpu.memory_space<vmem>>, %arg3: memref<1x16x512xbf16, #tpu.memory_space<vmem>>, %arg4: memref<50x1xf32, #tpu.memory_space<vmem>>, %arg5: memref<50x1xf32, #tpu.memory_space<vmem>>, %arg6: memref<1x50x512xf32, #tpu.memory_space<vmem>>) attributes {dimension_semantics = [#tpu.dimension_semantics<parallel>, #tpu.dimension_semantics<parallel>], iteration_bounds = array<i64: 2, 2>, scalar_prefetch = 0 : i64, scratch_operands = 0 : i64, tpu.core_type = #tpu.core_type<tc>, window_params = [{pipeline_mode = #tpu.pipeline_mode<synchronous>, transform_indices = @transform_0, window_bounds = array<i64: 50, 16>}, {transform_indices = @transform_1, window_bounds = array<i64: 1, 16, 512>}, {pipeline_mode = #tpu.pipeline_mode<synchronous>, transform_indices = @transform_2, window_bounds = array<i64: 50, 1>}, {pipeline_mode = #tpu.pipeline_mode<synchronous>, transform_indices = @transform_3, window_bounds = array<i64: 50, 1>}, {transform_indices = @transform_4, window_bounds = array<i64: 1, 50, 512>}]} {
    %c0 = arith.constant 0 : index
    %c0_0 = arith.constant 0 : index
    %0 = vector.load %arg2[%c0, %c0_0] : memref<50x16xbf16, #tpu.memory_space<vmem>>, vector<50x16xbf16>
    %c0_1 = arith.constant 0 : index
    %c0_2 = arith.constant 0 : index
    %c0_3 = arith.constant 0 : index
    %1 = vector.load %arg3[%c0_1, %c0_2, %c0_3] : memref<1x16x512xbf16, #tpu.memory_space<vmem>>, vector<1x16x512xbf16>
    %2 = vector.shape_cast %1 : vector<1x16x512xbf16> to vector<16x512xbf16>
    %cst = arith.constant dense<0.000000e+00> : vector<50x512xf32>
    %3 = tpu.matmul %0, %2, %cst {dimension_numbers = #tpu.dot_dimension_numbers<[1], [0], [0], [1], [0, 0, 1, 1], [], []>} : vector<50x16xbf16>, vector<16x512xbf16>, vector<50x512xf32> -> vector<50x512xf32>
    %c0_4 = arith.constant 0 : index
    %c0_5 = arith.constant 0 : index
    %4 = vector.load %arg4[%c0_4, %c0_5] : memref<50x1xf32, #tpu.memory_space<vmem>>, vector<50x1xf32>
    %5 = vector.broadcast %4 : vector<50x1xf32> to vector<50x512xf32>
    %6 = arith.mulf %3, %5 : vector<50x512xf32>
    %c0_6 = arith.constant 0 : index
    %c0_7 = arith.constant 0 : index
    %7 = vector.load %arg5[%c0_6, %c0_7] : memref<50x1xf32, #tpu.memory_space<vmem>>, vector<50x1xf32>
    %8 = vector.broadcast %7 : vector<50x1xf32> to vector<50x512xf32>
    %9 = arith.addf %6, %8 : vector<50x512xf32>
    %c0_8 = arith.constant 0 : index
    %c0_9 = arith.constant 0 : index
    %c0_10 = arith.constant 0 : index
    %10 = vector.load %arg6[%c0_8, %c0_9, %c0_10] : memref<1x50x512xf32, #tpu.memory_space<vmem>>, vector<1x50x512xf32>
    %11 = vector.shape_cast %10 : vector<1x50x512xf32> to vector<50x512xf32>
    %12 = vector.shape_cast %9 : vector<50x512xf32> to vector<1x50x512xf32>
    tpu.vector_store %arg6[%c0_8, %c0_9, %c0_10], %12 {strides = array<i32>} : memref<1x50x512xf32, #tpu.memory_space<vmem>>, vector<1x50x512xf32>,
    return
  }
  func.func @transform_0(%arg0: i32, %arg1: i32) -> (i32, i32) {
    %c0_i32 = arith.constant 0 : i32
    %c0_i32_0 = arith.constant 0 : i32
    %c0_i32_1 = arith.constant 0 : i32
    return %c0_i32, %c0_i32_0 : i32, i32
  }
  func.func @transform_1(%arg0: i32, %arg1: i32) -> (i32, i32, i32) {
    %c0_i32 = arith.constant 0 : i32
    %c0_i32_0 = arith.constant 0 : i32
    return %arg0, %c0_i32, %arg1 : i32, i32, i32
  }
  func.func @transform_2(%arg0: i32, %arg1: i32) -> (i32, i32) {
    %c0_i32 = arith.constant 0 : i32
    %c0_i32_0 = arith.constant 0 : i32
    %c0_i32_1 = arith.constant 0 : i32
    return %c0_i32, %c0_i32_0 : i32, i32
  }
  func.func @transform_3(%arg0: i32, %arg1: i32) -> (i32, i32) {
    %c0_i32 = arith.constant 0 : i32
    %c0_i32_0 = arith.constant 0 : i32
    %c0_i32_1 = arith.constant 0 : i32
    return %c0_i32, %c0_i32_0 : i32, i32
  }
  func.func @transform_4(%arg0: i32, %arg1: i32) -> (i32, i32, i32) {
    %c0_i32 = arith.constant 0 : i32
    %c0_i32_0 = arith.constant 0 : i32
    return %arg0, %c0_i32, %arg1 : i32, i32, i32
  }
}

</mosaic_0001>

<bundles_post_ra>
// kernel: edg_forward.13
= control target key start
LH: loop header
LB: loop body
LE: loop exit
PB: predicated region body
PF: predicated region fallthrough
CT: control target
= control target key end

     0   :  { %s427_s9 = smov 0   ;;  %s429_s10 = smov 0   ;;  %s512_s0 = inlined_call_operand.vmem [shape: f32[2,4,64], index: 0, kind: input, shape index: {}]   ;;  %s513_s1 = inlined_call_operand.vmem [shape: f32[64,256], index: 1, kind: input, shape index: {}]   ;;  %s514_s2 = inlined_call_operand.vmem [shape: f32[2,4,256], index: 2, kind: output, shape index: {}]  }
   0x1   :  { %s431_s11 = smov 0  }
   0x2 LB: > { %s24_s12 = sadd.s32 1, %s406_s10  ;;  %p355_p0 = scmp.ge.s32.totalorder %s410_s11, 1  ;;  %s410_s11 = sphi %s431_s11, %s12_s11   ;;  %s406_s10 = sphi %s429_s10, %s516_s10   ;;  %s402_s9 = sphi %s427_s9, %s515_s9  }
   0x3   : > { %p26_p1 = scmp.ge.s32.totalorder %s24_s12, 2  ;;  %p136_p2 = scmp.lt.s32.totalorder %s410_s11, 3 }
   0x5   : > { %s518_s12 = smov (%p26_p1, %s24_s12), 0  ;;  %p137_p3 = pnand %p355_p0, %p136_p2 }
   0x6   : > { %p166_p4 = scmp.lt.s32.totalorder (!%p137_p3), %s402_s9, 1 }
   0x7   : > { %140 = sbr.rel (%p137_p3) target bundleno = 158 (0x9e), region = 28 }
   0xc   : > { %v202_v0 = vld [vmem:[%s513_s1 + $0x78] sm:$0xff]  ;;  %v201_v1 = vld [vmem:[%s513_s1 + $0x70] sm:$0xff]  ;;  %v200_v2 = vld [vmem:[%s513_s1 + $0x68] sm:$0xff]  ;;  %s520_s9 = smov (!%p166_p4, %s402_s9), 1  ;;  %vm203_vm0 = vcmask 523264   ;;  %vm250_vm1 = vcmask 1043456  }
   0xd   : > { %235 = vmatpush.msra.mxu1 %v202_v0  ;;  %215 = vmatpush.msra.mxu0 %v201_v1  ;;  %v199_v3 = vld [vmem:[%s513_s1 + $0x60] sm:$0xff]  ;;  %v198_v4 = vld [vmem:[%s513_s1 + $0x58] sm:$0xff]  ;;  %v197_v5 = vld [vmem:[%s513_s1 + $0x50] sm:$0xff]  ;;  %s356_s5 = sshll.u32 %s520_s9, 2  ;;  %s363_s25 = sshll.u32 %s520_s9, 3 }
   0xe   : > { %v196_v6 = vld [vmem:[%s513_s1 + $0x48] sm:$0xff]  ;;  %v195_v7 = vld [vmem:[%s513_s1 + $0x40] sm:$0xff]  ;;  %v194_v8 = vld [vmem:[%s513_s1 + $0x38] sm:$0xff]  ;;  %s169_s20 = scalar_lea.vmem %s512_s0, %s356_s5  ;;  %s184_s28 = scalar_lea.vmem %s514_s2, %s363_s25 }
   0xf   : > { %236 = vmatpush.msra.mxu1 %v200_v2  ;;  %216 = vmatpush.msra.mxu0 %v199_v3  ;;  %v193_v9 = vld [vmem:[%s513_s1 + $0x30] sm:$0xff]  ;;  %v192_v10 = vld [vmem:[%s513_s1 + $0x28] sm:$0xff]  ;;  %v191_v11 = vld [vmem:[%s513_s1 + $0x20] sm:$0xff] }
  0x10   : > { %v190_v12 = vld [vmem:[%s513_s1 + $0x18] sm:$0xff]  ;;  %v189_v13 = vld [vmem:[%s513_s1 + $0x10] sm:$0xff]  ;;  %v188_v14 = vld [vmem:[%s513_s1 + $0x8] sm:$0xff] }
  0x11   : > { %237 = vmatpush.msra.mxu1 %v198_v4  ;;  %217 = vmatpush.msra.mxu0 %v197_v5  ;;  %v187_v15 = vld [vmem:[%s513_s1] sm:$0xff] }
  0x12   : > { %v186_v16 = vld [vmem:[%s169_s20] sm:$0xf] }
  0x13   : > { %238 = vmatpush.msra.mxu1 %v196_v6  ;;  %218 = vmatpush.msra.mxu0 %v195_v7 }
  0x15   : > { %239 = vmatpush.msra.mxu1 %v194_v8  ;;  %219 = vmatpush.msra.mxu0 %v193_v9 }
  0x17   : > { %240 = vmatpush.msra.mxu1 %v192_v10  ;;  %220 = vmatpush.msra.mxu0 %v191_v11 }
  0x19   : > { %241 = vmatpush.msra.mxu1 %v190_v12  ;;  %221 = vmatpush.msra.mxu0 %v189_v13 }
  0x1b   : > { %242 = vmatpush.msra.mxu1 %v188_v14  ;;  %222 = vmatpush.msra.mxu0 %v187_v15 }
  0x1c   : > { %360 = vmatmul.msk.f32.vlgmr.msra.gmra.mxu1 %vm203_vm0, %v186_v16  ;;  %359 = vmatmul.msk.f32.vlgmr.msra.gmra.mxu0 %vm203_vm0, %v186_v16 }
  0x99   : > { %v244_v17 = vpop.f32.mrf.mxu1  ;;  %v224_v18 = vpop.f32.mrf.mxu0 }
  0x9a   : > { %v249_v19 = vrot.slane %v244_v17, 4 }
  0x9c   : > { %v251_v20 = vsel %vm250_vm1, %v224_v18, %v249_v19 }
  0x9d   : > { %253 = vst [vmem:[%s184_s28] sm:$0xff] %v251_v20 }
  0x9e PF: > { %s12_s11 = sadd.s32 1, %s410_s11   ;;  %s515_s9 = smov %s406_s10 }
  0x9f   : > { %p9_p5 = scmp.ge.s32.totalorder %s12_s11, 4   ;;  %s516_s10 = smov %s518_s12 }
  0xa1   :  { %11 = sbr.rel (!%p9_p5) target bundleno = 2 (0x2), region = 61 }

// kernel: edg_forward.14
= control target key start
LH: loop header
LB: loop body
LE: loop exit
PB: predicated region body
PF: predicated region fallthrough
CT: control target
= control target key end

     0   :  { %s526_s15 = smov 0   ;;  %s528_s16 = smov 0   ;;  %s572_s0 = inlined_call_operand.vmem [shape: bf16[4,36], index: 0, kind: input, shape index: {}]   ;;  %s573_s1 = inlined_call_operand.vmem [shape: bf16[2,36,256], index: 1, kind: input, shape index: {}]   ;;  %s574_s2 = inlined_call_operand.vmem [shape: f32[4,1], index: 2, kind: input, shape index: {}]   ;;  %s575_s3 = inlined_call_operand.vmem [shape: f32[4,1], index: 3, kind: input, shape index: {}]   ;;  %s576_s4 = inlined_call_operand.vmem [shape: f32[2,4,256], index: 4, kind: output, shape index: {}]  }
   0x1   :  { %s530_s17 = smov 0  }
   0x2 LB: > { %s26_s18 = sadd.s32 1, %s494_s16  ;;  %p420_p0 = scmp.ge.s32.totalorder %s498_s17, 1  ;;  %s498_s17 = sphi %s530_s17, %s14_s17   ;;  %s494_s16 = sphi %s528_s16, %s578_s16   ;;  %s490_s15 = sphi %s526_s15, %s577_s15  }
   0x3   : > { %p28_p1 = scmp.ge.s32.totalorder %s26_s18, 2  ;;  %p183_p2 = scmp.lt.s32.totalorder %s498_s17, 3 }
   0x5   : > { %s580_s18 = smov (%p28_p1, %s26_s18), 0  ;;  %p184_p3 = pnand %p420_p0, %p183_p2 }
   0x6   : > { %p218_p4 = scmp.lt.s32.totalorder (!%p184_p3), %s490_s15, 1 }
   0x7   : > { %187 = sbr.rel (%p184_p3) target bundleno = 168 (0xa8), region = 36 }
   0xc   : > { %v306_v0 = vld [vmem:[%s574_s2] sm:$0xf]  ;;  %v500_v1 = vmov 0   ;;  %s582_s15 = smov (!%p218_p4, %s490_s15), 1  ;;  %vm273_vm0 = vcmask 1041408   ;;  %vm269_vm1 = vcmask 293888  }
   0xd   : > { %475 = vset.pattern.permute.xlu0 %v500_v1  ;;  %s449_s21 = smul.u32 40, %s582_s15  ;;  %v314_v3 = vld [vmem:[%s575_s3] sm:$0xf]  ;;  %s444_s29 = sshll.u32 %s582_s15, 3  ;;  %vm325_vm2 = vcmask 1043456  }
   0xe   : > { %309 = vperm.xlu0 %475, %v306_v0   ;;  %v238_v22 = vld [vmem:[%s572_s0] sm:$0x3]  ;;  %s235_s6 = scalar_lea.vmem %s576_s4, %s444_s29 }
   0xf   : > { %s225_s24 = scalar_lea.vmem %s573_s1, %s449_s21 }
  0x10   : > { %v243_v2 = vld [vmem:[%s225_s24 + $0x20] sm:$0x33]  ;;  %v434_v6 = vld [vmem:[%s225_s24 + $0x10] sm:$0xf]  ;;  %v448_v9 = vld [vmem:[%s225_s24 + $0x14] sm:$0xf0] }
  0x11   : > { %v257_v4 = vunpack.c.l.b16 %v243_v2  ;;  %v258_v5 = vunpack.c.h.b16 %v243_v2  ;;  %v447_v10 = vld [vmem:[%s225_s24 + $0x14] sm:$0xf]  ;;  %v436_v11 = vld [vmem:[%s225_s24 + $0x18] sm:$0xf0]  ;;  %v435_v14 = vor.u32 %v448_v9, %v434_v6  ;;  %v426_v16 = vld [vmem:[%s225_s24] sm:$0xf] }
  0x12   : > { %v439_v15 = vor.u32 %v447_v10, %v436_v11  ;;  %v446_v17 = vld [vmem:[%s225_s24 + $0x4] sm:$0xf0]  ;;  %v445_v18 = vld [vmem:[%s225_s24 + $0x4] sm:$0xf]  ;;  %v428_v19 = vld [vmem:[%s225_s24 + $0x8] sm:$0xf0] }
  0x13   : > { %v263_v7 = vpack.c.b16 %v257_v4, %v257_v4  ;;  %v264_v8 = vpack.c.b16 %v258_v5, %v258_v5  ;;  %v427_v20 = vor.u32 %v446_v17, %v426_v16  ;;  %v431_v21 = vor.u32 %v445_v18, %v428_v19 }
  0x15   : > { %v275_v12 = vsel %vm273_vm0, %v263_v7, 0  ;;  %v278_v13 = vsel %vm273_vm0, %v264_v8, 0 }
  0x16   : > { %317 = vperm.xlu0 %475, %v314_v3   ;;  %285 = vmatpush.bf16.msra.mxu0 %v275_v12 }
  0x17   : > { %298 = vmatpush.bf16.msra.mxu1 %v278_v13 }
  0x1a   : > { %286 = vmatpush.bf16.msra.mxu0 %v435_v14 }
  0x1b   : > { %299 = vmatpush.bf16.msra.mxu1 %v439_v15 }
  0x1e   : > { %287 = vmatpush.bf16.msra.mxu0 %v427_v20 }
  0x1f   : > { %300 = vmatpush.bf16.msra.mxu1 %v431_v21 }
  0x21   : > { %440 = vmatmul.msk.bf16.vlgmr.msra.gmra.mxu0 %vm269_vm1, %v238_v22 }
  0x22   : > { %441 = vmatmul.msk.bf16.vlgmr.msra.gmra.mxu1 %vm269_vm1, %v238_v22 }
  0x80   : > { %v310_v23 = vpop.permute.xlu0 %309 }
  0x88   : > { %v318_v28 = vpop.permute.xlu0 %317 }
  0x9e   : > { %v289_v24 = vpop.f32.mrf.mxu0 }
  0x9f   : > { %v302_v25 = vpop.f32.mrf.mxu1  ;;  %v312_v26 = vmul.f32 %v310_v23, %v289_v24 }
  0xa0   : > { %v313_v27 = vmul.f32 %v310_v23, %v302_v25 }
  0xa1   : > { %v320_v30 = vadd.f32 %v318_v28, %v312_v26 }
  0xa2   : > { %v321_v29 = vadd.f32 %v318_v28, %v313_v27 }
  0xa4   : > { %v324_v31 = vrot.slane %v321_v29, 4 }
  0xa6   : > { %v326_v32 = vsel %vm325_vm2, %v320_v30, %v324_v31  ;;  %v291_v33 = vpop.f32.mrf.mxu0 }
  0xa7   : > { %328 = vst [vmem:[%s235_s6] sm:$0xff] %v326_v32  ;;  %v304_v34 = vpop.f32.mrf.mxu1 }
  0xa8 PF: > { %s14_s17 = sadd.s32 1, %s498_s17   ;;  %s577_s15 = smov %s494_s16 }
  0xa9   : > { %p11_p5 = scmp.ge.s32.totalorder %s14_s17, 4   ;;  %s578_s16 = smov %s580_s18 }
  0xab   :  { %13 = sbr.rel (!%p11_p5) target bundleno = 2 (0x2), region = 66 }

// kernel: edg_forward.16
= control target key start
LH: loop header
LB: loop body
LE: loop exit
PB: predicated region body
PF: predicated region fallthrough
CT: control target
= control target key end

     0   :  { %s565_s15 = smov 0   ;;  %s567_s16 = smov 0   ;;  %s630_s0 = inlined_call_operand.vmem [shape: bf16[8,72], index: 0, kind: input, shape index: {}]   ;;  %s631_s1 = inlined_call_operand.vmem [shape: bf16[2,72,256], index: 1, kind: input, shape index: {}]   ;;  %s632_s2 = inlined_call_operand.vmem [shape: f32[8,1], index: 2, kind: input, shape index: {}]   ;;  %s633_s3 = inlined_call_operand.vmem [shape: f32[8,1], index: 3, kind: input, shape index: {}]   ;;  %s634_s4 = inlined_call_operand.vmem [shape: f32[2,8,256], index: 4, kind: output, shape index: {}]  }
   0x1   :  { %s569_s17 = smov 0  }
   0x2 LB: > { %s26_s18 = sadd.s32 1, %s533_s16  ;;  %p439_p0 = scmp.ge.s32.totalorder %s537_s17, 1  ;;  %s537_s17 = sphi %s569_s17, %s14_s17   ;;  %s533_s16 = sphi %s567_s16, %s636_s16   ;;  %s529_s15 = sphi %s565_s15, %s635_s15  }
   0x3   : > { %p28_p1 = scmp.ge.s32.totalorder %s26_s18, 2  ;;  %p183_p2 = scmp.lt.s32.totalorder %s537_s17, 3 }
   0x5   : > { %s638_s18 = smov (%p28_p1, %s26_s18), 0  ;;  %p184_p3 = pnand %p439_p0, %p183_p2 }
   0x6   : > { %p218_p4 = scmp.lt.s32.totalorder (!%p184_p3), %s529_s15, 1 }
   0x7   : > { %187 = sbr.rel (%p184_p3) target bundleno = 176 (0xb0), region = 36 }
   0xc   : > { %v330_v0 = vld [vmem:[%s632_s2] sm:$0xff]  ;;  %v539_v1 = vmov 0   ;;  %s640_s15 = smov (!%p218_p4, %s529_s15), 1  ;;  %vm297_vm0 = vcmask 1043456   ;;  %vm293_vm1 = vcmask 588800  }
   0xd   : > { %514 = vset.pattern.permute.xlu0 %v539_v1  ;;  %s488_s21 = smul.u32 72, %s640_s15  ;;  %v338_v3 = vld [vmem:[%s633_s3] sm:$0xff]  ;;  %s479_s29 = sshll.u32 %s640_s15, 4 }
   0xe   : > { %333 = vperm.xlu0 %514, %v330_v0   ;;  %v238_v34 = vld [vmem:[%s630_s0] sm:$0xf]  ;;  %s235_s6 = scalar_lea.vmem %s634_s4, %s479_s29 }
   0xf   : > { %s592_s24 = scalar_lea.vmem %s631_s1, %s488_s21 }
  0x10   : > { %v247_v2 = vld [vmem:[%s592_s24 + $0x40] sm:$0xff]  ;;  %v469_v6 = vld [vmem:[%s592_s24 + $0x30] sm:$0xf]  ;;  %v487_v9 = vld [vmem:[%s592_s24 + $0x34] sm:$0xf0] }
  0x11   : > { %v273_v4 = vunpack.c.l.b16 %v247_v2  ;;  %v274_v5 = vunpack.c.h.b16 %v247_v2  ;;  %v486_v10 = vld [vmem:[%s592_s24 + $0x34] sm:$0xf]  ;;  %v471_v11 = vld [vmem:[%s592_s24 + $0x38] sm:$0xf0]  ;;  %v470_v14 = vor.u32 %v487_v9, %v469_v6  ;;  %v461_v16 = vld [vmem:[%s592_s24 + $0x20] sm:$0xf] }
  0x12   : > { %v474_v15 = vor.u32 %v486_v10, %v471_v11  ;;  %v485_v17 = vld [vmem:[%s592_s24 + $0x24] sm:$0xf0]  ;;  %v484_v18 = vld [vmem:[%s592_s24 + $0x24] sm:$0xf]  ;;  %v463_v19 = vld [vmem:[%s592_s24 + $0x28] sm:$0xf0] }
  0x13   : > { %v283_v7 = vpack.c.b16 %v273_v4, %v273_v4  ;;  %v284_v8 = vpack.c.b16 %v274_v5, %v274_v5  ;;  %v462_v20 = vor.u32 %v485_v17, %v461_v16  ;;  %v466_v21 = vor.u32 %v484_v18, %v463_v19  ;;  %v453_v22 = vld [vmem:[%s592_s24 + $0x10] sm:$0xf]  ;;  %v483_v23 = vld [vmem:[%s592_s24 + $0x14] sm:$0xf0]  ;;  %v482_v24 = vld [vmem:[%s592_s24 + $0x14] sm:$0xf] }
  0x14   : > { %v455_v25 = vld [vmem:[%s592_s24 + $0x18] sm:$0xf0]  ;;  %v454_v26 = vor.u32 %v483_v23, %v453_v22  ;;  %v445_v28 = vld [vmem:[%s592_s24] sm:$0xf]  ;;  %v481_v29 = vld [vmem:[%s592_s24 + $0x4] sm:$0xf0] }
  0x15   : > { %v299_v12 = vsel %vm297_vm0, %v283_v7, 0  ;;  %v302_v13 = vsel %vm297_vm0, %v284_v8, 0  ;;  %v458_v27 = vor.u32 %v482_v24, %v455_v25  ;;  %v480_v30 = vld [vmem:[%s592_s24 + $0x4] sm:$0xf]  ;;  %v447_v31 = vld [vmem:[%s592_s24 + $0x8] sm:$0xf0]  ;;  %v446_v32 = vor.u32 %v481_v29, %v445_v28 }
  0x16   : > { %341 = vperm.xlu0 %514, %v338_v3   ;;  %307 = vmatpush.bf16.msra.mxu0 %v299_v12  ;;  %v450_v33 = vor.u32 %v480_v30, %v447_v31 }
  0x17   : > { %320 = vmatpush.bf16.msra.mxu1 %v302_v13 }
  0x1a   : > { %308 = vmatpush.bf16.msra.mxu0 %v470_v14 }
  0x1b   : > { %321 = vmatpush.bf16.msra.mxu1 %v474_v15 }
  0x1e   : > { %309 = vmatpush.bf16.msra.mxu0 %v462_v20 }
  0x1f   : > { %322 = vmatpush.bf16.msra.mxu1 %v466_v21 }
  0x22   : > { %310 = vmatpush.bf16.msra.mxu0 %v454_v26 }
  0x23   : > { %323 = vmatpush.bf16.msra.mxu1 %v458_v27 }
  0x26   : > { %311 = vmatpush.bf16.msra.mxu0 %v446_v32 }
  0x27   : > { %324 = vmatpush.bf16.msra.mxu1 %v450_v33 }
  0x29   : > { %475 = vmatmul.msk.bf16.vlgmr.msra.gmra.mxu0 %vm293_vm1, %v238_v34 }
  0x2a   : > { %476 = vmatmul.msk.bf16.vlgmr.msra.gmra.mxu1 %vm293_vm1, %v238_v34 }
  0x80   : > { %v334_v35 = vpop.permute.xlu0 %333 }
  0x88   : > { %v342_v40 = vpop.permute.xlu0 %341 }
  0xa6   : > { %v313_v36 = vpop.f32.mrf.mxu0 }
  0xa7   : > { %v326_v37 = vpop.f32.mrf.mxu1  ;;  %v336_v38 = vmul.f32 %v334_v35, %v313_v36 }
  0xa8   : > { %v337_v39 = vmul.f32 %v334_v35, %v326_v37 }
  0xa9   : > { %v344_v41 = vadd.f32 %v342_v40, %v336_v38 }
  0xaa   : > { %v345_v42 = vadd.f32 %v342_v40, %v337_v39 }
  0xab   : > { %346 = vst [vmem:[%s235_s6] sm:$0xff] %v344_v41 }
  0xac   : > { %347 = vst [vmem:[%s235_s6 + $0x8] sm:$0xff] %v345_v42 }
  0xae   : > { %v315_v43 = vpop.f32.mrf.mxu0 }
  0xaf   : > { %v328_v44 = vpop.f32.mrf.mxu1 }
  0xb0 PF: > { %s14_s17 = sadd.s32 1, %s537_s17   ;;  %s635_s15 = smov %s533_s16 }
  0xb1   : > { %p11_p5 = scmp.ge.s32.totalorder %s14_s17, 4   ;;  %s636_s16 = smov %s638_s18 }
  0xb3   :  { %13 = sbr.rel (!%p11_p5) target bundleno = 2 (0x2), region = 66 }

// kernel: edg_forward.21
= control target key start
LH: loop header
LB: loop body
LE: loop exit
PB: predicated region body
PF: predicated region fallthrough
CT: control target
= control target key end

     0   :  { %s1003_s9 = smov 0   ;;  %s1005_s10 = smov 0   ;;  %s1489_s0 = inlined_call_operand.vmem [shape: f32[2,8,256], index: 0, kind: input, shape index: {}]   ;;  %s1490_s1 = inlined_call_operand.vmem [shape: f32[256,1024], index: 1, kind: input, shape index: {}]   ;;  %s1491_s2 = inlined_call_operand.vmem [shape: f32[2,8,1024], index: 2, kind: output, shape index: {}]  }
   0x1   :  { %s1007_s11 = smov 0   ;;  %s1009_s12 = smov 0  }
   0x2   :  { %s1011_s13 = smov 0   ;;  %s1013_s14 = smov 0  }
   0x3   :  { %s1015_s15 = smov 0  }
   0x4 LB: > { %s21_s16 = sadd.s32 1, %s978_s13  ;;  %s24_s17 = sadd.s32 1, %s982_s14  ;;  %s986_s15 = sphi %s1015_s15, %s12_s15   ;;  %s982_s14 = sphi %s1013_s14, %s1497_s14   ;;  %s978_s13 = sphi %s1011_s13, %s1496_s13   ;;  %s974_s12 = sphi %s1009_s12, %s1495_s12   ;;  %s970_s11 = sphi %s1007_s11, %s1494_s11   ;;  %s966_s10 = sphi %s1005_s10, %s1493_s10   ;;  %s962_s9 = sphi %s1003_s9, %s1492_s9  }
   0x5   : > { %p22_p0 = scmp.ge.s32.totalorder %s21_s16, 2  ;;  %s57_s18 = sadd.s32 1, %s966_s10 }
   0x6   : > { %p64_p1 = scmp.ne.s32.totalorder %s966_s10, %s962_s9  ;;  %p65_p2 = scmp.eq.s32.totalorder %s986_s15, 0 }
   0x7   : > { %s1499_s16 = smov (%p22_p0, %s21_s16), 0  ;;  %s1501_s17 = smov (!%p22_p0, %s24_s17), %s982_s14 }
   0x8   : > { %s54_s19 = ssub.s32 %s978_s13, %s1499_s16  ;;  %p66_p3 = por %p65_p2, %p64_p1 }
   0x9   : > { %p26_p4 = scmp.ge.s32.totalorder %s1501_s17, 2  ;;  %p55_p5 = scmp.eq.s32.totalorder %s54_s19, 0 }
   0xa   : > { %p861_p6 = scmp.ge.s32.totalorder %s986_s15, 4 }
   0xb   : > { %s1503_s17 = smov (%p26_p4, %s1501_s17), 0 }
   0xc   : > { %s1052_s20 = scalar_select %p55_p5, %s966_s10, %s57_s18  }
   0xd   : > { %118 = sbr.rel (%p861_p6) target bundleno = 150 (0x96), region = 16 }
  0x12   : > { %129 = sbr.rel (!%p66_p3) target bundleno = 150 (0x96), region = 24  ;;  %s131_s21 = sand.u32 (%p66_p3), 1, %s966_s10  }
  0x13   : > { %s874_s22 = sshll.u32 (%p66_p3), %s978_s13, 5  ;;  %s862_s23 = sshll.u32 (%p66_p3), %s131_s21, 10 }
  0x14   : > { %s1060_s26 = scalar_lea.vmem (%p66_p3), %s1490_s1, %s874_s22  ;;  %s1065_s27 = scalar_lea.vmem (%p66_p3), [#allocation2], %s862_s23 }
  0x15   : > { %v149_v0 = vld [vmem:[%s1060_s26] sm:$0xff] (%p66_p3)  ;;  %v151_v1 = vld [vmem:[%s1060_s26 + $0x8] sm:$0xff] (%p66_p3)  ;;  %v153_v2 = vld [vmem:[%s1060_s26 + $0x10] sm:$0xff] (%p66_p3) }
  0x16   : > { %150 = vst [vmem:[%s1065_s27] sm:$0xff] (%p66_p3), %v149_v0  ;;  %v155_v3 = vld [vmem:[%s1060_s26 + $0x18] sm:$0xff] (%p66_p3)  ;;  %v157_v4 = vld [vmem:[%s1060_s26 + $0x40] sm:$0xff] (%p66_p3)  ;;  %v159_v5 = vld [vmem:[%s1060_s26 + $0x48] sm:$0xff] (%p66_p3) }
  0x17   : > { %152 = vst [vmem:[%s1065_s27 + $0x8] sm:$0xff] %v151_v1  ;;  %v161_v6 = vld [vmem:[%s1060_s26 + $0x50] sm:$0xff]  ;;  %v163_v7 = vld [vmem:[%s1060_s26 + $0x58] sm:$0xff]  ;;  %v165_v8 = vld [vmem:[%s1060_s26 + $0x80] sm:$0xff] }
  0x18   : > { %154 = vst [vmem:[%s1065_s27 + $0x10] sm:$0xff] %v153_v2  ;;  %v167_v9 = vld [vmem:[%s1060_s26 + $0x88] sm:$0xff]  ;;  %v169_v10 = vld [vmem:[%s1060_s26 + $0x90] sm:$0xff]  ;;  %v171_v11 = vld [vmem:[%s1060_s26 + $0x98] sm:$0xff] }
  0x19   : > { %156 = vst [vmem:[%s1065_s27 + $0x18] sm:$0xff] %v155_v3  ;;  %v173_v12 = vld [vmem:[%s1060_s26 + $0xc0] sm:$0xff]  ;;  %v175_v13 = vld [vmem:[%s1060_s26 + $0xc8] sm:$0xff]  ;;  %v177_v14 = vld [vmem:[%s1060_s26 + $0xd0] sm:$0xff] }
  0x1a   : > { %158 = vst [vmem:[%s1065_s27 + $0x20] sm:$0xff] %v157_v4  ;;  %v179_v15 = vld [vmem:[%s1060_s26 + $0xd8] sm:$0xff]  ;;  %v181_v16 = vld [vmem:[%s1060_s26 + $0x100] sm:$0xff]  ;;  %v183_v17 = vld [vmem:[%s1060_s26 + $0x108] sm:$0xff] }
  0x1b   : > { %160 = vst [vmem:[%s1065_s27 + $0x28] sm:$0xff] %v159_v5  ;;  %v185_v18 = vld [vmem:[%s1060_s26 + $0x110] sm:$0xff]  ;;  %v187_v19 = vld [vmem:[%s1060_s26 + $0x118] sm:$0xff]  ;;  %v189_v20 = vld [vmem:[%s1060_s26 + $0x140] sm:$0xff] }
  0x1c   : > { %162 = vst [vmem:[%s1065_s27 + $0x30] sm:$0xff] %v161_v6  ;;  %v191_v21 = vld [vmem:[%s1060_s26 + $0x148] sm:$0xff]  ;;  %v193_v22 = vld [vmem:[%s1060_s26 + $0x150] sm:$0xff]  ;;  %v195_v23 = vld [vmem:[%s1060_s26 + $0x158] sm:$0xff] }
  0x1d   : > { %164 = vst [vmem:[%s1065_s27 + $0x38] sm:$0xff] %v163_v7  ;;  %v197_v24 = vld [vmem:[%s1060_s26 + $0x180] sm:$0xff]  ;;  %v199_v25 = vld [vmem:[%s1060_s26 + $0x188] sm:$0xff]  ;;  %v201_v26 = vld [vmem:[%s1060_s26 + $0x190] sm:$0xff] }
  0x1e   : > { %166 = vst [vmem:[%s1065_s27 + $0x40] sm:$0xff] %v165_v8  ;;  %v203_v27 = vld [vmem:[%s1060_s26 + $0x198] sm:$0xff]  ;;  %v205_v28 = vld [vmem:[%s1060_s26 + $0x1c0] sm:$0xff]  ;;  %v207_v29 = vld [vmem:[%s1060_s26 + $0x1c8] sm:$0xff] }
  0x1f   : > { %168 = vst [vmem:[%s1065_s27 + $0x48] sm:$0xff] %v167_v9  ;;  %v209_v30 = vld [vmem:[%s1060_s26 + $0x1d0] sm:$0xff]  ;;  %v211_v31 = vld [vmem:[%s1060_s26 + $0x1d8] sm:$0xff]  ;;  %v213_v32 = vld [vmem:[%s1060_s26 + $0x200] sm:$0xff] }
  0x20   : > { %170 = vst [vmem:[%s1065_s27 + $0x50] sm:$0xff] %v169_v10  ;;  %v215_v33 = vld [vmem:[%s1060_s26 + $0x208] sm:$0xff]  ;;  %v217_v34 = vld [vmem:[%s1060_s26 + $0x210] sm:$0xff]  ;;  %v219_v35 = vld [vmem:[%s1060_s26 + $0x218] sm:$0xff] }
  0x21   : > { %172 = vst [vmem:[%s1065_s27 + $0x58] sm:$0xff] %v171_v11  ;;  %v221_v36 = vld [vmem:[%s1060_s26 + $0x240] sm:$0xff]  ;;  %v223_v37 = vld [vmem:[%s1060_s26 + $0x248] sm:$0xff]  ;;  %v225_v38 = vld [vmem:[%s1060_s26 + $0x250] sm:$0xff] }
  0x22   : > { %174 = vst [vmem:[%s1065_s27 + $0x60] sm:$0xff] %v173_v12  ;;  %v227_v39 = vld [vmem:[%s1060_s26 + $0x258] sm:$0xff]  ;;  %v229_v40 = vld [vmem:[%s1060_s26 + $0x280] sm:$0xff]  ;;  %v231_v41 = vld [vmem:[%s1060_s26 + $0x288] sm:$0xff] }
  0x23   : > { %176 = vst [vmem:[%s1065_s27 + $0x68] sm:$0xff] %v175_v13  ;;  %v233_v42 = vld [vmem:[%s1060_s26 + $0x290] sm:$0xff]  ;;  %v235_v43 = vld [vmem:[%s1060_s26 + $0x298] sm:$0xff]  ;;  %v237_v44 = vld [vmem:[%s1060_s26 + $0x2c0] sm:$0xff] }
  0x24   : > { %178 = vst [vmem:[%s1065_s27 + $0x70] sm:$0xff] %v177_v14  ;;  %v239_v45 = vld [vmem:[%s1060_s26 + $0x2c8] sm:$0xff]  ;;  %v241_v46 = vld [vmem:[%s1060_s26 + $0x2d0] sm:$0xff]  ;;  %v243_v47 = vld [vmem:[%s1060_s26 + $0x2d8] sm:$0xff] }
  0x25   : > { %180 = vst [vmem:[%s1065_s27 + $0x78] sm:$0xff] %v179_v15  ;;  %v245_v48 = vld [vmem:[%s1060_s26 + $0x300] sm:$0xff]  ;;  %v247_v49 = vld [vmem:[%s1060_s26 + $0x308] sm:$0xff]  ;;  %v249_v50 = vld [vmem:[%s1060_s26 + $0x310] sm:$0xff] }
  0x26   : > { %182 = vst [vmem:[%s1065_s27 + $0x80] sm:$0xff] %v181_v16  ;;  %v251_v51 = vld [vmem:[%s1060_s26 + $0x318] sm:$0xff]  ;;  %v253_v52 = vld [vmem:[%s1060_s26 + $0x340] sm:$0xff]  ;;  %v255_v53 = vld [vmem:[%s1060_s26 + $0x348] sm:$0xff] }
  0x27   : > { %184 = vst [vmem:[%s1065_s27 + $0x88] sm:$0xff] %v183_v17  ;;  %v257_v54 = vld [vmem:[%s1060_s26 + $0x350] sm:$0xff]  ;;  %v259_v55 = vld [vmem:[%s1060_s26 + $0x358] sm:$0xff]  ;;  %v261_v56 = vld [vmem:[%s1060_s26 + $0x380] sm:$0xff] }
  0x28   : > { %186 = vst [vmem:[%s1065_s27 + $0x90] sm:$0xff] %v185_v18  ;;  %v263_v57 = vld [vmem:[%s1060_s26 + $0x388] sm:$0xff]  ;;  %v265_v58 = vld [vmem:[%s1060_s26 + $0x390] sm:$0xff]  ;;  %v267_v59 = vld [vmem:[%s1060_s26 + $0x398] sm:$0xff] }
  0x29   : > { %188 = vst [vmem:[%s1065_s27 + $0x98] sm:$0xff] %v187_v19  ;;  %v269_v60 = vld [vmem:[%s1060_s26 + $0x3c0] sm:$0xff]  ;;  %v271_v61 = vld [vmem:[%s1060_s26 + $0x3c8] sm:$0xff]  ;;  %v273_v62 = vld [vmem:[%s1060_s26 + $0x3d0] sm:$0xff] }
  0x2a   : > { %190 = vst [vmem:[%s1065_s27 + $0xa0] sm:$0xff] %v189_v20  ;;  %v275_v63 = vld [vmem:[%s1060_s26 + $0x3d8] sm:$0xff]  ;;  %v277_v0 = vld [vmem:[%s1060_s26 + $0x400] sm:$0xff]  ;;  %v279_v1 = vld [vmem:[%s1060_s26 + $0x408] sm:$0xff] }
  0x2b   : > { %192 = vst [vmem:[%s1065_s27 + $0xa8] sm:$0xff] %v191_v21  ;;  %v281_v2 = vld [vmem:[%s1060_s26 + $0x410] sm:$0xff]  ;;  %v283_v3 = vld [vmem:[%s1060_s26 + $0x418] sm:$0xff]  ;;  %v285_v4 = vld [vmem:[%s1060_s26 + $0x440] sm:$0xff] }
  0x2c   : > { %194 = vst [vmem:[%s1065_s27 + $0xb0] sm:$0xff] %v193_v22  ;;  %v287_v5 = vld [vmem:[%s1060_s26 + $0x448] sm:$0xff]  ;;  %v289_v6 = vld [vmem:[%s1060_s26 + $0x450] sm:$0xff]  ;;  %v291_v7 = vld [vmem:[%s1060_s26 + $0x458] sm:$0xff] }
  0x2d   : > { %196 = vst [vmem:[%s1065_s27 + $0xb8] sm:$0xff] %v195_v23  ;;  %v293_v8 = vld [vmem:[%s1060_s26 + $0x480] sm:$0xff]  ;;  %v295_v9 = vld [vmem:[%s1060_s26 + $0x488] sm:$0xff]  ;;  %v297_v10 = vld [vmem:[%s1060_s26 + $0x490] sm:$0xff] }
  0x2e   : > { %198 = vst [vmem:[%s1065_s27 + $0xc0] sm:$0xff] %v197_v24  ;;  %v299_v11 = vld [vmem:[%s1060_s26 + $0x498] sm:$0xff]  ;;  %v301_v12 = vld [vmem:[%s1060_s26 + $0x4c0] sm:$0xff]  ;;  %v303_v13 = vld [vmem:[%s1060_s26 + $0x4c8] sm:$0xff] }
  0x2f   : > { %200 = vst [vmem:[%s1065_s27 + $0xc8] sm:$0xff] %v199_v25  ;;  %v305_v14 = vld [vmem:[%s1060_s26 + $0x4d0] sm:$0xff]  ;;  %v307_v15 = vld [vmem:[%s1060_s26 + $0x4d8] sm:$0xff]  ;;  %v309_v16 = vld [vmem:[%s1060_s26 + $0x500] sm:$0xff] }
  0x30   : > { %202 = vst [vmem:[%s1065_s27 + $0xd0] sm:$0xff] %v201_v26  ;;  %v311_v17 = vld [vmem:[%s1060_s26 + $0x508] sm:$0xff]  ;;  %v313_v18 = vld [vmem:[%s1060_s26 + $0x510] sm:$0xff]  ;;  %v315_v19 = vld [vmem:[%s1060_s26 + $0x518] sm:$0xff] }
  0x31   : > { %204 = vst [vmem:[%s1065_s27 + $0xd8] sm:$0xff] %v203_v27  ;;  %v317_v20 = vld [vmem:[%s1060_s26 + $0x540] sm:$0xff]  ;;  %v319_v21 = vld [vmem:[%s1060_s26 + $0x548] sm:$0xff]  ;;  %v321_v22 = vld [vmem:[%s1060_s26 + $0x550] sm:$0xff] }
  0x32   : > { %206 = vst [vmem:[%s1065_s27 + $0xe0] sm:$0xff] %v205_v28  ;;  %v323_v23 = vld [vmem:[%s1060_s26 + $0x558] sm:$0xff]  ;;  %v325_v24 = vld [vmem:[%s1060_s26 + $0x580] sm:$0xff]  ;;  %v327_v25 = vld [vmem:[%s1060_s26 + $0x588] sm:$0xff] }
  0x33   : > { %208 = vst [vmem:[%s1065_s27 + $0xe8] sm:$0xff] %v207_v29  ;;  %v329_v26 = vld [vmem:[%s1060_s26 + $0x590] sm:$0xff]  ;;  %v331_v27 = vld [vmem:[%s1060_s26 + $0x598] sm:$0xff]  ;;  %v333_v28 = vld [vmem:[%s1060_s26 + $0x5c0] sm:$0xff] }
  0x34   : > { %210 = vst [vmem:[%s1065_s27 + $0xf0] sm:$0xff] %v209_v30  ;;  %v335_v29 = vld [vmem:[%s1060_s26 + $0x5c8] sm:$0xff]  ;;  %v337_v30 = vld [vmem:[%s1060_s26 + $0x5d0] sm:$0xff] }
  0x35   : > { %212 = vst [vmem:[%s1065_s27 + $0xf8] sm:$0xff] %v211_v31  ;;  %v339_v31 = vld [vmem:[%s1060_s26 + $0x5d8] sm:$0xff] }
  0x36   : > { %214 = vst [vmem:[%s1065_s27 + $0x100] sm:$0xff] %v213_v32  ;;  %v341_v32 = vld [vmem:[%s1060_s26 + $0x600] sm:$0xff] }
  0x37   : > { %216 = vst [vmem:[%s1065_s27 + $0x108] sm:$0xff] %v215_v33  ;;  %v343_v33 = vld [vmem:[%s1060_s26 + $0x608] sm:$0xff] }
  0x38   : > { %218 = vst [vmem:[%s1065_s27 + $0x110] sm:$0xff] %v217_v34  ;;  %v345_v34 = vld [vmem:[%s1060_s26 + $0x610] sm:$0xff] }
  0x39   : > { %220 = vst [vmem:[%s1065_s27 + $0x118] sm:$0xff] %v219_v35  ;;  %v347_v35 = vld [vmem:[%s1060_s26 + $0x618] sm:$0xff] }
  0x3a   : > { %222 = vst [vmem:[%s1065_s27 + $0x120] sm:$0xff] %v221_v36  ;;  %v349_v36 = vld [vmem:[%s1060_s26 + $0x640] sm:$0xff] }
  0x3b   : > { %224 = vst [vmem:[%s1065_s27 + $0x128] sm:$0xff] %v223_v37  ;;  %v351_v37 = vld [vmem:[%s1060_s26 + $0x648] sm:$0xff] }
  0x3c   : > { %226 = vst [vmem:[%s1065_s27 + $0x130] sm:$0xff] %v225_v38  ;;  %v353_v38 = vld [vmem:[%s1060_s26 + $0x650] sm:$0xff] }
  0x3d   : > { %228 = vst [vmem:[%s1065_s27 + $0x138] sm:$0xff] %v227_v39  ;;  %v355_v39 = vld [vmem:[%s1060_s26 + $0x658] sm:$0xff] }
  0x3e   : > { %230 = vst [vmem:[%s1065_s27 + $0x140] sm:$0xff] %v229_v40  ;;  %v357_v40 = vld [vmem:[%s1060_s26 + $0x680] sm:$0xff] }
  0x3f   : > { %232 = vst [vmem:[%s1065_s27 + $0x148] sm:$0xff] %v231_v41  ;;  %v359_v41 = vld [vmem:[%s1060_s26 + $0x688] sm:$0xff] }
  0x40   : > { %234 = vst [vmem:[%s1065_s27 + $0x150] sm:$0xff] %v233_v42  ;;  %v361_v42 = vld [vmem:[%s1060_s26 + $0x690] sm:$0xff] }
  0x41   : > { %236 = vst [vmem:[%s1065_s27 + $0x158] sm:$0xff] %v235_v43  ;;  %v363_v43 = vld [vmem:[%s1060_s26 + $0x698] sm:$0xff] }
  0x42   : > { %238 = vst [vmem:[%s1065_s27 + $0x160] sm:$0xff] %v237_v44  ;;  %v365_v44 = vld [vmem:[%s1060_s26 + $0x6c0] sm:$0xff] }
  0x43   : > { %240 = vst [vmem:[%s1065_s27 + $0x168] sm:$0xff] %v239_v45  ;;  %v367_v45 = vld [vmem:[%s1060_s26 + $0x6c8] sm:$0xff] }
  0x44   : > { %242 = vst [vmem:[%s1065_s27 + $0x170] sm:$0xff] %v241_v46  ;;  %v369_v46 = vld [vmem:[%s1060_s26 + $0x6d0] sm:$0xff] }
  0x45   : > { %244 = vst [vmem:[%s1065_s27 + $0x178] sm:$0xff] %v243_v47  ;;  %v371_v47 = vld [vmem:[%s1060_s26 + $0x6d8] sm:$0xff] }
  0x46   : > { %246 = vst [vmem:[%s1065_s27 + $0x180] sm:$0xff] %v245_v48  ;;  %v373_v48 = vld [vmem:[%s1060_s26 + $0x700] sm:$0xff] }
  0x47   : > { %248 = vst [vmem:[%s1065_s27 + $0x188] sm:$0xff] %v247_v49  ;;  %v375_v49 = vld [vmem:[%s1060_s26 + $0x708] sm:$0xff] }
  0x48   : > { %250 = vst [vmem:[%s1065_s27 + $0x190] sm:$0xff] %v249_v50  ;;  %v377_v50 = vld [vmem:[%s1060_s26 + $0x710] sm:$0xff] }
  0x49   : > { %252 = vst [vmem:[%s1065_s27 + $0x198] sm:$0xff] %v251_v51  ;;  %v379_v51 = vld [vmem:[%s1060_s26 + $0x718] sm:$0xff] }
  0x4a   : > { %254 = vst [vmem:[%s1065_s27 + $0x1a0] sm:$0xff] %v253_v52  ;;  %v381_v52 = vld [vmem:[%s1060_s26 + $0x740] sm:$0xff] }
  0x4b   : > { %256 = vst [vmem:[%s1065_s27 + $0x1a8] sm:$0xff] %v255_v53  ;;  %v383_v53 = vld [vmem:[%s1060_s26 + $0x748] sm:$0xff] }
  0x4c   : > { %258 = vst [vmem:[%s1065_s27 + $0x1b0] sm:$0xff] %v257_v54  ;;  %v385_v54 = vld [vmem:[%s1060_s26 + $0x750] sm:$0xff] }
  0x4d   : > { %260 = vst [vmem:[%s1065_s27 + $0x1b8] sm:$0xff] %v259_v55  ;;  %v387_v55 = vld [vmem:[%s1060_s26 + $0x758] sm:$0xff] }
  0x4e   : > { %262 = vst [vmem:[%s1065_s27 + $0x1c0] sm:$0xff] %v261_v56  ;;  %v389_v56 = vld [vmem:[%s1060_s26 + $0x780] sm:$0xff] }
  0x4f   : > { %264 = vst [vmem:[%s1065_s27 + $0x1c8] sm:$0xff] %v263_v57  ;;  %v391_v57 = vld [vmem:[%s1060_s26 + $0x788] sm:$0xff] }
  0x50   : > { %266 = vst [vmem:[%s1065_s27 + $0x1d0] sm:$0xff] %v265_v58  ;;  %v393_v58 = vld [vmem:[%s1060_s26 + $0x790] sm:$0xff] }
  0x51   : > { %268 = vst [vmem:[%s1065_s27 + $0x1d8] sm:$0xff] %v267_v59  ;;  %v395_v59 = vld [vmem:[%s1060_s26 + $0x798] sm:$0xff] }
  0x52   : > { %270 = vst [vmem:[%s1065_s27 + $0x1e0] sm:$0xff] %v269_v60  ;;  %v397_v60 = vld [vmem:[%s1060_s26 + $0x7c0] sm:$0xff] }
  0x53   : > { %272 = vst [vmem:[%s1065_s27 + $0x1e8] sm:$0xff] %v271_v61  ;;  %v399_v61 = vld [vmem:[%s1060_s26 + $0x7c8] sm:$0xff] }
  0x54   : > { %274 = vst [vmem:[%s1065_s27 + $0x1f0] sm:$0xff] %v273_v62  ;;  %v401_v62 = vld [vmem:[%s1060_s26 + $0x7d0] sm:$0xff] }
  0x55   : > { %276 = vst [vmem:[%s1065_s27 + $0x1f8] sm:$0xff] %v275_v63  ;;  %v403_v63 = vld [vmem:[%s1060_s26 + $0x7d8] sm:$0xff] }
  0x56   : > { %278 = vst [vmem:[%s1065_s27 + $0x200] sm:$0xff] %v277_v0 }
  0x57   : > { %280 = vst [vmem:[%s1065_s27 + $0x208] sm:$0xff] %v279_v1 }
  0x58   : > { %282 = vst [vmem:[%s1065_s27 + $0x210] sm:$0xff] %v281_v2 }
  0x59   : > { %284 = vst [vmem:[%s1065_s27 + $0x218] sm:$0xff] %v283_v3 }
  0x5a   : > { %286 = vst [vmem:[%s1065_s27 + $0x220] sm:$0xff] %v285_v4 }
  0x5b   : > { %288 = vst [vmem:[%s1065_s27 + $0x228] sm:$0xff] %v287_v5 }
  0x5c   : > { %290 = vst [vmem:[%s1065_s27 + $0x230] sm:$0xff] %v289_v6 }
  0x5d   : > { %292 = vst [vmem:[%s1065_s27 + $0x238] sm:$0xff] %v291_v7 }
  0x5e   : > { %294 = vst [vmem:[%s1065_s27 + $0x240] sm:$0xff] %v293_v8 }
  0x5f   : > { %296 = vst [vmem:[%s1065_s27 + $0x248] sm:$0xff] %v295_v9 }
  0x60   : > { %298 = vst [vmem:[%s1065_s27 + $0x250] sm:$0xff] %v297_v10 }
  0x61   : > { %300 = vst [vmem:[%s1065_s27 + $0x258] sm:$0xff] %v299_v11 }
  0x62   : > { %302 = vst [vmem:[%s1065_s27 + $0x260] sm:$0xff] %v301_v12 }
  0x63   : > { %304 = vst [vmem:[%s1065_s27 + $0x268] sm:$0xff] %v303_v13 }
  0x64   : > { %306 = vst [vmem:[%s1065_s27 + $0x270] sm:$0xff] %v305_v14 }
  0x65   : > { %308 = vst [vmem:[%s1065_s27 + $0x278] sm:$0xff] %v307_v15 }
  0x66   : > { %310 = vst [vmem:[%s1065_s27 + $0x280] sm:$0xff] %v309_v16 }
  0x67   : > { %312 = vst [vmem:[%s1065_s27 + $0x288] sm:$0xff] %v311_v17 }
  0x68   : > { %314 = vst [vmem:[%s1065_s27 + $0x290] sm:$0xff] %v313_v18 }
  0x69   : > { %316 = vst [vmem:[%s1065_s27 + $0x298] sm:$0xff] %v315_v19 }
  0x6a   : > { %318 = vst [vmem:[%s1065_s27 + $0x2a0] sm:$0xff] %v317_v20 }
  0x6b   : > { %320 = vst [vmem:[%s1065_s27 + $0x2a8] sm:$0xff] %v319_v21 }
  0x6c   : > { %322 = vst [vmem:[%s1065_s27 + $0x2b0] sm:$0xff] %v321_v22 }
  0x6d   : > { %324 = vst [vmem:[%s1065_s27 + $0x2b8] sm:$0xff] %v323_v23 }
  0x6e   : > { %326 = vst [vmem:[%s1065_s27 + $0x2c0] sm:$0xff] %v325_v24 }
  0x6f   : > { %328 = vst [vmem:[%s1065_s27 + $0x2c8] sm:$0xff] %v327_v25 }
  0x70   : > { %330 = vst [vmem:[%s1065_s27 + $0x2d0] sm:$0xff] %v329_v26 }
  0x71   : > { %332 = vst [vmem:[%s1065_s27 + $0x2d8] sm:$0xff] %v331_v27 }
  0x72   : > { %334 = vst [vmem:[%s1065_s27 + $0x2e0] sm:$0xff] %v333_v28 }
  0x73   : > { %336 = vst [vmem:[%s1065_s27 + $0x2e8] sm:$0xff] %v335_v29 }
  0x74   : > { %338 = vst [vmem:[%s1065_s27 + $0x2f0] sm:$0xff] %v337_v30 }
  0x75   : > { %340 = vst [vmem:[%s1065_s27 + $0x2f8] sm:$0xff] %v339_v31 }
  0x76   : > { %342 = vst [vmem:[%s1065_s27 + $0x300] sm:$0xff] %v341_v32 }
  0x77   : > { %344 = vst [vmem:[%s1065_s27 + $0x308] sm:$0xff] %v343_v33 }
  0x78   : > { %346 = vst [vmem:[%s1065_s27 + $0x310] sm:$0xff] %v345_v34 }
  0x79   : > { %348 = vst [vmem:[%s1065_s27 + $0x318] sm:$0xff] %v347_v35 }
  0x7a   : > { %350 = vst [vmem:[%s1065_s27 + $0x320] sm:$0xff] %v349_v36 }
  0x7b   : > { %352 = vst [vmem:[%s1065_s27 + $0x328] sm:$0xff] %v351_v37 }
  0x7c   : > { %354 = vst [vmem:[%s1065_s27 + $0x330] sm:$0xff] %v353_v38 }
  0x7d   : > { %356 = vst [vmem:[%s1065_s27 + $0x338] sm:$0xff] %v355_v39 }
  0x7e   : > { %358 = vst [vmem:[%s1065_s27 + $0x340] sm:$0xff] %v357_v40 }
  0x7f   : > { %360 = vst [vmem:[%s1065_s27 + $0x348] sm:$0xff] %v359_v41 }
  0x80   : > { %362 = vst [vmem:[%s1065_s27 + $0x350] sm:$0xff] %v361_v42 }
  0x81   : > { %364 = vst [vmem:[%s1065_s27 + $0x358] sm:$0xff] %v363_v43 }
  0x82   : > { %366 = vst [vmem:[%s1065_s27 + $0x360] sm:$0xff] %v365_v44 }
  0x83   : > { %368 = vst [vmem:[%s1065_s27 + $0x368] sm:$0xff] %v367_v45 }
  0x84   : > { %370 = vst [vmem:[%s1065_s27 + $0x370] sm:$0xff] %v369_v46 }
  0x85   : > { %372 = vst [vmem:[%s1065_s27 + $0x378] sm:$0xff] %v371_v47 }
  0x86   : > { %374 = vst [vmem:[%s1065_s27 + $0x380] sm:$0xff] %v373_v48 }
  0x87   : > { %376 = vst [vmem:[%s1065_s27 + $0x388] sm:$0xff] %v375_v49 }
  0x88   : > { %378 = vst [vmem:[%s1065_s27 + $0x390] sm:$0xff] %v377_v50 }
  0x89   : > { %380 = vst [vmem:[%s1065_s27 + $0x398] sm:$0xff] %v379_v51 }
  0x8a   : > { %382 = vst [vmem:[%s1065_s27 + $0x3a0] sm:$0xff] %v381_v52 }
  0x8b   : > { %384 = vst [vmem:[%s1065_s27 + $0x3a8] sm:$0xff] %v383_v53 }
  0x8c   : > { %386 = vst [vmem:[%s1065_s27 + $0x3b0] sm:$0xff] %v385_v54 }
  0x8d   : > { %388 = vst [vmem:[%s1065_s27 + $0x3b8] sm:$0xff] %v387_v55 }
  0x8e   : > { %390 = vst [vmem:[%s1065_s27 + $0x3c0] sm:$0xff] %v389_v56 }
  0x8f   : > { %392 = vst [vmem:[%s1065_s27 + $0x3c8] sm:$0xff] %v391_v57 }
  0x90   : > { %394 = vst [vmem:[%s1065_s27 + $0x3d0] sm:$0xff] %v393_v58 }
  0x91   : > { %396 = vst [vmem:[%s1065_s27 + $0x3d8] sm:$0xff] %v395_v59 }
  0x92   : > { %398 = vst [vmem:[%s1065_s27 + $0x3e0] sm:$0xff] %v397_v60 }
  0x93   : > { %400 = vst [vmem:[%s1065_s27 + $0x3e8] sm:$0xff] %v399_v61 }
  0x94   : > { %402 = vst [vmem:[%s1065_s27 + $0x3f0] sm:$0xff] %v401_v62 }
  0x95   : > { %404 = vst [vmem:[%s1065_s27 + $0x3f8] sm:$0xff] %v403_v63 }
  0x96 PF: > { %p865_p7 = scmp.ge.s32.totalorder %s986_s15, 1  ;;  %p409_p8 = scmp.lt.s32.totalorder %s986_s15, 5 }
  0x98   : > { %p410_p9 = pnand %p865_p7, %p409_p8 }
  0x99   : > { %s416_s28 = sand.u32 (!%p410_p9), 1, %s962_s9   ;;  %p446_p10 = scmp.lt.s32.totalorder (!%p410_p9), %s974_s12, 1 }
  0x9a   : > { %413 = sbr.rel (%p410_p9) target bundleno = 359 (0x167), region = 47  ;;  %s866_s29 = sshll.u32 (!%p410_p9), %s416_s28, 10 }
  0x9b   : > { %s1323_s30 = scalar_lea.vmem (!%p410_p9), [#allocation2], %s866_s29  ;;  %s869_s7 = sshll.u32 (!%p410_p9), %s970_s11, 2 }
  0x9c   : > { %p455_p11 = scmp.lt.s32.totalorder (!%p410_p9), %s869_s7, 7 }
  0x9f   : > { %v525_v0 = vld [vmem:[%s1323_s30 + $0x1e8] sm:$0xff]  ;;  %v524_v6 = vld [vmem:[%s1323_s30 + $0x1e0] sm:$0xff]  ;;  %v527_v60 = vld [vmem:[%s1323_s30 + $0x1f8] sm:$0xff]  ;;  %s1505_s12 = smov (!%p446_p10, %s974_s12), 1  ;;  %s1507_s7 = smov (!%p455_p11, %s869_s7), 7 }
  0xa0   : > { %v589_v1 = vld [vmem:[%s1323_s30 + $0x3e8] sm:$0xff]  ;;  %632 = vmatpush.msra.mxu2 %v525_v0  ;;  %v588_v7 = vld [vmem:[%s1323_s30 + $0x3e0] sm:$0xff]  ;;  %592 = vmatpush.msra.mxu0 %v524_v6  ;;  %v591_v61 = vld [vmem:[%s1323_s30 + $0x3f8] sm:$0xff]  ;;  %s875_s3 = sshll.u32 %s1505_s12, 4  ;;  %s870_s8 = sshll.u32 %s1505_s12, 3 }
  0xa1   : > { %v521_v2 = vld [vmem:[%s1323_s30 + $0x1c8] sm:$0xff]  ;;  %652 = vmatpush.msra.mxu3 %v589_v1  ;;  %v520_v8 = vld [vmem:[%s1323_s30 + $0x1c0] sm:$0xff]  ;;  %612 = vmatpush.msra.mxu1 %v588_v7  ;;  %v523_v0 = vld [vmem:[%s1323_s30 + $0x1d8] sm:$0xff]  ;;  %s450_s6 = scalar_lea.vmem %s1489_s0, %s875_s3  ;;  %s458_s9 = sadd.s32 %s870_s8, %s1507_s7 }
  0xa2   : > { %v585_v3 = vld [vmem:[%s1323_s30 + $0x3c8] sm:$0xff]  ;;  %633 = vmatpush.msra.mxu2 %v521_v2  ;;  %v584_v9 = vld [vmem:[%s1323_s30 + $0x3c0] sm:$0xff]  ;;  %593 = vmatpush.msra.mxu0 %v520_v8  ;;  %v587_v1 = vld [vmem:[%s1323_s30 + $0x3d8] sm:$0xff]  ;;  %s871_s18 = sshll.u32 %s458_s9, 3 }
  0xa3   : > { %v517_v4 = vld [vmem:[%s1323_s30 + $0x1a8] sm:$0xff]  ;;  %653 = vmatpush.msra.mxu3 %v585_v3  ;;  %v516_v12 = vld [vmem:[%s1323_s30 + $0x1a0] sm:$0xff]  ;;  %613 = vmatpush.msra.mxu1 %v584_v9  ;;  %v526_v6 = vld [vmem:[%s1323_s30 + $0x1f0] sm:$0xff]  ;;  %s460_s22 = scalar_lea.vmem %s1491_s2, %s871_s18 }
  0xa4   : > { %v581_v5 = vld [vmem:[%s1323_s30 + $0x3a8] sm:$0xff]  ;;  %634 = vmatpush.msra.mxu2 %v517_v4  ;;  %v580_v13 = vld [vmem:[%s1323_s30 + $0x3a0] sm:$0xff]  ;;  %594 = vmatpush.msra.mxu0 %v516_v12  ;;  %v519_v4 = vld [vmem:[%s1323_s30 + $0x1b8] sm:$0xff] }
  0xa5   : > { %v513_v10 = vld [vmem:[%s1323_s30 + $0x188] sm:$0xff]  ;;  %654 = vmatpush.msra.mxu3 %v581_v5  ;;  %v512_v16 = vld [vmem:[%s1323_s30 + $0x180] sm:$0xff]  ;;  %614 = vmatpush.msra.mxu1 %v580_v13  ;;  %v583_v5 = vld [vmem:[%s1323_s30 + $0x3b8] sm:$0xff] }
  0xa6   : > { %v577_v11 = vld [vmem:[%s1323_s30 + $0x388] sm:$0xff]  ;;  %635 = vmatpush.msra.mxu2 %v513_v10  ;;  %v576_v17 = vld [vmem:[%s1323_s30 + $0x380] sm:$0xff]  ;;  %595 = vmatpush.msra.mxu0 %v512_v16  ;;  %v590_v7 = vld [vmem:[%s1323_s30 + $0x3f0] sm:$0xff] }
  0xa7   : > { %v509_v14 = vld [vmem:[%s1323_s30 + $0x168] sm:$0xff]  ;;  %655 = vmatpush.msra.mxu3 %v577_v11  ;;  %v508_v20 = vld [vmem:[%s1323_s30 + $0x160] sm:$0xff]  ;;  %615 = vmatpush.msra.mxu1 %v576_v17  ;;  %v515_v8 = vld [vmem:[%s1323_s30 + $0x198] sm:$0xff] }
  0xa8   : > { %v573_v15 = vld [vmem:[%s1323_s30 + $0x368] sm:$0xff]  ;;  %636 = vmatpush.msra.mxu2 %v509_v14  ;;  %v572_v21 = vld [vmem:[%s1323_s30 + $0x360] sm:$0xff]  ;;  %596 = vmatpush.msra.mxu0 %v508_v20  ;;  %v579_v9 = vld [vmem:[%s1323_s30 + $0x398] sm:$0xff] }
  0xa9   : > { %v505_v18 = vld [vmem:[%s1323_s30 + $0x148] sm:$0xff]  ;;  %656 = vmatpush.msra.mxu3 %v573_v15  ;;  %v504_v24 = vld [vmem:[%s1323_s30 + $0x140] sm:$0xff]  ;;  %616 = vmatpush.msra.mxu1 %v572_v21  ;;  %v522_v10 = vld [vmem:[%s1323_s30 + $0x1d0] sm:$0xff] }
  0xaa   : > { %v569_v19 = vld [vmem:[%s1323_s30 + $0x348] sm:$0xff]  ;;  %637 = vmatpush.msra.mxu2 %v505_v18  ;;  %v568_v25 = vld [vmem:[%s1323_s30 + $0x340] sm:$0xff]  ;;  %597 = vmatpush.msra.mxu0 %v504_v24  ;;  %v586_v11 = vld [vmem:[%s1323_s30 + $0x3d0] sm:$0xff] }
  0xab   : > { %v501_v22 = vld [vmem:[%s1323_s30 + $0x128] sm:$0xff]  ;;  %657 = vmatpush.msra.mxu3 %v569_v19  ;;  %v500_v28 = vld [vmem:[%s1323_s30 + $0x120] sm:$0xff]  ;;  %617 = vmatpush.msra.mxu1 %v568_v25  ;;  %v511_v12 = vld [vmem:[%s1323_s30 + $0x178] sm:$0xff] }
  0xac   : > { %v565_v23 = vld [vmem:[%s1323_s30 + $0x328] sm:$0xff]  ;;  %638 = vmatpush.msra.mxu2 %v501_v22  ;;  %v564_v29 = vld [vmem:[%s1323_s30 + $0x320] sm:$0xff]  ;;  %598 = vmatpush.msra.mxu0 %v500_v28  ;;  %v575_v13 = vld [vmem:[%s1323_s30 + $0x378] sm:$0xff] }
  0xad   : > { %v497_v26 = vld [vmem:[%s1323_s30 + $0x108] sm:$0xff]  ;;  %658 = vmatpush.msra.mxu3 %v565_v23  ;;  %v496_v32 = vld [vmem:[%s1323_s30 + $0x100] sm:$0xff]  ;;  %618 = vmatpush.msra.mxu1 %v564_v29  ;;  %v518_v14 = vld [vmem:[%s1323_s30 + $0x1b0] sm:$0xff] }
  0xae   : > { %v561_v27 = vld [vmem:[%s1323_s30 + $0x308] sm:$0xff]  ;;  %639 = vmatpush.msra.mxu2 %v497_v26  ;;  %v560_v33 = vld [vmem:[%s1323_s30 + $0x300] sm:$0xff]  ;;  %599 = vmatpush.msra.mxu0 %v496_v32  ;;  %v582_v15 = vld [vmem:[%s1323_s30 + $0x3b0] sm:$0xff] }
  0xaf   : > { %v493_v30 = vld [vmem:[%s1323_s30 + $0xe8] sm:$0xff]  ;;  %659 = vmatpush.msra.mxu3 %v561_v27  ;;  %v492_v36 = vld [vmem:[%s1323_s30 + $0xe0] sm:$0xff]  ;;  %619 = vmatpush.msra.mxu1 %v560_v33  ;;  %v507_v16 = vld [vmem:[%s1323_s30 + $0x158] sm:$0xff] }
  0xb0   : > { %v557_v31 = vld [vmem:[%s1323_s30 + $0x2e8] sm:$0xff]  ;;  %640 = vmatpush.msra.mxu2 %v493_v30  ;;  %v556_v37 = vld [vmem:[%s1323_s30 + $0x2e0] sm:$0xff]  ;;  %600 = vmatpush.msra.mxu0 %v492_v36  ;;  %v571_v17 = vld [vmem:[%s1323_s30 + $0x358] sm:$0xff] }
  0xb1   : > { %v489_v34 = vld [vmem:[%s1323_s30 + $0xc8] sm:$0xff]  ;;  %660 = vmatpush.msra.mxu3 %v557_v31  ;;  %v488_v40 = vld [vmem:[%s1323_s30 + $0xc0] sm:$0xff]  ;;  %620 = vmatpush.msra.mxu1 %v556_v37  ;;  %v514_v18 = vld [vmem:[%s1323_s30 + $0x190] sm:$0xff] }
  0xb2   : > { %v553_v35 = vld [vmem:[%s1323_s30 + $0x2c8] sm:$0xff]  ;;  %641 = vmatpush.msra.mxu2 %v489_v34  ;;  %v552_v41 = vld [vmem:[%s1323_s30 + $0x2c0] sm:$0xff]  ;;  %601 = vmatpush.msra.mxu0 %v488_v40  ;;  %v578_v19 = vld [vmem:[%s1323_s30 + $0x390] sm:$0xff] }
  0xb3   : > { %v485_v38 = vld [vmem:[%s1323_s30 + $0xa8] sm:$0xff]  ;;  %661 = vmatpush.msra.mxu3 %v553_v35  ;;  %v484_v44 = vld [vmem:[%s1323_s30 + $0xa0] sm:$0xff]  ;;  %621 = vmatpush.msra.mxu1 %v552_v41  ;;  %v503_v20 = vld [vmem:[%s1323_s30 + $0x138] sm:$0xff] }
  0xb4   : > { %v549_v39 = vld [vmem:[%s1323_s30 + $0x2a8] sm:$0xff]  ;;  %642 = vmatpush.msra.mxu2 %v485_v38  ;;  %v548_v45 = vld [vmem:[%s1323_s30 + $0x2a0] sm:$0xff]  ;;  %602 = vmatpush.msra.mxu0 %v484_v44  ;;  %v567_v21 = vld [vmem:[%s1323_s30 + $0x338] sm:$0xff] }
  0xb5   : > { %v481_v42 = vld [vmem:[%s1323_s30 + $0x88] sm:$0xff]  ;;  %662 = vmatpush.msra.mxu3 %v549_v39  ;;  %v480_v48 = vld [vmem:[%s1323_s30 + $0x80] sm:$0xff]  ;;  %622 = vmatpush.msra.mxu1 %v548_v45  ;;  %v510_v22 = vld [vmem:[%s1323_s30 + $0x170] sm:$0xff] }
  0xb6   : > { %v545_v43 = vld [vmem:[%s1323_s30 + $0x288] sm:$0xff]  ;;  %643 = vmatpush.msra.mxu2 %v481_v42  ;;  %v544_v49 = vld [vmem:[%s1323_s30 + $0x280] sm:$0xff]  ;;  %603 = vmatpush.msra.mxu0 %v480_v48  ;;  %v574_v23 = vld [vmem:[%s1323_s30 + $0x370] sm:$0xff] }
  0xb7   : > { %v477_v46 = vld [vmem:[%s1323_s30 + $0x68] sm:$0xff]  ;;  %663 = vmatpush.msra.mxu3 %v545_v43  ;;  %v476_v52 = vld [vmem:[%s1323_s30 + $0x60] sm:$0xff]  ;;  %623 = vmatpush.msra.mxu1 %v544_v49  ;;  %v499_v24 = vld [vmem:[%s1323_s30 + $0x118] sm:$0xff] }
  0xb8   : > { %v541_v47 = vld [vmem:[%s1323_s30 + $0x268] sm:$0xff]  ;;  %644 = vmatpush.msra.mxu2 %v477_v46  ;;  %v540_v53 = vld [vmem:[%s1323_s30 + $0x260] sm:$0xff]  ;;  %604 = vmatpush.msra.mxu0 %v476_v52  ;;  %v563_v25 = vld [vmem:[%s1323_s30 + $0x318] sm:$0xff] }
  0xb9   : > { %v473_v50 = vld [vmem:[%s1323_s30 + $0x48] sm:$0xff]  ;;  %664 = vmatpush.msra.mxu3 %v541_v47  ;;  %v472_v56 = vld [vmem:[%s1323_s30 + $0x40] sm:$0xff]  ;;  %624 = vmatpush.msra.mxu1 %v540_v53  ;;  %v506_v26 = vld [vmem:[%s1323_s30 + $0x150] sm:$0xff] }
  0xba   : > { %v537_v51 = vld [vmem:[%s1323_s30 + $0x248] sm:$0xff]  ;;  %645 = vmatpush.msra.mxu2 %v473_v50  ;;  %v536_v57 = vld [vmem:[%s1323_s30 + $0x240] sm:$0xff]  ;;  %605 = vmatpush.msra.mxu0 %v472_v56  ;;  %v570_v27 = vld [vmem:[%s1323_s30 + $0x350] sm:$0xff] }
  0xbb   : > { %v469_v54 = vld [vmem:[%s1323_s30 + $0x28] sm:$0xff]  ;;  %665 = vmatpush.msra.mxu3 %v537_v51  ;;  %625 = vmatpush.msra.mxu1 %v536_v57  ;;  %v468_v62 = vld [vmem:[%s1323_s30 + $0x20] sm:$0xff]  ;;  %v495_v28 = vld [vmem:[%s1323_s30 + $0xf8] sm:$0xff] }
  0xbc   : > { %v533_v55 = vld [vmem:[%s1323_s30 + $0x228] sm:$0xff]  ;;  %646 = vmatpush.msra.mxu2 %v469_v54  ;;  %v532_v63 = vld [vmem:[%s1323_s30 + $0x220] sm:$0xff]  ;;  %606 = vmatpush.msra.mxu0 %v468_v62  ;;  %v559_v29 = vld [vmem:[%s1323_s30 + $0x2f8] sm:$0xff] }
  0xbd   : > { %v465_v58 = vld [vmem:[%s1323_s30 + $0x8] sm:$0xff]  ;;  %666 = vmatpush.msra.mxu3 %v533_v55  ;;  %v464_v2 = vld [vmem:[%s1323_s30] sm:$0xff]  ;;  %626 = vmatpush.msra.mxu1 %v532_v63  ;;  %v502_v30 = vld [vmem:[%s1323_s30 + $0x130] sm:$0xff] }
  0xbe   : > { %v529_v59 = vld [vmem:[%s1323_s30 + $0x208] sm:$0xff]  ;;  %647 = vmatpush.msra.mxu2 %v465_v58  ;;  %v528_v3 = vld [vmem:[%s1323_s30 + $0x200] sm:$0xff]  ;;  %607 = vmatpush.msra.mxu0 %v464_v2  ;;  %v566_v31 = vld [vmem:[%s1323_s30 + $0x330] sm:$0xff] }
  0xbf   : > { %667 = vmatpush.msra.mxu3 %v529_v59  ;;  %627 = vmatpush.msra.mxu1 %v528_v3  ;;  %v491_v32 = vld [vmem:[%s1323_s30 + $0xd8] sm:$0xff]  ;;  %v498_v34 = vld [vmem:[%s1323_s30 + $0x110] sm:$0xff]  ;;  %v462_v42 = vld [vmem:[%s450_s6] sm:$0xff] }
  0xc0   : > { %712 = vmatpush.msrb.mxu2 %v527_v60  ;;  %672 = vmatpush.msrb.mxu0 %v526_v6  ;;  %v555_v33 = vld [vmem:[%s1323_s30 + $0x2d8] sm:$0xff]  ;;  %v562_v35 = vld [vmem:[%s1323_s30 + $0x310] sm:$0xff]  ;;  %v463_v43 = vld [vmem:[%s450_s6 + $0x8] sm:$0xff] }
  0xc1   : > { %732 = vmatpush.msrb.mxu3 %v591_v61  ;;  %692 = vmatpush.msrb.mxu1 %v590_v7  ;;  %v487_v36 = vld [vmem:[%s1323_s30 + $0xb8] sm:$0xff]  ;;  %v494_v38 = vld [vmem:[%s1323_s30 + $0xf0] sm:$0xff] }
  0xc2   : > { %713 = vmatpush.msrb.mxu2 %v523_v0  ;;  %673 = vmatpush.msrb.mxu0 %v522_v10  ;;  %v551_v37 = vld [vmem:[%s1323_s30 + $0x2b8] sm:$0xff]  ;;  %v558_v39 = vld [vmem:[%s1323_s30 + $0x2f0] sm:$0xff] }
  0xc3   : > { %733 = vmatpush.msrb.mxu3 %v587_v1  ;;  %693 = vmatpush.msrb.mxu1 %v586_v11  ;;  %v483_v40 = vld [vmem:[%s1323_s30 + $0x98] sm:$0xff]  ;;  %v490_v44 = vld [vmem:[%s1323_s30 + $0xd0] sm:$0xff] }
  0xc4   : > { %714 = vmatpush.msrb.mxu2 %v519_v4  ;;  %674 = vmatpush.msrb.mxu0 %v518_v14  ;;  %v547_v41 = vld [vmem:[%s1323_s30 + $0x298] sm:$0xff]  ;;  %v554_v45 = vld [vmem:[%s1323_s30 + $0x2d0] sm:$0xff] }
  0xc5   : > { %734 = vmatpush.msrb.mxu3 %v583_v5  ;;  %694 = vmatpush.msrb.mxu1 %v582_v15  ;;  %v479_v46 = vld [vmem:[%s1323_s30 + $0x78] sm:$0xff]  ;;  %v486_v48 = vld [vmem:[%s1323_s30 + $0xb0] sm:$0xff] }
  0xc6   : > { %715 = vmatpush.msrb.mxu2 %v515_v8  ;;  %675 = vmatpush.msrb.mxu0 %v514_v18  ;;  %v543_v47 = vld [vmem:[%s1323_s30 + $0x278] sm:$0xff]  ;;  %v550_v49 = vld [vmem:[%s1323_s30 + $0x2b0] sm:$0xff] }
  0xc7   : > { %735 = vmatpush.msrb.mxu3 %v579_v9  ;;  %695 = vmatpush.msrb.mxu1 %v578_v19  ;;  %v475_v50 = vld [vmem:[%s1323_s30 + $0x58] sm:$0xff]  ;;  %v482_v52 = vld [vmem:[%s1323_s30 + $0x90] sm:$0xff] }
  0xc8   : > { %716 = vmatpush.msrb.mxu2 %v511_v12  ;;  %676 = vmatpush.msrb.mxu0 %v510_v22  ;;  %v539_v51 = vld [vmem:[%s1323_s30 + $0x258] sm:$0xff]  ;;  %v546_v53 = vld [vmem:[%s1323_s30 + $0x290] sm:$0xff] }
  0xc9   : > { %736 = vmatpush.msrb.mxu3 %v575_v13  ;;  %696 = vmatpush.msrb.mxu1 %v574_v23  ;;  %v471_v54 = vld [vmem:[%s1323_s30 + $0x38] sm:$0xff]  ;;  %v478_v56 = vld [vmem:[%s1323_s30 + $0x70] sm:$0xff] }
  0xca   : > { %717 = vmatpush.msrb.mxu2 %v507_v16  ;;  %677 = vmatpush.msrb.mxu0 %v506_v26  ;;  %v535_v55 = vld [vmem:[%s1323_s30 + $0x238] sm:$0xff]  ;;  %v542_v57 = vld [vmem:[%s1323_s30 + $0x270] sm:$0xff] }
  0xcb   : > { %737 = vmatpush.msrb.mxu3 %v571_v17  ;;  %697 = vmatpush.msrb.mxu1 %v570_v27  ;;  %v467_v58 = vld [vmem:[%s1323_s30 + $0x18] sm:$0xff]  ;;  %v474_v60 = vld [vmem:[%s1323_s30 + $0x50] sm:$0xff] }
  0xcc   : > { %718 = vmatpush.msrb.mxu2 %v503_v20  ;;  %678 = vmatpush.msrb.mxu0 %v502_v30  ;;  %v531_v59 = vld [vmem:[%s1323_s30 + $0x218] sm:$0xff]  ;;  %v538_v61 = vld [vmem:[%s1323_s30 + $0x250] sm:$0xff] }
  0xcd   : > { %738 = vmatpush.msrb.mxu3 %v567_v21  ;;  %698 = vmatpush.msrb.mxu1 %v566_v31  ;;  %v470_v62 = vld [vmem:[%s1323_s30 + $0x30] sm:$0xff] }
  0xce   : > { %719 = vmatpush.msrb.mxu2 %v499_v24  ;;  %679 = vmatpush.msrb.mxu0 %v498_v34  ;;  %v534_v63 = vld [vmem:[%s1323_s30 + $0x230] sm:$0xff] }
  0xcf   : > { %739 = vmatpush.msrb.mxu3 %v563_v25  ;;  %699 = vmatpush.msrb.mxu1 %v562_v35  ;;  %v466_v0 = vld [vmem:[%s1323_s30 + $0x10] sm:$0xff] }
  0xd0   : > { %720 = vmatpush.msrb.mxu2 %v495_v28  ;;  %680 = vmatpush.msrb.mxu0 %v494_v38  ;;  %v530_v1 = vld [vmem:[%s1323_s30 + $0x210] sm:$0xff] }
  0xd1   : > { %740 = vmatpush.msrb.mxu3 %v559_v29  ;;  %700 = vmatpush.msrb.mxu1 %v558_v39 }
  0xd2   : > { %721 = vmatpush.msrb.mxu2 %v491_v32  ;;  %668 = vmatmul.f32.vlgmr.msra.gmra.mxu3 %v463_v43 }
  0xd3   : > { %741 = vmatpush.msrb.mxu3 %v555_v33  ;;  %648 = vmatmul.f32.vlgmr.msra.gmra.mxu2 %v462_v42 }
  0xd4   : > { %722 = vmatpush.msrb.mxu2 %v487_v36  ;;  %681 = vmatpush.msrb.mxu0 %v490_v44 }
  0xd5   : > { %742 = vmatpush.msrb.mxu3 %v551_v37  ;;  %701 = vmatpush.msrb.mxu1 %v554_v45 }
  0xd6   : > { %723 = vmatpush.msrb.mxu2 %v483_v40  ;;  %682 = vmatpush.msrb.mxu0 %v486_v48 }
  0xd7   : > { %743 = vmatpush.msrb.mxu3 %v547_v41  ;;  %702 = vmatpush.msrb.mxu1 %v550_v49 }
  0xd8   : > { %724 = vmatpush.msrb.mxu2 %v479_v46  ;;  %683 = vmatpush.msrb.mxu0 %v482_v52 }
  0xd9   : > { %744 = vmatpush.msrb.mxu3 %v543_v47  ;;  %703 = vmatpush.msrb.mxu1 %v546_v53 }
  0xda   : > { %725 = vmatpush.msrb.mxu2 %v475_v50  ;;  %608 = vmatmul.f32.vlgmr.msra.gmra.mxu0 %v462_v42 }
  0xdb   : > { %745 = vmatpush.msrb.mxu3 %v539_v51  ;;  %628 = vmatmul.f32.vlgmr.msra.gmra.mxu1 %v463_v43 }
  0xdc   : > { %726 = vmatpush.msrb.mxu2 %v471_v54  ;;  %684 = vmatpush.msrb.mxu0 %v478_v56 }
  0xdd   : > { %746 = vmatpush.msrb.mxu3 %v535_v55  ;;  %704 = vmatpush.msrb.mxu1 %v542_v57 }
  0xde   : > { %727 = vmatpush.msrb.mxu2 %v467_v58  ;;  %685 = vmatpush.msrb.mxu0 %v474_v60 }
  0xdf   : > { %747 = vmatpush.msrb.mxu3 %v531_v59  ;;  %728 = vmatmul.f32.vlgmr.msrb.gmra.mxu2 %v462_v42 }
  0xe0   : > { %748 = vmatmul.f32.vlgmr.msrb.gmra.mxu3 %v463_v43  ;;  %705 = vmatpush.msrb.mxu1 %v538_v61 }
  0xe1   : > { %686 = vmatpush.msrb.mxu0 %v470_v62 }
  0xe2   : > { %706 = vmatpush.msrb.mxu1 %v534_v63 }
  0xe3   : > { %687 = vmatpush.msrb.mxu0 %v466_v0 }
  0xe4   : > { %707 = vmatpush.msrb.mxu1 %v530_v1  ;;  %688 = vmatmul.f32.vlgmr.msrb.gmra.mxu0 %v462_v42 }
  0xe5   : > { %708 = vmatmul.f32.vlgmr.msrb.gmra.mxu1 %v463_v43 }
 0x155   : > { %v669_v3 = vpop.f32.mrf.mxu3 }
 0x156   : > { %v649_v2 = vpop.f32.mrf.mxu2 }
 0x157   : > { %v609_v4 = vpop.f32.mrf.mxu0  ;;  %v670_v6 = vadd.f32 %v669_v3, %v649_v2 }
 0x158   : > { %v629_v5 = vpop.f32.mrf.mxu1 }
 0x159   : > { %v630_v7 = vadd.f32 %v629_v5, %v609_v4  ;;  %753 = vst [vmem:[%s460_s22 + $0x8] sm:$0xff] %v670_v6 }
 0x15b   : > { %752 = vst [vmem:[%s460_s22] sm:$0xff] %v630_v7 }
 0x161   : > { %v689_v8 = vpop.f32.mrf.mxu0 }
 0x162   : > { %v709_v9 = vpop.f32.mrf.mxu1  ;;  %v729_v11 = vpop.f32.mrf.mxu2 }
 0x163   : > { %v710_v10 = vadd.f32 %v709_v9, %v689_v8  ;;  %v749_v12 = vpop.f32.mrf.mxu3 }
 0x164   : > { %v750_v13 = vadd.f32 %v749_v12, %v729_v11 }
 0x165   : > { %754 = vst [vmem:[%s460_s22 + $0x10] sm:$0xff] %v710_v10 }
 0x166   : > { %755 = vst [vmem:[%s460_s22 + $0x18] sm:$0xff] %v750_v13 }
 0x167 PF: > { %s12_s15 = sadd.s32 1, %s986_s15   ;;  %s1492_s9 = smov %s966_s10 }
 0x168   : > { %p9_p12 = scmp.ge.s32.totalorder %s12_s15, 6   ;;  %s1493_s10 = smov %s1052_s20 }
 0x169   : > { %s1494_s11 = smov %s978_s13  ;;  %s1495_s12 = smov %s982_s14 }
 0x16a   : > { %s1496_s13 = smov %s1499_s16  ;;  %s1497_s14 = smov %s1503_s17 }
 0x16b   :  { %11 = sbr.rel (!%p9_p12) target bundleno = 4 (0x4), region = 89 }

// kernel: edg_forward.22
= control target key start
LH: loop header
LB: loop body
LE: loop exit
PB: predicated region body
PF: predicated region fallthrough
CT: control target
= control target key end

     0   :  { %s815_s15 = smov 0   ;;  %s817_s16 = smov 0   ;;  %s994_s0 = inlined_call_operand.vmem [shape: bf16[8,72], index: 0, kind: input, shape index: {}]   ;;  %s995_s1 = inlined_call_operand.vmem [shape: bf16[2,72,1024], index: 1, kind: input, shape index: {}]   ;;  %s996_s2 = inlined_call_operand.vmem [shape: f32[8,1], index: 2, kind: input, shape index: {}]   ;;  %s997_s3 = inlined_call_operand.vmem [shape: f32[8,1], index: 3, kind: input, shape index: {}]   ;;  %s998_s4 = inlined_call_operand.vmem [shape: f32[2,8,1024], index: 4, kind: output, shape index: {}]  }
   0x1   :  { %s819_s17 = smov 0   ;;  %s821_s18 = smov 0  }
   0x2   :  { %s823_s19 = smov 0   ;;  %s825_s20 = smov 0  }
   0x3   :  { %s827_s21 = smov 0  }
   0x4 LB: > { %s23_s22 = sadd.s32 1, %s779_s19  ;;  %s26_s23 = sadd.s32 1, %s783_s20  ;;  %s787_s21 = sphi %s827_s21, %s14_s21   ;;  %s783_s20 = sphi %s825_s20, %s1004_s20   ;;  %s779_s19 = sphi %s823_s19, %s1003_s19   ;;  %s775_s18 = sphi %s821_s18, %s1002_s18   ;;  %s771_s17 = sphi %s819_s17, %s1001_s17   ;;  %s767_s16 = sphi %s817_s16, %s1000_s16   ;;  %s763_s15 = sphi %s815_s15, %s999_s15  }
   0x5   : > { %p24_p0 = scmp.ge.s32.totalorder %s23_s22, 2  ;;  %p63_p1 = scmp.ne.s32.totalorder %s767_s16, %s763_s15 }
   0x6   : > { %p64_p2 = scmp.eq.s32.totalorder %s787_s21, 0  ;;  %s56_s27 = sadd.s32 1, %s767_s16 }
   0x7   : > { %s1006_s22 = smov (%p24_p0, %s23_s22), 0  ;;  %s1008_s23 = smov (!%p24_p0, %s26_s23), %s783_s20 }
   0x8   : > { %p65_p3 = por %p64_p2, %p63_p1  ;;  %p28_p4 = scmp.ge.s32.totalorder %s1008_s23, 2 }
   0x9   : > { %s52_s24 = ssub.s32 %s779_s19, %s1006_s22  ;;  %p579_p6 = scmp.ge.s32.totalorder %s787_s21, 4 }
   0xa   : > { %s1010_s23 = smov (%p28_p4, %s1008_s23), 0 }
   0xb   : > { %s51_s25 = ssub.s32 %s783_s20, %s1010_s23  ;;  %168 = sbr.rel (%p579_p6) target bundleno = 42 (0x2a), region = 28 }
   0xc   : > { %s53_s26 = sor.u32 %s52_s24, %s51_s25 }
   0xd   : > { %p54_p5 = scmp.eq.s32.totalorder %s53_s26, 0 }
   0xf   : > { %s866_s28 = scalar_select %p54_p5, %s767_s16, %s56_s27  }
  0x10   : > { %171 = sbr.rel (!%p65_p3) target bundleno = 42 (0x2a), region = 32  ;;  %s173_s29 = sand.u32 (%p65_p3), 1, %s767_s16  }
  0x11   : > { %s672_s30 = smul.u32 (%p65_p3), 144, %s173_s29  ;;  %s580_s5 = sshll.u32 (%p65_p3), %s779_s19, 2 }
  0x12   : > { %s673_s6 = smul.u32 (%p65_p3), 72, %s783_s20 }
  0x13   : > { %s880_s12 = scalar_lea.vmem (%p65_p3), [#allocation2], %s672_s30 }
  0x14   : > { %s178_s7 = sadd.s32 (%p65_p3), %s673_s6, %s580_s5 }
  0x15   : > { %s581_s8 = sshll.u32 %s178_s7, 2 }
  0x16   : > { %s875_s11 = scalar_lea.vmem %s995_s1, %s581_s8 }
  0x17   : > { %v193_v0 = vld [vmem:[%s875_s11] sm:$0xff]  ;;  %v195_v1 = vld [vmem:[%s875_s11 + $0x8] sm:$0xff] }
  0x18   : > { %v197_v2 = vld [vmem:[%s875_s11 + $0x20] sm:$0xff]  ;;  %194 = vst [vmem:[%s880_s12] sm:$0xff] %v193_v0  ;;  %v199_v3 = vld [vmem:[%s875_s11 + $0x28] sm:$0xff] }
  0x19   : > { %196 = vst [vmem:[%s880_s12 + $0x8] sm:$0xff] %v195_v1  ;;  %v201_v4 = vld [vmem:[%s875_s11 + $0x40] sm:$0xff]  ;;  %v203_v5 = vld [vmem:[%s875_s11 + $0x48] sm:$0xff] }
  0x1a   : > { %198 = vst [vmem:[%s880_s12 + $0x10] sm:$0xff] %v197_v2  ;;  %v205_v6 = vld [vmem:[%s875_s11 + $0x60] sm:$0xff]  ;;  %v207_v7 = vld [vmem:[%s875_s11 + $0x68] sm:$0xff] }
  0x1b   : > { %200 = vst [vmem:[%s880_s12 + $0x18] sm:$0xff] %v199_v3  ;;  %v209_v8 = vld [vmem:[%s875_s11 + $0x80] sm:$0xff]  ;;  %v211_v9 = vld [vmem:[%s875_s11 + $0x88] sm:$0xff] }
  0x1c   : > { %202 = vst [vmem:[%s880_s12 + $0x20] sm:$0xff] %v201_v4  ;;  %v213_v10 = vld [vmem:[%s875_s11 + $0xa0] sm:$0xff]  ;;  %v215_v11 = vld [vmem:[%s875_s11 + $0xa8] sm:$0xff] }
  0x1d   : > { %204 = vst [vmem:[%s880_s12 + $0x28] sm:$0xff] %v203_v5  ;;  %v217_v12 = vld [vmem:[%s875_s11 + $0xc0] sm:$0xff]  ;;  %v219_v13 = vld [vmem:[%s875_s11 + $0xc8] sm:$0xff] }
  0x1e   : > { %206 = vst [vmem:[%s880_s12 + $0x30] sm:$0xff] %v205_v6  ;;  %v221_v14 = vld [vmem:[%s875_s11 + $0xe0] sm:$0xff]  ;;  %v223_v15 = vld [vmem:[%s875_s11 + $0xe8] sm:$0xff] }
  0x1f   : > { %208 = vst [vmem:[%s880_s12 + $0x38] sm:$0xff] %v207_v7  ;;  %v225_v16 = vld [vmem:[%s875_s11 + $0x100] sm:$0xff]  ;;  %v227_v17 = vld [vmem:[%s875_s11 + $0x108] sm:$0xff] }
  0x20   : > { %210 = vst [vmem:[%s880_s12 + $0x40] sm:$0xff] %v209_v8 }
  0x21   : > { %212 = vst [vmem:[%s880_s12 + $0x48] sm:$0xff] %v211_v9 }
  0x22   : > { %214 = vst [vmem:[%s880_s12 + $0x50] sm:$0xff] %v213_v10 }
  0x23   : > { %216 = vst [vmem:[%s880_s12 + $0x58] sm:$0xff] %v215_v11 }
  0x24   : > { %218 = vst [vmem:[%s880_s12 + $0x60] sm:$0xff] %v217_v12 }
  0x25   : > { %220 = vst [vmem:[%s880_s12 + $0x68] sm:$0xff] %v219_v13 }
  0x26   : > { %222 = vst [vmem:[%s880_s12 + $0x70] sm:$0xff] %v221_v14 }
  0x27   : > { %224 = vst [vmem:[%s880_s12 + $0x78] sm:$0xff] %v223_v15 }
  0x28   : > { %226 = vst [vmem:[%s880_s12 + $0x80] sm:$0xff] %v225_v16 }
  0x29   : > { %228 = vst [vmem:[%s880_s12 + $0x88] sm:$0xff] %v227_v17 }
  0x2a PF: > { %p582_p7 = scmp.ge.s32.totalorder %s787_s21, 1  ;;  %p233_p8 = scmp.lt.s32.totalorder %s787_s21, 5 }
  0x2c   : > { %p234_p9 = pnand %p582_p7, %p233_p8 }
  0x2d   : > { %s240_s13 = sand.u32 (!%p234_p9), 1, %s763_s15   ;;  %s583_s5 = sshll.u32 (!%p234_p9), %s771_s17, 2 }
  0x2e   : > { %237 = sbr.rel (%p234_p9) target bundleno = 218 (0xda), region = 55  ;;  %p271_p10 = scmp.lt.s32.totalorder (!%p234_p9), %s775_s18, 1 }
  0x2f   : > { %s674_s14 = smul.u32 (!%p234_p9), 144, %s240_s13  ;;  %p273_p11 = scmp.lt.s32.totalorder (!%p234_p9), %s583_s5, 7 }
  0x31   : > { %s921_s26 = scalar_lea.vmem (!%p234_p9), [#allocation2], %s674_s14 }
  0x33   : > { %v789_v18 = vmov 0   ;;  %v459_v19 = vld [vmem:[%s996_s2] sm:$0xff]  ;;  %v299_v21 = vld [vmem:[%s921_s26 + $0x88] sm:$0xff]  ;;  %vm394_vm0 = vcmask 1043456   ;;  %v671_v35 = vld [vmem:[%s921_s26 + $0x74] sm:$0xf0] }
  0x34   : > { %732 = vset.pattern.permute.xlu0 %v789_v18  ;;  %v298_v20 = vld [vmem:[%s921_s26 + $0x80] sm:$0xff]  ;;  %v352_v24 = vunpack.c.l.b16 %v299_v21  ;;  %v353_v25 = vunpack.c.h.b16 %v299_v21  ;;  %v670_v27 = vld [vmem:[%s921_s26 + $0x6c] sm:$0xf0]  ;;  %v638_v33 = vld [vmem:[%s921_s26 + $0x70] sm:$0xf0]  ;;  %vm390_vm1 = vcmask 588800  }
  0x35   : > { %462 = vperm.xlu0 %732, %v459_v19   ;;  %v350_v22 = vunpack.c.l.b16 %v298_v20  ;;  %v351_v23 = vunpack.c.h.b16 %v298_v20  ;;  %v636_v26 = vld [vmem:[%s921_s26 + $0x60] sm:$0xf]  ;;  %v668_v32 = vld [vmem:[%s921_s26 + $0x64] sm:$0xf]  ;;  %v644_v34 = vld [vmem:[%s921_s26 + $0x68] sm:$0xf] }
  0x36   : > { %v372_v30 = vpack.c.b16 %v352_v24, %v352_v24  ;;  %v373_v31 = vpack.c.b16 %v353_v25, %v353_v25  ;;  %v669_v36 = vld [vmem:[%s921_s26 + $0x6c] sm:$0xf]  ;;  %v646_v37 = vld [vmem:[%s921_s26 + $0x78] sm:$0xf0]  ;;  %v469_v42 = vld [vmem:[%s997_s3] sm:$0xff]  ;;  %v637_v43 = vor.u32 %v670_v27, %v636_v26  ;;  %v641_v44 = vor.u32 %v668_v32, %v638_v33  ;;  %s1012_s18 = smov (!%p271_p10, %s775_s18), 1 }
  0x37   : > { %v370_v28 = vpack.c.b16 %v350_v22, %v350_v22  ;;  %v371_v29 = vpack.c.b16 %v351_v23, %v351_v23  ;;  %v620_v45 = vld [vmem:[%s921_s26 + $0x40] sm:$0xf]  ;;  %v666_v46 = vld [vmem:[%s921_s26 + $0x4c] sm:$0xf0]  ;;  %v645_v47 = vor.u32 %v671_v35, %v644_v34  ;;  %v649_v48 = vor.u32 %v669_v36, %v646_v37  ;;  %v664_v49 = vld [vmem:[%s921_s26 + $0x44] sm:$0xf] }
  0x38   : > { %v402_v40 = vsel %vm394_vm0, %v372_v30, 0  ;;  %v405_v41 = vsel %vm394_vm0, %v373_v31, 0  ;;  %v622_v50 = vld [vmem:[%s921_s26 + $0x50] sm:$0xf0]  ;;  %v628_v51 = vld [vmem:[%s921_s26 + $0x48] sm:$0xf]  ;;  %v621_v55 = vor.u32 %v666_v46, %v620_v45 }
  0x39   : > { %v396_v38 = vsel %vm394_vm0, %v370_v28, 0  ;;  %v399_v39 = vsel %vm394_vm0, %v371_v29, 0  ;;  %436 = vmatpush.bf16.msra.mxu2 %v402_v40  ;;  %449 = vmatpush.bf16.msra.mxu3 %v405_v41  ;;  %v667_v52 = vld [vmem:[%s921_s26 + $0x54] sm:$0xf0]  ;;  %v665_v53 = vld [vmem:[%s921_s26 + $0x4c] sm:$0xf]  ;;  %v625_v56 = vor.u32 %v664_v49, %v622_v50 }
  0x3a   : > { %410 = vmatpush.bf16.msra.mxu0 %v396_v38  ;;  %423 = vmatpush.bf16.msra.mxu1 %v399_v39  ;;  %v630_v54 = vld [vmem:[%s921_s26 + $0x58] sm:$0xf0]  ;;  %v604_v57 = vld [vmem:[%s921_s26 + $0x20] sm:$0xf]  ;;  %v662_v58 = vld [vmem:[%s921_s26 + $0x2c] sm:$0xf0]  ;;  %v629_v59 = vor.u32 %v667_v52, %v628_v51 }
  0x3b   : > { %v633_v60 = vor.u32 %v665_v53, %v630_v54  ;;  %v660_v61 = vld [vmem:[%s921_s26 + $0x24] sm:$0xf]  ;;  %v606_v62 = vld [vmem:[%s921_s26 + $0x30] sm:$0xf0]  ;;  %v612_v63 = vld [vmem:[%s921_s26 + $0x28] sm:$0xf]  ;;  %v605_v3 = vor.u32 %v662_v58, %v604_v57 }
  0x3c   : > { %v663_v0 = vld [vmem:[%s921_s26 + $0x34] sm:$0xf0]  ;;  %v661_v1 = vld [vmem:[%s921_s26 + $0x2c] sm:$0xf]  ;;  %v614_v2 = vld [vmem:[%s921_s26 + $0x38] sm:$0xf0]  ;;  %v609_v4 = vor.u32 %v660_v61, %v606_v62 }
  0x3d   : > { %472 = vperm.xlu0 %732, %v469_v42   ;;  %437 = vmatpush.bf16.msra.mxu2 %v645_v47  ;;  %v588_v5 = vld [vmem:[%s921_s26] sm:$0xf]  ;;  %v658_v6 = vld [vmem:[%s921_s26 + $0xc] sm:$0xf0]  ;;  %v613_v7 = vor.u32 %v663_v0, %v612_v63  ;;  %v617_v8 = vor.u32 %v661_v1, %v614_v2  ;;  %v656_v9 = vld [vmem:[%s921_s26 + $0x4] sm:$0xf] }
  0x3e   : > { %411 = vmatpush.bf16.msra.mxu0 %v637_v43  ;;  %424 = vmatpush.bf16.msra.mxu1 %v641_v44  ;;  %v590_v10 = vld [vmem:[%s921_s26 + $0x10] sm:$0xf0]  ;;  %v596_v11 = vld [vmem:[%s921_s26 + $0x8] sm:$0xf]  ;;  %v659_v12 = vld [vmem:[%s921_s26 + $0x14] sm:$0xf0]  ;;  %v589_v15 = vor.u32 %v658_v6, %v588_v5 }
  0x3f   : > { %450 = vmatpush.bf16.msra.mxu3 %v649_v48  ;;  %v657_v13 = vld [vmem:[%s921_s26 + $0xc] sm:$0xf]  ;;  %v598_v14 = vld [vmem:[%s921_s26 + $0x18] sm:$0xf0]  ;;  %v593_v16 = vor.u32 %v656_v9, %v590_v10  ;;  %v597_v17 = vor.u32 %v659_v12, %v596_v11  ;;  %v281_v19 = vld [vmem:[%s994_s0] sm:$0xf] }
  0x40   : > { %v601_v18 = vor.u32 %v657_v13, %v598_v14  ;;  %s1014_s5 = smov (!%p273_p11, %s583_s5), 7  ;;  %s584_s6 = sshll.u32 %s1012_s18, 3 }
  0x41   : > { %438 = vmatpush.bf16.msra.mxu2 %v629_v59  ;;  %s276_s7 = sadd.s32 %s584_s6, %s1014_s5 }
  0x42   : > { %412 = vmatpush.bf16.msra.mxu0 %v621_v55  ;;  %425 = vmatpush.bf16.msra.mxu1 %v625_v56  ;;  %s585_s8 = sshll.u32 %s276_s7, 3 }
  0x43   : > { %451 = vmatpush.bf16.msra.mxu3 %v633_v60  ;;  %s278_s11 = scalar_lea.vmem %s998_s4, %s585_s8 }
  0x45   : > { %439 = vmatpush.bf16.msra.mxu2 %v613_v7 }
  0x46   : > { %413 = vmatpush.bf16.msra.mxu0 %v605_v3  ;;  %426 = vmatpush.bf16.msra.mxu1 %v609_v4 }
  0x47   : > { %452 = vmatpush.bf16.msra.mxu3 %v617_v8 }
  0x49   : > { %440 = vmatpush.bf16.msra.mxu2 %v597_v17 }
  0x4a   : > { %414 = vmatpush.bf16.msra.mxu0 %v589_v15  ;;  %427 = vmatpush.bf16.msra.mxu1 %v593_v16 }
  0x4b   : > { %453 = vmatpush.bf16.msra.mxu3 %v601_v18 }
  0x4c   : > { %652 = vmatmul.msk.bf16.vlgmr.msra.gmra.mxu2 %vm390_vm1, %v281_v19 }
  0x4d   : > { %650 = vmatmul.msk.bf16.vlgmr.msra.gmra.mxu0 %vm390_vm1, %v281_v19  ;;  %651 = vmatmul.msk.bf16.vlgmr.msra.gmra.mxu1 %vm390_vm1, %v281_v19 }
  0x4e   : > { %653 = vmatmul.msk.bf16.vlgmr.msra.gmra.mxu3 %vm390_vm1, %v281_v19 }
  0xa7   : > { %v463_v20 = vpop.permute.xlu0 %462 }
  0xaf   : > { %v473_v21 = vpop.permute.xlu0 %472 }
  0xca   : > { %v416_v22 = vpop.f32.mrf.mxu0  ;;  %v429_v23 = vpop.f32.mrf.mxu1 }
  0xcb   : > { %v465_v24 = vmul.f32 %v463_v20, %v416_v22  ;;  %v466_v25 = vmul.f32 %v463_v20, %v429_v23 }
  0xcd   : > { %v475_v26 = vadd.f32 %v473_v21, %v465_v24  ;;  %v476_v27 = vadd.f32 %v473_v21, %v466_v25 }
  0xcf   : > { %479 = vst [vmem:[%s278_s11] sm:$0xff] %v475_v26  ;;  %v442_v28 = vpop.f32.mrf.mxu2 }
  0xd0   : > { %480 = vst [vmem:[%s278_s11 + $0x8] sm:$0xff] %v476_v27  ;;  %v467_v30 = vmul.f32 %v463_v20, %v442_v28 }
  0xd1   : > { %v455_v29 = vpop.f32.mrf.mxu3 }
  0xd2   : > { %v468_v31 = vmul.f32 %v463_v20, %v455_v29  ;;  %v418_v32 = vpop.f32.mrf.mxu0  ;;  %v431_v33 = vpop.f32.mrf.mxu1  ;;  %v477_v34 = vadd.f32 %v473_v21, %v467_v30 }
  0xd4   : > { %v478_v35 = vadd.f32 %v473_v21, %v468_v31  ;;  %481 = vst [vmem:[%s278_s11 + $0x10] sm:$0xff] %v477_v34 }
  0xd6   : > { %482 = vst [vmem:[%s278_s11 + $0x18] sm:$0xff] %v478_v35 }
  0xd7   : > { %v444_v36 = vpop.f32.mrf.mxu2 }
  0xd9   : > { %v457_v37 = vpop.f32.mrf.mxu3 }
  0xda PF: > { %s14_s21 = sadd.s32 1, %s787_s21   ;;  %s999_s15 = smov %s767_s16 }
  0xdb   : > { %p11_p12 = scmp.ge.s32.totalorder %s14_s21, 6   ;;  %s1000_s16 = smov %s866_s28 }
  0xdc   : > { %s1001_s17 = smov %s779_s19  ;;  %s1002_s18 = smov %s783_s20 }
  0xdd   : > { %s1003_s19 = smov %s1006_s22  ;;  %s1004_s20 = smov %s1010_s23 }
  0xde   :  { %13 = sbr.rel (!%p11_p12) target bundleno = 4 (0x4), region = 94 }

// kernel: edg_forward.17
= control target key start
LH: loop header
LB: loop body
LE: loop exit
PB: predicated region body
PF: predicated region fallthrough
CT: control target
= control target key end

     0   :  { %s1017_s9 = smov 0   ;;  %s1019_s10 = smov 0   ;;  %s1518_s0 = inlined_call_operand.vmem [shape: f32[2,4,256], index: 0, kind: input, shape index: {}]   ;;  %s1519_s1 = inlined_call_operand.vmem [shape: f32[256,1024], index: 1, kind: input, shape index: {}]   ;;  %s1520_s2 = inlined_call_operand.vmem [shape: f32[2,4,1024], index: 2, kind: output, shape index: {}]  }
   0x1   :  { %s1021_s11 = smov 0   ;;  %s1023_s12 = smov 0  }
   0x2   :  { %s1025_s13 = smov 0   ;;  %s1027_s14 = smov 0  }
   0x3   :  { %s1029_s15 = smov 0  }
   0x4 LB: > { %s21_s16 = sadd.s32 1, %s992_s13  ;;  %s24_s17 = sadd.s32 1, %s996_s14  ;;  %s1000_s15 = sphi %s1029_s15, %s12_s15   ;;  %s996_s14 = sphi %s1027_s14, %s1526_s14   ;;  %s992_s13 = sphi %s1025_s13, %s1525_s13   ;;  %s988_s12 = sphi %s1023_s12, %s1524_s12   ;;  %s984_s11 = sphi %s1021_s11, %s1523_s11   ;;  %s980_s10 = sphi %s1019_s10, %s1522_s10   ;;  %s976_s9 = sphi %s1017_s9, %s1521_s9  }
   0x5   : > { %p22_p0 = scmp.ge.s32.totalorder %s21_s16, 2  ;;  %s57_s18 = sadd.s32 1, %s980_s10 }
   0x6   : > { %p64_p1 = scmp.ne.s32.totalorder %s980_s10, %s976_s9  ;;  %p65_p2 = scmp.eq.s32.totalorder %s1000_s15, 0 }
   0x7   : > { %s1528_s16 = smov (%p22_p0, %s21_s16), 0  ;;  %s1530_s17 = smov (!%p22_p0, %s24_s17), %s996_s14 }
   0x8   : > { %s54_s19 = ssub.s32 %s992_s13, %s1528_s16  ;;  %p66_p3 = por %p65_p2, %p64_p1 }
   0x9   : > { %p26_p4 = scmp.ge.s32.totalorder %s1530_s17, 2  ;;  %p55_p5 = scmp.eq.s32.totalorder %s54_s19, 0 }
   0xa   : > { %p875_p6 = scmp.ge.s32.totalorder %s1000_s15, 4 }
   0xb   : > { %s1532_s17 = smov (%p26_p4, %s1530_s17), 0 }
   0xc   : > { %s1066_s20 = scalar_select %p55_p5, %s980_s10, %s57_s18  }
   0xd   : > { %118 = sbr.rel (%p875_p6) target bundleno = 150 (0x96), region = 16 }
  0x12   : > { %129 = sbr.rel (!%p66_p3) target bundleno = 150 (0x96), region = 24  ;;  %s131_s21 = sand.u32 (%p66_p3), 1, %s980_s10  }
  0x13   : > { %s888_s22 = sshll.u32 (%p66_p3), %s992_s13, 5  ;;  %s876_s23 = sshll.u32 (%p66_p3), %s131_s21, 10 }
  0x14   : > { %s1074_s26 = scalar_lea.vmem (%p66_p3), %s1519_s1, %s888_s22  ;;  %s1079_s27 = scalar_lea.vmem (%p66_p3), [#allocation2], %s876_s23 }
  0x15   : > { %v149_v0 = vld [vmem:[%s1074_s26] sm:$0xff] (%p66_p3)  ;;  %v151_v1 = vld [vmem:[%s1074_s26 + $0x8] sm:$0xff] (%p66_p3)  ;;  %v153_v2 = vld [vmem:[%s1074_s26 + $0x10] sm:$0xff] (%p66_p3) }
  0x16   : > { %150 = vst [vmem:[%s1079_s27] sm:$0xff] (%p66_p3), %v149_v0  ;;  %v155_v3 = vld [vmem:[%s1074_s26 + $0x18] sm:$0xff] (%p66_p3)  ;;  %v157_v4 = vld [vmem:[%s1074_s26 + $0x40] sm:$0xff] (%p66_p3)  ;;  %v159_v5 = vld [vmem:[%s1074_s26 + $0x48] sm:$0xff] (%p66_p3) }
  0x17   : > { %152 = vst [vmem:[%s1079_s27 + $0x8] sm:$0xff] %v151_v1  ;;  %v161_v6 = vld [vmem:[%s1074_s26 + $0x50] sm:$0xff]  ;;  %v163_v7 = vld [vmem:[%s1074_s26 + $0x58] sm:$0xff]  ;;  %v165_v8 = vld [vmem:[%s1074_s26 + $0x80] sm:$0xff] }
  0x18   : > { %154 = vst [vmem:[%s1079_s27 + $0x10] sm:$0xff] %v153_v2  ;;  %v167_v9 = vld [vmem:[%s1074_s26 + $0x88] sm:$0xff]  ;;  %v169_v10 = vld [vmem:[%s1074_s26 + $0x90] sm:$0xff]  ;;  %v171_v11 = vld [vmem:[%s1074_s26 + $0x98] sm:$0xff] }
  0x19   : > { %156 = vst [vmem:[%s1079_s27 + $0x18] sm:$0xff] %v155_v3  ;;  %v173_v12 = vld [vmem:[%s1074_s26 + $0xc0] sm:$0xff]  ;;  %v175_v13 = vld [vmem:[%s1074_s26 + $0xc8] sm:$0xff]  ;;  %v177_v14 = vld [vmem:[%s1074_s26 + $0xd0] sm:$0xff] }
  0x1a   : > { %158 = vst [vmem:[%s1079_s27 + $0x20] sm:$0xff] %v157_v4  ;;  %v179_v15 = vld [vmem:[%s1074_s26 + $0xd8] sm:$0xff]  ;;  %v181_v16 = vld [vmem:[%s1074_s26 + $0x100] sm:$0xff]  ;;  %v183_v17 = vld [vmem:[%s1074_s26 + $0x108] sm:$0xff] }
  0x1b   : > { %160 = vst [vmem:[%s1079_s27 + $0x28] sm:$0xff] %v159_v5  ;;  %v185_v18 = vld [vmem:[%s1074_s26 + $0x110] sm:$0xff]  ;;  %v187_v19 = vld [vmem:[%s1074_s26 + $0x118] sm:$0xff]  ;;  %v189_v20 = vld [vmem:[%s1074_s26 + $0x140] sm:$0xff] }
  0x1c   : > { %162 = vst [vmem:[%s1079_s27 + $0x30] sm:$0xff] %v161_v6  ;;  %v191_v21 = vld [vmem:[%s1074_s26 + $0x148] sm:$0xff]  ;;  %v193_v22 = vld [vmem:[%s1074_s26 + $0x150] sm:$0xff]  ;;  %v195_v23 = vld [vmem:[%s1074_s26 + $0x158] sm:$0xff] }
  0x1d   : > { %164 = vst [vmem:[%s1079_s27 + $0x38] sm:$0xff] %v163_v7  ;;  %v197_v24 = vld [vmem:[%s1074_s26 + $0x180] sm:$0xff]  ;;  %v199_v25 = vld [vmem:[%s1074_s26 + $0x188] sm:$0xff]  ;;  %v201_v26 = vld [vmem:[%s1074_s26 + $0x190] sm:$0xff] }
  0x1e   : > { %166 = vst [vmem:[%s1079_s27 + $0x40] sm:$0xff] %v165_v8  ;;  %v203_v27 = vld [vmem:[%s1074_s26 + $0x198] sm:$0xff]  ;;  %v205_v28 = vld [vmem:[%s1074_s26 + $0x1c0] sm:$0xff]  ;;  %v207_v29 = vld [vmem:[%s1074_s26 + $0x1c8] sm:$0xff] }
  0x1f   : > { %168 = vst [vmem:[%s1079_s27 + $0x48] sm:$0xff] %v167_v9  ;;  %v209_v30 = vld [vmem:[%s1074_s26 + $0x1d0] sm:$0xff]  ;;  %v211_v31 = vld [vmem:[%s1074_s26 + $0x1d8] sm:$0xff]  ;;  %v213_v32 = vld [vmem:[%s1074_s26 + $0x200] sm:$0xff] }
  0x20   : > { %170 = vst [vmem:[%s1079_s27 + $0x50] sm:$0xff] %v169_v10  ;;  %v215_v33 = vld [vmem:[%s1074_s26 + $0x208] sm:$0xff]  ;;  %v217_v34 = vld [vmem:[%s1074_s26 + $0x210] sm:$0xff]  ;;  %v219_v35 = vld [vmem:[%s1074_s26 + $0x218] sm:$0xff] }
  0x21   : > { %172 = vst [vmem:[%s1079_s27 + $0x58] sm:$0xff] %v171_v11  ;;  %v221_v36 = vld [vmem:[%s1074_s26 + $0x240] sm:$0xff]  ;;  %v223_v37 = vld [vmem:[%s1074_s26 + $0x248] sm:$0xff]  ;;  %v225_v38 = vld [vmem:[%s1074_s26 + $0x250] sm:$0xff] }
  0x22   : > { %174 = vst [vmem:[%s1079_s27 + $0x60] sm:$0xff] %v173_v12  ;;  %v227_v39 = vld [vmem:[%s1074_s26 + $0x258] sm:$0xff]  ;;  %v229_v40 = vld [vmem:[%s1074_s26 + $0x280] sm:$0xff]  ;;  %v231_v41 = vld [vmem:[%s1074_s26 + $0x288] sm:$0xff] }
  0x23   : > { %176 = vst [vmem:[%s1079_s27 + $0x68] sm:$0xff] %v175_v13  ;;  %v233_v42 = vld [vmem:[%s1074_s26 + $0x290] sm:$0xff]  ;;  %v235_v43 = vld [vmem:[%s1074_s26 + $0x298] sm:$0xff]  ;;  %v237_v44 = vld [vmem:[%s1074_s26 + $0x2c0] sm:$0xff] }
  0x24   : > { %178 = vst [vmem:[%s1079_s27 + $0x70] sm:$0xff] %v177_v14  ;;  %v239_v45 = vld [vmem:[%s1074_s26 + $0x2c8] sm:$0xff]  ;;  %v241_v46 = vld [vmem:[%s1074_s26 + $0x2d0] sm:$0xff]  ;;  %v243_v47 = vld [vmem:[%s1074_s26 + $0x2d8] sm:$0xff] }
  0x25   : > { %180 = vst [vmem:[%s1079_s27 + $0x78] sm:$0xff] %v179_v15  ;;  %v245_v48 = vld [vmem:[%s1074_s26 + $0x300] sm:$0xff]  ;;  %v247_v49 = vld [vmem:[%s1074_s26 + $0x308] sm:$0xff]  ;;  %v249_v50 = vld [vmem:[%s1074_s26 + $0x310] sm:$0xff] }
  0x26   : > { %182 = vst [vmem:[%s1079_s27 + $0x80] sm:$0xff] %v181_v16  ;;  %v251_v51 = vld [vmem:[%s1074_s26 + $0x318] sm:$0xff]  ;;  %v253_v52 = vld [vmem:[%s1074_s26 + $0x340] sm:$0xff]  ;;  %v255_v53 = vld [vmem:[%s1074_s26 + $0x348] sm:$0xff] }
  0x27   : > { %184 = vst [vmem:[%s1079_s27 + $0x88] sm:$0xff] %v183_v17  ;;  %v257_v54 = vld [vmem:[%s1074_s26 + $0x350] sm:$0xff]  ;;  %v259_v55 = vld [vmem:[%s1074_s26 + $0x358] sm:$0xff]  ;;  %v261_v56 = vld [vmem:[%s1074_s26 + $0x380] sm:$0xff] }
  0x28   : > { %186 = vst [vmem:[%s1079_s27 + $0x90] sm:$0xff] %v185_v18  ;;  %v263_v57 = vld [vmem:[%s1074_s26 + $0x388] sm:$0xff]  ;;  %v265_v58 = vld [vmem:[%s1074_s26 + $0x390] sm:$0xff]  ;;  %v267_v59 = vld [vmem:[%s1074_s26 + $0x398] sm:$0xff] }
  0x29   : > { %188 = vst [vmem:[%s1079_s27 + $0x98] sm:$0xff] %v187_v19  ;;  %v269_v60 = vld [vmem:[%s1074_s26 + $0x3c0] sm:$0xff]  ;;  %v271_v61 = vld [vmem:[%s1074_s26 + $0x3c8] sm:$0xff]  ;;  %v273_v62 = vld [vmem:[%s1074_s26 + $0x3d0] sm:$0xff] }
  0x2a   : > { %190 = vst [vmem:[%s1079_s27 + $0xa0] sm:$0xff] %v189_v20  ;;  %v275_v63 = vld [vmem:[%s1074_s26 + $0x3d8] sm:$0xff]  ;;  %v277_v0 = vld [vmem:[%s1074_s26 + $0x400] sm:$0xff]  ;;  %v279_v1 = vld [vmem:[%s1074_s26 + $0x408] sm:$0xff] }
  0x2b   : > { %192 = vst [vmem:[%s1079_s27 + $0xa8] sm:$0xff] %v191_v21  ;;  %v281_v2 = vld [vmem:[%s1074_s26 + $0x410] sm:$0xff]  ;;  %v283_v3 = vld [vmem:[%s1074_s26 + $0x418] sm:$0xff]  ;;  %v285_v4 = vld [vmem:[%s1074_s26 + $0x440] sm:$0xff] }
  0x2c   : > { %194 = vst [vmem:[%s1079_s27 + $0xb0] sm:$0xff] %v193_v22  ;;  %v287_v5 = vld [vmem:[%s1074_s26 + $0x448] sm:$0xff]  ;;  %v289_v6 = vld [vmem:[%s1074_s26 + $0x450] sm:$0xff]  ;;  %v291_v7 = vld [vmem:[%s1074_s26 + $0x458] sm:$0xff] }
  0x2d   : > { %196 = vst [vmem:[%s1079_s27 + $0xb8] sm:$0xff] %v195_v23  ;;  %v293_v8 = vld [vmem:[%s1074_s26 + $0x480] sm:$0xff]  ;;  %v295_v9 = vld [vmem:[%s1074_s26 + $0x488] sm:$0xff]  ;;  %v297_v10 = vld [vmem:[%s1074_s26 + $0x490] sm:$0xff] }
  0x2e   : > { %198 = vst [vmem:[%s1079_s27 + $0xc0] sm:$0xff] %v197_v24  ;;  %v299_v11 = vld [vmem:[%s1074_s26 + $0x498] sm:$0xff]  ;;  %v301_v12 = vld [vmem:[%s1074_s26 + $0x4c0] sm:$0xff]  ;;  %v303_v13 = vld [vmem:[%s1074_s26 + $0x4c8] sm:$0xff] }
  0x2f   : > { %200 = vst [vmem:[%s1079_s27 + $0xc8] sm:$0xff] %v199_v25  ;;  %v305_v14 = vld [vmem:[%s1074_s26 + $0x4d0] sm:$0xff]  ;;  %v307_v15 = vld [vmem:[%s1074_s26 + $0x4d8] sm:$0xff]  ;;  %v309_v16 = vld [vmem:[%s1074_s26 + $0x500] sm:$0xff] }
  0x30   : > { %202 = vst [vmem:[%s1079_s27 + $0xd0] sm:$0xff] %v201_v26  ;;  %v311_v17 = vld [vmem:[%s1074_s26 + $0x508] sm:$0xff]  ;;  %v313_v18 = vld [vmem:[%s1074_s26 + $0x510] sm:$0xff]  ;;  %v315_v19 = vld [vmem:[%s1074_s26 + $0x518] sm:$0xff] }
  0x31   : > { %204 = vst [vmem:[%s1079_s27 + $0xd8] sm:$0xff] %v203_v27  ;;  %v317_v20 = vld [vmem:[%s1074_s26 + $0x540] sm:$0xff]  ;;  %v319_v21 = vld [vmem:[%s1074_s26 + $0x548] sm:$0xff]  ;;  %v321_v22 = vld [vmem:[%s1074_s26 + $0x550] sm:$0xff] }
  0x32   : > { %206 = vst [vmem:[%s1079_s27 + $0xe0] sm:$0xff] %v205_v28  ;;  %v323_v23 = vld [vmem:[%s1074_s26 + $0x558] sm:$0xff]  ;;  %v325_v24 = vld [vmem:[%s1074_s26 + $0x580] sm:$0xff]  ;;  %v327_v25 = vld [vmem:[%s1074_s26 + $0x588] sm:$0xff] }
  0x33   : > { %208 = vst [vmem:[%s1079_s27 + $0xe8] sm:$0xff] %v207_v29  ;;  %v329_v26 = vld [vmem:[%s1074_s26 + $0x590] sm:$0xff]  ;;  %v331_v27 = vld [vmem:[%s1074_s26 + $0x598] sm:$0xff]  ;;  %v333_v28 = vld [vmem:[%s1074_s26 + $0x5c0] sm:$0xff] }
  0x34   : > { %210 = vst [vmem:[%s1079_s27 + $0xf0] sm:$0xff] %v209_v30  ;;  %v335_v29 = vld [vmem:[%s1074_s26 + $0x5c8] sm:$0xff]  ;;  %v337_v30 = vld [vmem:[%s1074_s26 + $0x5d0] sm:$0xff] }
  0x35   : > { %212 = vst [vmem:[%s1079_s27 + $0xf8] sm:$0xff] %v211_v31  ;;  %v339_v31 = vld [vmem:[%s1074_s26 + $0x5d8] sm:$0xff] }
  0x36   : > { %214 = vst [vmem:[%s1079_s27 + $0x100] sm:$0xff] %v213_v32  ;;  %v341_v32 = vld [vmem:[%s1074_s26 + $0x600] sm:$0xff] }
  0x37   : > { %216 = vst [vmem:[%s1079_s27 + $0x108] sm:$0xff] %v215_v33  ;;  %v343_v33 = vld [vmem:[%s1074_s26 + $0x608] sm:$0xff] }
  0x38   : > { %218 = vst [vmem:[%s1079_s27 + $0x110] sm:$0xff] %v217_v34  ;;  %v345_v34 = vld [vmem:[%s1074_s26 + $0x610] sm:$0xff] }
  0x39   : > { %220 = vst [vmem:[%s1079_s27 + $0x118] sm:$0xff] %v219_v35  ;;  %v347_v35 = vld [vmem:[%s1074_s26 + $0x618] sm:$0xff] }
  0x3a   : > { %222 = vst [vmem:[%s1079_s27 + $0x120] sm:$0xff] %v221_v36  ;;  %v349_v36 = vld [vmem:[%s1074_s26 + $0x640] sm:$0xff] }
  0x3b   : > { %224 = vst [vmem:[%s1079_s27 + $0x128] sm:$0xff] %v223_v37  ;;  %v351_v37 = vld [vmem:[%s1074_s26 + $0x648] sm:$0xff] }
  0x3c   : > { %226 = vst [vmem:[%s1079_s27 + $0x130] sm:$0xff] %v225_v38  ;;  %v353_v38 = vld [vmem:[%s1074_s26 + $0x650] sm:$0xff] }
  0x3d   : > { %228 = vst [vmem:[%s1079_s27 + $0x138] sm:$0xff] %v227_v39  ;;  %v355_v39 = vld [vmem:[%s1074_s26 + $0x658] sm:$0xff] }
  0x3e   : > { %230 = vst [vmem:[%s1079_s27 + $0x140] sm:$0xff] %v229_v40  ;;  %v357_v40 = vld [vmem:[%s1074_s26 + $0x680] sm:$0xff] }
  0x3f   : > { %232 = vst [vmem:[%s1079_s27 + $0x148] sm:$0xff] %v231_v41  ;;  %v359_v41 = vld [vmem:[%s1074_s26 + $0x688] sm:$0xff] }
  0x40   : > { %234 = vst [vmem:[%s1079_s27 + $0x150] sm:$0xff] %v233_v42  ;;  %v361_v42 = vld [vmem:[%s1074_s26 + $0x690] sm:$0xff] }
  0x41   : > { %236 = vst [vmem:[%s1079_s27 + $0x158] sm:$0xff] %v235_v43  ;;  %v363_v43 = vld [vmem:[%s1074_s26 + $0x698] sm:$0xff] }
  0x42   : > { %238 = vst [vmem:[%s1079_s27 + $0x160] sm:$0xff] %v237_v44  ;;  %v365_v44 = vld [vmem:[%s1074_s26 + $0x6c0] sm:$0xff] }
  0x43   : > { %240 = vst [vmem:[%s1079_s27 + $0x168] sm:$0xff] %v239_v45  ;;  %v367_v45 = vld [vmem:[%s1074_s26 + $0x6c8] sm:$0xff] }
  0x44   : > { %242 = vst [vmem:[%s1079_s27 + $0x170] sm:$0xff] %v241_v46  ;;  %v369_v46 = vld [vmem:[%s1074_s26 + $0x6d0] sm:$0xff] }
  0x45   : > { %244 = vst [vmem:[%s1079_s27 + $0x178] sm:$0xff] %v243_v47  ;;  %v371_v47 = vld [vmem:[%s1074_s26 + $0x6d8] sm:$0xff] }
  0x46   : > { %246 = vst [vmem:[%s1079_s27 + $0x180] sm:$0xff] %v245_v48  ;;  %v373_v48 = vld [vmem:[%s1074_s26 + $0x700] sm:$0xff] }
  0x47   : > { %248 = vst [vmem:[%s1079_s27 + $0x188] sm:$0xff] %v247_v49  ;;  %v375_v49 = vld [vmem:[%s1074_s26 + $0x708] sm:$0xff] }
  0x48   : > { %250 = vst [vmem:[%s1079_s27 + $0x190] sm:$0xff] %v249_v50  ;;  %v377_v50 = vld [vmem:[%s1074_s26 + $0x710] sm:$0xff] }
  0x49   : > { %252 = vst [vmem:[%s1079_s27 + $0x198] sm:$0xff] %v251_v51  ;;  %v379_v51 = vld [vmem:[%s1074_s26 + $0x718] sm:$0xff] }
  0x4a   : > { %254 = vst [vmem:[%s1079_s27 + $0x1a0] sm:$0xff] %v253_v52  ;;  %v381_v52 = vld [vmem:[%s1074_s26 + $0x740] sm:$0xff] }
  0x4b   : > { %256 = vst [vmem:[%s1079_s27 + $0x1a8] sm:$0xff] %v255_v53  ;;  %v383_v53 = vld [vmem:[%s1074_s26 + $0x748] sm:$0xff] }
  0x4c   : > { %258 = vst [vmem:[%s1079_s27 + $0x1b0] sm:$0xff] %v257_v54  ;;  %v385_v54 = vld [vmem:[%s1074_s26 + $0x750] sm:$0xff] }
  0x4d   : > { %260 = vst [vmem:[%s1079_s27 + $0x1b8] sm:$0xff] %v259_v55  ;;  %v387_v55 = vld [vmem:[%s1074_s26 + $0x758] sm:$0xff] }
  0x4e   : > { %262 = vst [vmem:[%s1079_s27 + $0x1c0] sm:$0xff] %v261_v56  ;;  %v389_v56 = vld [vmem:[%s1074_s26 + $0x780] sm:$0xff] }
  0x4f   : > { %264 = vst [vmem:[%s1079_s27 + $0x1c8] sm:$0xff] %v263_v57  ;;  %v391_v57 = vld [vmem:[%s1074_s26 + $0x788] sm:$0xff] }
  0x50   : > { %266 = vst [vmem:[%s1079_s27 + $0x1d0] sm:$0xff] %v265_v58  ;;  %v393_v58 = vld [vmem:[%s1074_s26 + $0x790] sm:$0xff] }
  0x51   : > { %268 = vst [vmem:[%s1079_s27 + $0x1d8] sm:$0xff] %v267_v59  ;;  %v395_v59 = vld [vmem:[%s1074_s26 + $0x798] sm:$0xff] }
  0x52   : > { %270 = vst [vmem:[%s1079_s27 + $0x1e0] sm:$0xff] %v269_v60  ;;  %v397_v60 = vld [vmem:[%s1074_s26 + $0x7c0] sm:$0xff] }
  0x53   : > { %272 = vst [vmem:[%s1079_s27 + $0x1e8] sm:$0xff] %v271_v61  ;;  %v399_v61 = vld [vmem:[%s1074_s26 + $0x7c8] sm:$0xff] }
  0x54   : > { %274 = vst [vmem:[%s1079_s27 + $0x1f0] sm:$0xff] %v273_v62  ;;  %v401_v62 = vld [vmem:[%s1074_s26 + $0x7d0] sm:$0xff] }
  0x55   : > { %276 = vst [vmem:[%s1079_s27 + $0x1f8] sm:$0xff] %v275_v63  ;;  %v403_v63 = vld [vmem:[%s1074_s26 + $0x7d8] sm:$0xff] }
  0x56   : > { %278 = vst [vmem:[%s1079_s27 + $0x200] sm:$0xff] %v277_v0 }
  0x57   : > { %280 = vst [vmem:[%s1079_s27 + $0x208] sm:$0xff] %v279_v1 }
  0x58   : > { %282 = vst [vmem:[%s1079_s27 + $0x210] sm:$0xff] %v281_v2 }
  0x59   : > { %284 = vst [vmem:[%s1079_s27 + $0x218] sm:$0xff] %v283_v3 }
  0x5a   : > { %286 = vst [vmem:[%s1079_s27 + $0x220] sm:$0xff] %v285_v4 }
  0x5b   : > { %288 = vst [vmem:[%s1079_s27 + $0x228] sm:$0xff] %v287_v5 }
  0x5c   : > { %290 = vst [vmem:[%s1079_s27 + $0x230] sm:$0xff] %v289_v6 }
  0x5d   : > { %292 = vst [vmem:[%s1079_s27 + $0x238] sm:$0xff] %v291_v7 }
  0x5e   : > { %294 = vst [vmem:[%s1079_s27 + $0x240] sm:$0xff] %v293_v8 }
  0x5f   : > { %296 = vst [vmem:[%s1079_s27 + $0x248] sm:$0xff] %v295_v9 }
  0x60   : > { %298 = vst [vmem:[%s1079_s27 + $0x250] sm:$0xff] %v297_v10 }
  0x61   : > { %300 = vst [vmem:[%s1079_s27 + $0x258] sm:$0xff] %v299_v11 }
  0x62   : > { %302 = vst [vmem:[%s1079_s27 + $0x260] sm:$0xff] %v301_v12 }
  0x63   : > { %304 = vst [vmem:[%s1079_s27 + $0x268] sm:$0xff] %v303_v13 }
  0x64   : > { %306 = vst [vmem:[%s1079_s27 + $0x270] sm:$0xff] %v305_v14 }
  0x65   : > { %308 = vst [vmem:[%s1079_s27 + $0x278] sm:$0xff] %v307_v15 }
  0x66   : > { %310 = vst [vmem:[%s1079_s27 + $0x280] sm:$0xff] %v309_v16 }
  0x67   : > { %312 = vst [vmem:[%s1079_s27 + $0x288] sm:$0xff] %v311_v17 }
  0x68   : > { %314 = vst [vmem:[%s1079_s27 + $0x290] sm:$0xff] %v313_v18 }
  0x69   : > { %316 = vst [vmem:[%s1079_s27 + $0x298] sm:$0xff] %v315_v19 }
  0x6a   : > { %318 = vst [vmem:[%s1079_s27 + $0x2a0] sm:$0xff] %v317_v20 }
  0x6b   : > { %320 = vst [vmem:[%s1079_s27 + $0x2a8] sm:$0xff] %v319_v21 }
  0x6c   : > { %322 = vst [vmem:[%s1079_s27 + $0x2b0] sm:$0xff] %v321_v22 }
  0x6d   : > { %324 = vst [vmem:[%s1079_s27 + $0x2b8] sm:$0xff] %v323_v23 }
  0x6e   : > { %326 = vst [vmem:[%s1079_s27 + $0x2c0] sm:$0xff] %v325_v24 }
  0x6f   : > { %328 = vst [vmem:[%s1079_s27 + $0x2c8] sm:$0xff] %v327_v25 }
  0x70   : > { %330 = vst [vmem:[%s1079_s27 + $0x2d0] sm:$0xff] %v329_v26 }
  0x71   : > { %332 = vst [vmem:[%s1079_s27 + $0x2d8] sm:$0xff] %v331_v27 }
  0x72   : > { %334 = vst [vmem:[%s1079_s27 + $0x2e0] sm:$0xff] %v333_v28 }
  0x73   : > { %336 = vst [vmem:[%s1079_s27 + $0x2e8] sm:$0xff] %v335_v29 }
  0x74   : > { %338 = vst [vmem:[%s1079_s27 + $0x2f0] sm:$0xff] %v337_v30 }
  0x75   : > { %340 = vst [vmem:[%s1079_s27 + $0x2f8] sm:$0xff] %v339_v31 }
  0x76   : > { %342 = vst [vmem:[%s1079_s27 + $0x300] sm:$0xff] %v341_v32 }
  0x77   : > { %344 = vst [vmem:[%s1079_s27 + $0x308] sm:$0xff] %v343_v33 }
  0x78   : > { %346 = vst [vmem:[%s1079_s27 + $0x310] sm:$0xff] %v345_v34 }
  0x79   : > { %348 = vst [vmem:[%s1079_s27 + $0x318] sm:$0xff] %v347_v35 }
  0x7a   : > { %350 = vst [vmem:[%s1079_s27 + $0x320] sm:$0xff] %v349_v36 }
  0x7b   : > { %352 = vst [vmem:[%s1079_s27 + $0x328] sm:$0xff] %v351_v37 }
  0x7c   : > { %354 = vst [vmem:[%s1079_s27 + $0x330] sm:$0xff] %v353_v38 }
  0x7d   : > { %356 = vst [vmem:[%s1079_s27 + $0x338] sm:$0xff] %v355_v39 }
  0x7e   : > { %358 = vst [vmem:[%s1079_s27 + $0x340] sm:$0xff] %v357_v40 }
  0x7f   : > { %360 = vst [vmem:[%s1079_s27 + $0x348] sm:$0xff] %v359_v41 }
  0x80   : > { %362 = vst [vmem:[%s1079_s27 + $0x350] sm:$0xff] %v361_v42 }
  0x81   : > { %364 = vst [vmem:[%s1079_s27 + $0x358] sm:$0xff] %v363_v43 }
  0x82   : > { %366 = vst [vmem:[%s1079_s27 + $0x360] sm:$0xff] %v365_v44 }
  0x83   : > { %368 = vst [vmem:[%s1079_s27 + $0x368] sm:$0xff] %v367_v45 }
  0x84   : > { %370 = vst [vmem:[%s1079_s27 + $0x370] sm:$0xff] %v369_v46 }
  0x85   : > { %372 = vst [vmem:[%s1079_s27 + $0x378] sm:$0xff] %v371_v47 }
  0x86   : > { %374 = vst [vmem:[%s1079_s27 + $0x380] sm:$0xff] %v373_v48 }
  0x87   : > { %376 = vst [vmem:[%s1079_s27 + $0x388] sm:$0xff] %v375_v49 }
  0x88   : > { %378 = vst [vmem:[%s1079_s27 + $0x390] sm:$0xff] %v377_v50 }
  0x89   : > { %380 = vst [vmem:[%s1079_s27 + $0x398] sm:$0xff] %v379_v51 }
  0x8a   : > { %382 = vst [vmem:[%s1079_s27 + $0x3a0] sm:$0xff] %v381_v52 }
  0x8b   : > { %384 = vst [vmem:[%s1079_s27 + $0x3a8] sm:$0xff] %v383_v53 }
  0x8c   : > { %386 = vst [vmem:[%s1079_s27 + $0x3b0] sm:$0xff] %v385_v54 }
  0x8d   : > { %388 = vst [vmem:[%s1079_s27 + $0x3b8] sm:$0xff] %v387_v55 }
  0x8e   : > { %390 = vst [vmem:[%s1079_s27 + $0x3c0] sm:$0xff] %v389_v56 }
  0x8f   : > { %392 = vst [vmem:[%s1079_s27 + $0x3c8] sm:$0xff] %v391_v57 }
  0x90   : > { %394 = vst [vmem:[%s1079_s27 + $0x3d0] sm:$0xff] %v393_v58 }
  0x91   : > { %396 = vst [vmem:[%s1079_s27 + $0x3d8] sm:$0xff] %v395_v59 }
  0x92   : > { %398 = vst [vmem:[%s1079_s27 + $0x3e0] sm:$0xff] %v397_v60 }
  0x93   : > { %400 = vst [vmem:[%s1079_s27 + $0x3e8] sm:$0xff] %v399_v61 }
  0x94   : > { %402 = vst [vmem:[%s1079_s27 + $0x3f0] sm:$0xff] %v401_v62 }
  0x95   : > { %404 = vst [vmem:[%s1079_s27 + $0x3f8] sm:$0xff] %v403_v63 }
  0x96 PF: > { %p879_p7 = scmp.ge.s32.totalorder %s1000_s15, 1  ;;  %p409_p8 = scmp.lt.s32.totalorder %s1000_s15, 5 }
  0x98   : > { %p410_p9 = pnand %p879_p7, %p409_p8 }
  0x99   : > { %s416_s28 = sand.u32 (!%p410_p9), 1, %s976_s9   ;;  %p446_p10 = scmp.lt.s32.totalorder (!%p410_p9), %s988_s12, 1 }
  0x9a   : > { %413 = sbr.rel (%p410_p9) target bundleno = 362 (0x16a), region = 47  ;;  %s880_s29 = sshll.u32 (!%p410_p9), %s416_s28, 10 }
  0x9b   : > { %s1337_s30 = scalar_lea.vmem (!%p410_p9), [#allocation2], %s880_s29  ;;  %s883_s7 = sshll.u32 (!%p410_p9), %s984_s11, 2 }
  0x9c   : > { %p455_p11 = scmp.lt.s32.totalorder (!%p410_p9), %s883_s7, 7 }
  0x9f   : > { %v524_v0 = vld [vmem:[%s1337_s30 + $0x1e8] sm:$0xff]  ;;  %v523_v6 = vld [vmem:[%s1337_s30 + $0x1e0] sm:$0xff]  ;;  %s1534_s12 = smov (!%p446_p10, %s988_s12), 1  ;;  %v526_v60 = vld [vmem:[%s1337_s30 + $0x1f8] sm:$0xff]  ;;  %s1536_s7 = smov (!%p455_p11, %s883_s7), 7  ;;  %vm763_vm0 = vcmask 1043456  }
  0xa0   : > { %v588_v1 = vld [vmem:[%s1337_s30 + $0x3e8] sm:$0xff]  ;;  %637 = vmatpush.msra.mxu2 %v524_v0  ;;  %v587_v8 = vld [vmem:[%s1337_s30 + $0x3e0] sm:$0xff]  ;;  %597 = vmatpush.msra.mxu0 %v523_v6  ;;  %s889_s3 = sshll.u32 %s1534_s12, 3  ;;  %v590_v61 = vld [vmem:[%s1337_s30 + $0x3f8] sm:$0xff] }
  0xa1   : > { %v520_v2 = vld [vmem:[%s1337_s30 + $0x1c8] sm:$0xff]  ;;  %657 = vmatpush.msra.mxu3 %v588_v1  ;;  %617 = vmatpush.msra.mxu1 %v587_v8  ;;  %v519_v10 = vld [vmem:[%s1337_s30 + $0x1c0] sm:$0xff]  ;;  %v522_v0 = vld [vmem:[%s1337_s30 + $0x1d8] sm:$0xff]  ;;  %s450_s6 = scalar_lea.vmem %s1518_s0, %s889_s3  ;;  %s458_s8 = sadd.s32 %s889_s3, %s1536_s7 }
  0xa2   : > { %v584_v3 = vld [vmem:[%s1337_s30 + $0x3c8] sm:$0xff]  ;;  %638 = vmatpush.msra.mxu2 %v520_v2  ;;  %v583_v11 = vld [vmem:[%s1337_s30 + $0x3c0] sm:$0xff]  ;;  %598 = vmatpush.msra.mxu0 %v519_v10  ;;  %v586_v1 = vld [vmem:[%s1337_s30 + $0x3d8] sm:$0xff]  ;;  %s885_s9 = sshll.u32 %s458_s8, 2 }
  0xa3   : > { %v516_v4 = vld [vmem:[%s1337_s30 + $0x1a8] sm:$0xff]  ;;  %658 = vmatpush.msra.mxu3 %v584_v3  ;;  %v515_v12 = vld [vmem:[%s1337_s30 + $0x1a0] sm:$0xff]  ;;  %618 = vmatpush.msra.mxu1 %v583_v11  ;;  %v525_v6 = vld [vmem:[%s1337_s30 + $0x1f0] sm:$0xff]  ;;  %s460_s21 = scalar_lea.vmem %s1520_s2, %s885_s9 }
  0xa4   : > { %v580_v5 = vld [vmem:[%s1337_s30 + $0x3a8] sm:$0xff]  ;;  %639 = vmatpush.msra.mxu2 %v516_v4  ;;  %v579_v13 = vld [vmem:[%s1337_s30 + $0x3a0] sm:$0xff]  ;;  %599 = vmatpush.msra.mxu0 %v515_v12  ;;  %v518_v4 = vld [vmem:[%s1337_s30 + $0x1b8] sm:$0xff] }
  0xa5   : > { %v512_v7 = vld [vmem:[%s1337_s30 + $0x188] sm:$0xff]  ;;  %659 = vmatpush.msra.mxu3 %v580_v5  ;;  %v511_v16 = vld [vmem:[%s1337_s30 + $0x180] sm:$0xff]  ;;  %619 = vmatpush.msra.mxu1 %v579_v13  ;;  %v582_v5 = vld [vmem:[%s1337_s30 + $0x3b8] sm:$0xff] }
  0xa6   : > { %v576_v9 = vld [vmem:[%s1337_s30 + $0x388] sm:$0xff]  ;;  %640 = vmatpush.msra.mxu2 %v512_v7  ;;  %v575_v17 = vld [vmem:[%s1337_s30 + $0x380] sm:$0xff]  ;;  %600 = vmatpush.msra.mxu0 %v511_v16  ;;  %v589_v7 = vld [vmem:[%s1337_s30 + $0x3f0] sm:$0xff] }
  0xa7   : > { %v508_v14 = vld [vmem:[%s1337_s30 + $0x168] sm:$0xff]  ;;  %660 = vmatpush.msra.mxu3 %v576_v9  ;;  %v507_v20 = vld [vmem:[%s1337_s30 + $0x160] sm:$0xff]  ;;  %620 = vmatpush.msra.mxu1 %v575_v17  ;;  %v462_v8 = vld [vmem:[%s450_s6] sm:$0xff] }
  0xa8   : > { %v572_v15 = vld [vmem:[%s1337_s30 + $0x368] sm:$0xff]  ;;  %641 = vmatpush.msra.mxu2 %v508_v14  ;;  %v571_v21 = vld [vmem:[%s1337_s30 + $0x360] sm:$0xff]  ;;  %601 = vmatpush.msra.mxu0 %v507_v20  ;;  %v514_v9 = vld [vmem:[%s1337_s30 + $0x198] sm:$0xff]  ;;  %592 = vst [vmem:[#allocation1] ss:$2 sm:$0xff] %v462_v8 }
  0xa9   : > { %v504_v18 = vld [vmem:[%s1337_s30 + $0x148] sm:$0xff]  ;;  %661 = vmatpush.msra.mxu3 %v572_v15  ;;  %v503_v24 = vld [vmem:[%s1337_s30 + $0x140] sm:$0xff]  ;;  %621 = vmatpush.msra.mxu1 %v571_v21  ;;  %v578_v10 = vld [vmem:[%s1337_s30 + $0x398] sm:$0xff] }
  0xaa   : > { %v568_v19 = vld [vmem:[%s1337_s30 + $0x348] sm:$0xff]  ;;  %642 = vmatpush.msra.mxu2 %v504_v18  ;;  %v567_v25 = vld [vmem:[%s1337_s30 + $0x340] sm:$0xff]  ;;  %602 = vmatpush.msra.mxu0 %v503_v24  ;;  %v521_v11 = vld [vmem:[%s1337_s30 + $0x1d0] sm:$0xff] }
  0xab   : > { %v500_v22 = vld [vmem:[%s1337_s30 + $0x128] sm:$0xff]  ;;  %662 = vmatpush.msra.mxu3 %v568_v19  ;;  %v499_v28 = vld [vmem:[%s1337_s30 + $0x120] sm:$0xff]  ;;  %622 = vmatpush.msra.mxu1 %v567_v25  ;;  %v585_v12 = vld [vmem:[%s1337_s30 + $0x3d0] sm:$0xff] }
  0xac   : > { %v564_v23 = vld [vmem:[%s1337_s30 + $0x328] sm:$0xff]  ;;  %643 = vmatpush.msra.mxu2 %v500_v22  ;;  %v563_v29 = vld [vmem:[%s1337_s30 + $0x320] sm:$0xff]  ;;  %603 = vmatpush.msra.mxu0 %v499_v28  ;;  %v510_v13 = vld [vmem:[%s1337_s30 + $0x178] sm:$0xff] }
  0xad   : > { %v496_v26 = vld [vmem:[%s1337_s30 + $0x108] sm:$0xff]  ;;  %663 = vmatpush.msra.mxu3 %v564_v23  ;;  %v495_v32 = vld [vmem:[%s1337_s30 + $0x100] sm:$0xff]  ;;  %623 = vmatpush.msra.mxu1 %v563_v29  ;;  %v574_v14 = vld [vmem:[%s1337_s30 + $0x378] sm:$0xff] }
  0xae   : > { %v560_v27 = vld [vmem:[%s1337_s30 + $0x308] sm:$0xff]  ;;  %644 = vmatpush.msra.mxu2 %v496_v26  ;;  %v559_v33 = vld [vmem:[%s1337_s30 + $0x300] sm:$0xff]  ;;  %604 = vmatpush.msra.mxu0 %v495_v32  ;;  %v517_v15 = vld [vmem:[%s1337_s30 + $0x1b0] sm:$0xff] }
  0xaf   : > { %v492_v30 = vld [vmem:[%s1337_s30 + $0xe8] sm:$0xff]  ;;  %664 = vmatpush.msra.mxu3 %v560_v27  ;;  %v491_v36 = vld [vmem:[%s1337_s30 + $0xe0] sm:$0xff]  ;;  %624 = vmatpush.msra.mxu1 %v559_v33  ;;  %v581_v16 = vld [vmem:[%s1337_s30 + $0x3b0] sm:$0xff] }
  0xb0   : > { %v556_v31 = vld [vmem:[%s1337_s30 + $0x2e8] sm:$0xff]  ;;  %645 = vmatpush.msra.mxu2 %v492_v30  ;;  %v555_v37 = vld [vmem:[%s1337_s30 + $0x2e0] sm:$0xff]  ;;  %605 = vmatpush.msra.mxu0 %v491_v36  ;;  %v506_v17 = vld [vmem:[%s1337_s30 + $0x158] sm:$0xff] }
  0xb1   : > { %v488_v34 = vld [vmem:[%s1337_s30 + $0xc8] sm:$0xff]  ;;  %665 = vmatpush.msra.mxu3 %v556_v31  ;;  %v487_v40 = vld [vmem:[%s1337_s30 + $0xc0] sm:$0xff]  ;;  %625 = vmatpush.msra.mxu1 %v555_v37  ;;  %v570_v18 = vld [vmem:[%s1337_s30 + $0x358] sm:$0xff] }
  0xb2   : > { %v552_v35 = vld [vmem:[%s1337_s30 + $0x2c8] sm:$0xff]  ;;  %646 = vmatpush.msra.mxu2 %v488_v34  ;;  %v551_v41 = vld [vmem:[%s1337_s30 + $0x2c0] sm:$0xff]  ;;  %606 = vmatpush.msra.mxu0 %v487_v40  ;;  %v513_v19 = vld [vmem:[%s1337_s30 + $0x190] sm:$0xff] }
  0xb3   : > { %v484_v38 = vld [vmem:[%s1337_s30 + $0xa8] sm:$0xff]  ;;  %666 = vmatpush.msra.mxu3 %v552_v35  ;;  %v483_v44 = vld [vmem:[%s1337_s30 + $0xa0] sm:$0xff]  ;;  %626 = vmatpush.msra.mxu1 %v551_v41  ;;  %v577_v20 = vld [vmem:[%s1337_s30 + $0x390] sm:$0xff] }
  0xb4   : > { %v548_v39 = vld [vmem:[%s1337_s30 + $0x2a8] sm:$0xff]  ;;  %647 = vmatpush.msra.mxu2 %v484_v38  ;;  %v547_v45 = vld [vmem:[%s1337_s30 + $0x2a0] sm:$0xff]  ;;  %607 = vmatpush.msra.mxu0 %v483_v44  ;;  %v502_v21 = vld [vmem:[%s1337_s30 + $0x138] sm:$0xff] }
  0xb5   : > { %v480_v42 = vld [vmem:[%s1337_s30 + $0x88] sm:$0xff]  ;;  %667 = vmatpush.msra.mxu3 %v548_v39  ;;  %v479_v48 = vld [vmem:[%s1337_s30 + $0x80] sm:$0xff]  ;;  %627 = vmatpush.msra.mxu1 %v547_v45  ;;  %v566_v22 = vld [vmem:[%s1337_s30 + $0x338] sm:$0xff] }
  0xb6   : > { %v544_v43 = vld [vmem:[%s1337_s30 + $0x288] sm:$0xff]  ;;  %648 = vmatpush.msra.mxu2 %v480_v42  ;;  %v543_v49 = vld [vmem:[%s1337_s30 + $0x280] sm:$0xff]  ;;  %608 = vmatpush.msra.mxu0 %v479_v48  ;;  %v509_v23 = vld [vmem:[%s1337_s30 + $0x170] sm:$0xff] }
  0xb7   : > { %v476_v46 = vld [vmem:[%s1337_s30 + $0x68] sm:$0xff]  ;;  %668 = vmatpush.msra.mxu3 %v544_v43  ;;  %v475_v52 = vld [vmem:[%s1337_s30 + $0x60] sm:$0xff]  ;;  %628 = vmatpush.msra.mxu1 %v543_v49  ;;  %v573_v24 = vld [vmem:[%s1337_s30 + $0x370] sm:$0xff] }
  0xb8   : > { %v540_v47 = vld [vmem:[%s1337_s30 + $0x268] sm:$0xff]  ;;  %649 = vmatpush.msra.mxu2 %v476_v46  ;;  %v539_v53 = vld [vmem:[%s1337_s30 + $0x260] sm:$0xff]  ;;  %609 = vmatpush.msra.mxu0 %v475_v52  ;;  %v498_v25 = vld [vmem:[%s1337_s30 + $0x118] sm:$0xff] }
  0xb9   : > { %v472_v50 = vld [vmem:[%s1337_s30 + $0x48] sm:$0xff]  ;;  %669 = vmatpush.msra.mxu3 %v540_v47  ;;  %v471_v56 = vld [vmem:[%s1337_s30 + $0x40] sm:$0xff]  ;;  %629 = vmatpush.msra.mxu1 %v539_v53  ;;  %v562_v26 = vld [vmem:[%s1337_s30 + $0x318] sm:$0xff] }
  0xba   : > { %v536_v51 = vld [vmem:[%s1337_s30 + $0x248] sm:$0xff]  ;;  %650 = vmatpush.msra.mxu2 %v472_v50  ;;  %v535_v57 = vld [vmem:[%s1337_s30 + $0x240] sm:$0xff]  ;;  %610 = vmatpush.msra.mxu0 %v471_v56  ;;  %v505_v27 = vld [vmem:[%s1337_s30 + $0x150] sm:$0xff] }
  0xbb   : > { %v468_v54 = vld [vmem:[%s1337_s30 + $0x28] sm:$0xff]  ;;  %670 = vmatpush.msra.mxu3 %v536_v51  ;;  %630 = vmatpush.msra.mxu1 %v535_v57  ;;  %v467_v62 = vld [vmem:[%s1337_s30 + $0x20] sm:$0xff]  ;;  %v569_v28 = vld [vmem:[%s1337_s30 + $0x350] sm:$0xff] }
  0xbc   : > { %v532_v55 = vld [vmem:[%s1337_s30 + $0x228] sm:$0xff]  ;;  %651 = vmatpush.msra.mxu2 %v468_v54  ;;  %v531_v63 = vld [vmem:[%s1337_s30 + $0x220] sm:$0xff]  ;;  %611 = vmatpush.msra.mxu0 %v467_v62  ;;  %v494_v29 = vld [vmem:[%s1337_s30 + $0xf8] sm:$0xff] }
  0xbd   : > { %v464_v58 = vld [vmem:[%s1337_s30 + $0x8] sm:$0xff]  ;;  %671 = vmatpush.msra.mxu3 %v532_v55  ;;  %v463_v2 = vld [vmem:[%s1337_s30] sm:$0xff]  ;;  %631 = vmatpush.msra.mxu1 %v531_v63  ;;  %v558_v30 = vld [vmem:[%s1337_s30 + $0x2f8] sm:$0xff] }
  0xbe   : > { %v528_v59 = vld [vmem:[%s1337_s30 + $0x208] sm:$0xff]  ;;  %652 = vmatpush.msra.mxu2 %v464_v58  ;;  %v527_v3 = vld [vmem:[%s1337_s30 + $0x200] sm:$0xff]  ;;  %612 = vmatpush.msra.mxu0 %v463_v2  ;;  %v501_v31 = vld [vmem:[%s1337_s30 + $0x130] sm:$0xff] }
  0xbf   : > { %672 = vmatpush.msra.mxu3 %v528_v59  ;;  %632 = vmatpush.msra.mxu1 %v527_v3  ;;  %v565_v32 = vld [vmem:[%s1337_s30 + $0x330] sm:$0xff]  ;;  %v490_v33 = vld [vmem:[%s1337_s30 + $0xd8] sm:$0xff]  ;;  %v1455_v40 = vld.sshfl [vmem:[#allocation1 + $0x8] sm:$0xff pattern:$0x75316420] }
  0xc0   : > { %717 = vmatpush.msrb.mxu2 %v526_v60  ;;  %677 = vmatpush.msrb.mxu0 %v525_v6  ;;  %v554_v34 = vld [vmem:[%s1337_s30 + $0x2d8] sm:$0xff]  ;;  %v497_v35 = vld [vmem:[%s1337_s30 + $0x110] sm:$0xff] }
  0xc1   : > { %737 = vmatpush.msrb.mxu3 %v590_v61  ;;  %697 = vmatpush.msrb.mxu1 %v589_v7  ;;  %v561_v36 = vld [vmem:[%s1337_s30 + $0x310] sm:$0xff]  ;;  %v486_v37 = vld [vmem:[%s1337_s30 + $0xb8] sm:$0xff] }
  0xc2   : > { %718 = vmatpush.msrb.mxu2 %v522_v0  ;;  %678 = vmatpush.msrb.mxu0 %v521_v11  ;;  %v550_v38 = vld [vmem:[%s1337_s30 + $0x2b8] sm:$0xff]  ;;  %v493_v43 = vld [vmem:[%s1337_s30 + $0xf0] sm:$0xff] }
  0xc3   : > { %738 = vmatpush.msrb.mxu3 %v586_v1  ;;  %698 = vmatpush.msrb.mxu1 %v585_v12  ;;  %v1453_v39 = vld.sshfl [vmem:[#allocation1] sm:$0xff pattern:$0x75316420]  ;;  %v557_v44 = vld [vmem:[%s1337_s30 + $0x2f0] sm:$0xff] }
  0xc4   : > { %719 = vmatpush.msrb.mxu2 %v518_v4  ;;  %679 = vmatpush.msrb.mxu0 %v517_v15  ;;  %v482_v41 = vld [vmem:[%s1337_s30 + $0x98] sm:$0xff]  ;;  %v489_v47 = vld [vmem:[%s1337_s30 + $0xd0] sm:$0xff] }
  0xc5   : > { %739 = vmatpush.msrb.mxu3 %v582_v5  ;;  %699 = vmatpush.msrb.mxu1 %v581_v16  ;;  %v546_v42 = vld [vmem:[%s1337_s30 + $0x298] sm:$0xff]  ;;  %v553_v48 = vld [vmem:[%s1337_s30 + $0x2d0] sm:$0xff] }
  0xc6   : > { %720 = vmatpush.msrb.mxu2 %v514_v9  ;;  %680 = vmatpush.msrb.mxu0 %v513_v19  ;;  %v478_v45 = vld [vmem:[%s1337_s30 + $0x78] sm:$0xff]  ;;  %v485_v51 = vld [vmem:[%s1337_s30 + $0xb0] sm:$0xff] }
  0xc7   : > { %740 = vmatpush.msrb.mxu3 %v578_v10  ;;  %700 = vmatpush.msrb.mxu1 %v577_v20  ;;  %v542_v46 = vld [vmem:[%s1337_s30 + $0x278] sm:$0xff]  ;;  %v549_v52 = vld [vmem:[%s1337_s30 + $0x2b0] sm:$0xff] }
  0xc8   : > { %721 = vmatpush.msrb.mxu2 %v510_v13  ;;  %681 = vmatpush.msrb.mxu0 %v509_v23  ;;  %v474_v49 = vld [vmem:[%s1337_s30 + $0x58] sm:$0xff]  ;;  %v481_v55 = vld [vmem:[%s1337_s30 + $0x90] sm:$0xff] }
  0xc9   : > { %741 = vmatpush.msrb.mxu3 %v574_v14  ;;  %701 = vmatpush.msrb.mxu1 %v573_v24  ;;  %v538_v50 = vld [vmem:[%s1337_s30 + $0x258] sm:$0xff]  ;;  %v545_v56 = vld [vmem:[%s1337_s30 + $0x290] sm:$0xff] }
  0xca   : > { %722 = vmatpush.msrb.mxu2 %v506_v17  ;;  %682 = vmatpush.msrb.mxu0 %v505_v27  ;;  %v470_v53 = vld [vmem:[%s1337_s30 + $0x38] sm:$0xff]  ;;  %v477_v59 = vld [vmem:[%s1337_s30 + $0x70] sm:$0xff] }
  0xcb   : > { %742 = vmatpush.msrb.mxu3 %v570_v18  ;;  %702 = vmatpush.msrb.mxu1 %v569_v28  ;;  %v534_v54 = vld [vmem:[%s1337_s30 + $0x238] sm:$0xff]  ;;  %v541_v60 = vld [vmem:[%s1337_s30 + $0x270] sm:$0xff] }
  0xcc   : > { %723 = vmatpush.msrb.mxu2 %v502_v21  ;;  %683 = vmatpush.msrb.mxu0 %v501_v31  ;;  %v466_v57 = vld [vmem:[%s1337_s30 + $0x18] sm:$0xff]  ;;  %v473_v61 = vld [vmem:[%s1337_s30 + $0x50] sm:$0xff] }
  0xcd   : > { %743 = vmatpush.msrb.mxu3 %v566_v22  ;;  %703 = vmatpush.msrb.mxu1 %v565_v32  ;;  %v530_v58 = vld [vmem:[%s1337_s30 + $0x218] sm:$0xff]  ;;  %v537_v62 = vld [vmem:[%s1337_s30 + $0x250] sm:$0xff] }
  0xce   : > { %724 = vmatpush.msrb.mxu2 %v498_v25  ;;  %684 = vmatpush.msrb.mxu0 %v497_v35  ;;  %v469_v63 = vld [vmem:[%s1337_s30 + $0x30] sm:$0xff] }
  0xcf   : > { %744 = vmatpush.msrb.mxu3 %v562_v26  ;;  %704 = vmatpush.msrb.mxu1 %v561_v36  ;;  %v533_v0 = vld [vmem:[%s1337_s30 + $0x230] sm:$0xff] }
  0xd0   : > { %725 = vmatpush.msrb.mxu2 %v494_v29  ;;  %673 = vmatmul.f32.vlgmr.msra.gmra.mxu3 %v1455_v40  ;;  %v465_v1 = vld [vmem:[%s1337_s30 + $0x10] sm:$0xff] }
  0xd1   : > { %745 = vmatpush.msrb.mxu3 %v558_v30  ;;  %653 = vmatmul.f32.vlgmr.msra.gmra.mxu2 %v1453_v39  ;;  %v529_v2 = vld [vmem:[%s1337_s30 + $0x210] sm:$0xff] }
  0xd2   : > { %726 = vmatpush.msrb.mxu2 %v490_v33  ;;  %685 = vmatpush.msrb.mxu0 %v493_v43 }
  0xd3   : > { %746 = vmatpush.msrb.mxu3 %v554_v34  ;;  %705 = vmatpush.msrb.mxu1 %v557_v44 }
  0xd4   : > { %727 = vmatpush.msrb.mxu2 %v486_v37  ;;  %686 = vmatpush.msrb.mxu0 %v489_v47 }
  0xd5   : > { %747 = vmatpush.msrb.mxu3 %v550_v38  ;;  %706 = vmatpush.msrb.mxu1 %v553_v48 }
  0xd6   : > { %728 = vmatpush.msrb.mxu2 %v482_v41  ;;  %687 = vmatpush.msrb.mxu0 %v485_v51 }
  0xd7   : > { %748 = vmatpush.msrb.mxu3 %v546_v42  ;;  %707 = vmatpush.msrb.mxu1 %v549_v52 }
  0xd8   : > { %729 = vmatpush.msrb.mxu2 %v478_v45  ;;  %688 = vmatpush.msrb.mxu0 %v481_v55 }
  0xd9   : > { %749 = vmatpush.msrb.mxu3 %v542_v46  ;;  %708 = vmatpush.msrb.mxu1 %v545_v56 }
  0xda   : > { %730 = vmatpush.msrb.mxu2 %v474_v49  ;;  %613 = vmatmul.f32.vlgmr.msra.gmra.mxu0 %v1453_v39 }
  0xdb   : > { %750 = vmatpush.msrb.mxu3 %v538_v50  ;;  %633 = vmatmul.f32.vlgmr.msra.gmra.mxu1 %v1455_v40 }
  0xdc   : > { %731 = vmatpush.msrb.mxu2 %v470_v53  ;;  %689 = vmatpush.msrb.mxu0 %v477_v59 }
  0xdd   : > { %751 = vmatpush.msrb.mxu3 %v534_v54  ;;  %709 = vmatpush.msrb.mxu1 %v541_v60 }
  0xde   : > { %732 = vmatpush.msrb.mxu2 %v466_v57  ;;  %690 = vmatpush.msrb.mxu0 %v473_v61 }
  0xdf   : > { %752 = vmatpush.msrb.mxu3 %v530_v58  ;;  %733 = vmatmul.f32.vlgmr.msrb.gmra.mxu2 %v1453_v39 }
  0xe0   : > { %753 = vmatmul.f32.vlgmr.msrb.gmra.mxu3 %v1455_v40  ;;  %710 = vmatpush.msrb.mxu1 %v537_v62 }
  0xe1   : > { %691 = vmatpush.msrb.mxu0 %v469_v63 }
  0xe2   : > { %711 = vmatpush.msrb.mxu1 %v533_v0 }
  0xe3   : > { %692 = vmatpush.msrb.mxu0 %v465_v1 }
  0xe4   : > { %712 = vmatpush.msrb.mxu1 %v529_v2  ;;  %693 = vmatmul.f32.vlgmr.msrb.gmra.mxu0 %v1453_v39 }
  0xe5   : > { %713 = vmatmul.f32.vlgmr.msrb.gmra.mxu1 %v1455_v40 }
 0x153   : > { %v674_v4 = vpop.f32.mrf.mxu3 }
 0x154   : > { %v654_v3 = vpop.f32.mrf.mxu2 }
 0x155   : > { %v675_v5 = vadd.f32 %v674_v4, %v654_v3 }
 0x157   : > { %v761_v6 = vrot.slane %v675_v5, 4  ;;  %v614_v7 = vpop.f32.mrf.mxu0 }
 0x158   : > { %v634_v8 = vpop.f32.mrf.mxu1 }
 0x159   : > { %v635_v9 = vadd.f32 %v634_v8, %v614_v7 }
 0x15b   : > { %v764_v10 = vsel %vm763_vm0, %v635_v9, %v761_v6 }
 0x15c   : > { %768 = vst [vmem:[%s460_s21] sm:$0xff] %v764_v10 }
 0x161   : > { %v694_v14 = vpop.f32.mrf.mxu0 }
 0x162   : > { %v734_v11 = vpop.f32.mrf.mxu2  ;;  %v714_v15 = vpop.f32.mrf.mxu1 }
 0x163   : > { %v754_v12 = vpop.f32.mrf.mxu3  ;;  %v715_v17 = vadd.f32 %v714_v15, %v694_v14 }
 0x164   : > { %v755_v13 = vadd.f32 %v754_v12, %v734_v11 }
 0x166   : > { %v762_v16 = vrot.slane %v755_v13, 4 }
 0x168   : > { %v765_v18 = vsel %vm763_vm0, %v715_v17, %v762_v16 }
 0x169   : > { %769 = vst [vmem:[%s460_s21 + $0x8] sm:$0xff] %v765_v18 }
 0x16a PF: > { %s12_s15 = sadd.s32 1, %s1000_s15   ;;  %s1521_s9 = smov %s980_s10 }
 0x16b   : > { %p9_p12 = scmp.ge.s32.totalorder %s12_s15, 6   ;;  %s1522_s10 = smov %s1066_s20 }
 0x16c   : > { %s1523_s11 = smov %s992_s13  ;;  %s1524_s12 = smov %s996_s14 }
 0x16d   : > { %s1525_s13 = smov %s1528_s16  ;;  %s1526_s14 = smov %s1532_s17 }
 0x16e   :  { %11 = sbr.rel (!%p9_p12) target bundleno = 4 (0x4), region = 89 }

// kernel: edg_forward.18
= control target key start
LH: loop header
LB: loop body
LE: loop exit
PB: predicated region body
PF: predicated region fallthrough
CT: control target
= control target key end

     0   :  { %s720_s15 = smov 0   ;;  %s722_s16 = smov 0   ;;  %s843_s0 = inlined_call_operand.vmem [shape: bf16[4,36], index: 0, kind: input, shape index: {}]   ;;  %s844_s1 = inlined_call_operand.vmem [shape: bf16[2,36,1024], index: 1, kind: input, shape index: {}]   ;;  %s845_s2 = inlined_call_operand.vmem [shape: f32[4,1], index: 2, kind: input, shape index: {}]   ;;  %s846_s3 = inlined_call_operand.vmem [shape: f32[4,1], index: 3, kind: input, shape index: {}]   ;;  %s847_s4 = inlined_call_operand.vmem [shape: f32[2,4,1024], index: 4, kind: output, shape index: {}]  }
   0x1   :  { %s724_s17 = smov 0   ;;  %s726_s18 = smov 0  }
   0x2   :  { %s728_s19 = smov 0   ;;  %s730_s20 = smov 0  }
   0x3   :  { %s732_s21 = smov 0  }
   0x4 LB: > { %s23_s22 = sadd.s32 1, %s684_s19  ;;  %s26_s23 = sadd.s32 1, %s688_s20  ;;  %s692_s21 = sphi %s732_s21, %s14_s21   ;;  %s688_s20 = sphi %s730_s20, %s853_s20   ;;  %s684_s19 = sphi %s728_s19, %s852_s19   ;;  %s680_s18 = sphi %s726_s18, %s851_s18   ;;  %s676_s17 = sphi %s724_s17, %s850_s17   ;;  %s672_s16 = sphi %s722_s16, %s849_s16   ;;  %s668_s15 = sphi %s720_s15, %s848_s15  }
   0x5   : > { %p24_p0 = scmp.ge.s32.totalorder %s23_s22, 2  ;;  %p63_p1 = scmp.ne.s32.totalorder %s672_s16, %s668_s15 }
   0x6   : > { %p64_p2 = scmp.eq.s32.totalorder %s692_s21, 0  ;;  %s56_s27 = sadd.s32 1, %s672_s16 }
   0x7   : > { %s855_s22 = smov (%p24_p0, %s23_s22), 0  ;;  %s857_s23 = smov (!%p24_p0, %s26_s23), %s688_s20 }
   0x8   : > { %p65_p3 = por %p64_p2, %p63_p1  ;;  %p28_p4 = scmp.ge.s32.totalorder %s857_s23, 2 }
   0x9   : > { %s52_s24 = ssub.s32 %s684_s19, %s855_s22  ;;  %p524_p6 = scmp.ge.s32.totalorder %s692_s21, 4 }
   0xa   : > { %s859_s23 = smov (%p28_p4, %s857_s23), 0 }
   0xb   : > { %s51_s25 = ssub.s32 %s688_s20, %s859_s23  ;;  %168 = sbr.rel (%p524_p6) target bundleno = 34 (0x22), region = 28 }
   0xc   : > { %s53_s26 = sor.u32 %s52_s24, %s51_s25 }
   0xd   : > { %p54_p5 = scmp.eq.s32.totalorder %s53_s26, 0 }
   0xf   : > { %s771_s28 = scalar_select %p54_p5, %s672_s16, %s56_s27  }
  0x10   : > { %171 = sbr.rel (!%p65_p3) target bundleno = 34 (0x22), region = 32  ;;  %s173_s29 = sand.u32 (%p65_p3), 1, %s672_s16  }
  0x11   : > { %s577_s30 = smul.u32 (%p65_p3), 80, %s173_s29  ;;  %s525_s5 = sshll.u32 (%p65_p3), %s684_s19, 2 }
  0x12   : > { %s578_s6 = smul.u32 (%p65_p3), 40, %s688_s20 }
  0x13   : > { %s175_s12 = scalar_lea.vmem (%p65_p3), [#allocation2], %s577_s30 }
  0x14   : > { %s178_s7 = sadd.s32 (%p65_p3), %s578_s6, %s525_s5 }
  0x15   : > { %s526_s8 = sshll.u32 %s178_s7, 2 }
  0x16   : > { %s180_s11 = scalar_lea.vmem %s844_s1, %s526_s8 }
  0x17   : > { %v193_v0 = vld [vmem:[%s180_s11] sm:$0xff]  ;;  %v195_v1 = vld [vmem:[%s180_s11 + $0x8] sm:$0xff] }
  0x18   : > { %v197_v2 = vld [vmem:[%s180_s11 + $0x20] sm:$0xff]  ;;  %194 = vst [vmem:[%s175_s12] sm:$0xff] %v193_v0  ;;  %v199_v3 = vld [vmem:[%s180_s11 + $0x28] sm:$0xff] }
  0x19   : > { %196 = vst [vmem:[%s175_s12 + $0x8] sm:$0xff] %v195_v1  ;;  %v201_v4 = vld [vmem:[%s180_s11 + $0x40] sm:$0xff]  ;;  %v203_v5 = vld [vmem:[%s180_s11 + $0x48] sm:$0xff] }
  0x1a   : > { %198 = vst [vmem:[%s175_s12 + $0x10] sm:$0xff] %v197_v2  ;;  %v205_v6 = vld [vmem:[%s180_s11 + $0x60] sm:$0xff]  ;;  %v207_v7 = vld [vmem:[%s180_s11 + $0x68] sm:$0xff] }
  0x1b   : > { %200 = vst [vmem:[%s175_s12 + $0x18] sm:$0xff] %v199_v3  ;;  %v209_v8 = vld [vmem:[%s180_s11 + $0x80] sm:$0xff]  ;;  %v211_v9 = vld [vmem:[%s180_s11 + $0x88] sm:$0xff] }
  0x1c   : > { %202 = vst [vmem:[%s175_s12 + $0x20] sm:$0xff] %v201_v4 }
  0x1d   : > { %204 = vst [vmem:[%s175_s12 + $0x28] sm:$0xff] %v203_v5 }
  0x1e   : > { %206 = vst [vmem:[%s175_s12 + $0x30] sm:$0xff] %v205_v6 }
  0x1f   : > { %208 = vst [vmem:[%s175_s12 + $0x38] sm:$0xff] %v207_v7 }
  0x20   : > { %210 = vst [vmem:[%s175_s12 + $0x40] sm:$0xff] %v209_v8 }
  0x21   : > { %212 = vst [vmem:[%s175_s12 + $0x48] sm:$0xff] %v211_v9 }
  0x22 PF: > { %p527_p7 = scmp.ge.s32.totalorder %s692_s21, 1  ;;  %p217_p8 = scmp.lt.s32.totalorder %s692_s21, 5 }
  0x24   : > { %p218_p9 = pnand %p527_p7, %p217_p8 }
  0x25   : > { %s224_s13 = sand.u32 (!%p218_p9), 1, %s668_s15   ;;  %s528_s5 = sshll.u32 (!%p218_p9), %s676_s17, 2 }
  0x26   : > { %221 = sbr.rel (%p218_p9) target bundleno = 202 (0xca), region = 55  ;;  %p255_p10 = scmp.lt.s32.totalorder (!%p218_p9), %s680_s18, 1 }
  0x27   : > { %s579_s14 = smul.u32 (!%p218_p9), 80, %s224_s13  ;;  %p257_p11 = scmp.lt.s32.totalorder (!%p218_p9), %s528_s5, 7 }
  0x29   : > { %s786_s26 = scalar_lea.vmem (!%p218_p9), [#allocation2], %s579_s14 }
  0x2b   : > { %v694_v10 = vmov 0   ;;  %v395_v11 = vld [vmem:[%s845_s2] sm:$0xf]  ;;  %v275_v13 = vld [vmem:[%s786_s26 + $0x48] sm:$0x33]  ;;  %vm330_vm0 = vcmask 1041408  }
  0x2c   : > { %637 = vset.pattern.permute.xlu0 %v694_v10  ;;  %v274_v12 = vld [vmem:[%s786_s26 + $0x40] sm:$0x33]  ;;  %v304_v16 = vunpack.c.l.b16 %v275_v13  ;;  %v305_v17 = vunpack.c.h.b16 %v275_v13  ;;  %v575_v19 = vld [vmem:[%s786_s26 + $0x2c] sm:$0xf0]  ;;  %v551_v25 = vld [vmem:[%s786_s26 + $0x30] sm:$0xf0] }
  0x2d   : > { %398 = vperm.xlu0 %637, %v395_v11   ;;  %v302_v14 = vunpack.c.l.b16 %v274_v12  ;;  %v303_v15 = vunpack.c.h.b16 %v274_v12  ;;  %v549_v18 = vld [vmem:[%s786_s26 + $0x20] sm:$0xf]  ;;  %v573_v24 = vld [vmem:[%s786_s26 + $0x24] sm:$0xf]  ;;  %v557_v26 = vld [vmem:[%s786_s26 + $0x28] sm:$0xf] }
  0x2e   : > { %v316_v22 = vpack.c.b16 %v304_v16, %v304_v16  ;;  %v317_v23 = vpack.c.b16 %v305_v17, %v305_v17  ;;  %v576_v27 = vld [vmem:[%s786_s26 + $0x34] sm:$0xf0]  ;;  %v574_v28 = vld [vmem:[%s786_s26 + $0x2c] sm:$0xf]  ;;  %v559_v29 = vld [vmem:[%s786_s26 + $0x38] sm:$0xf0]  ;;  %v550_v35 = vor.u32 %v575_v19, %v549_v18  ;;  %v554_v36 = vor.u32 %v573_v24, %v551_v25 }
  0x2f   : > { %v314_v20 = vpack.c.b16 %v302_v14, %v302_v14  ;;  %v315_v21 = vpack.c.b16 %v303_v15, %v303_v15  ;;  %v405_v34 = vld [vmem:[%s846_s3] sm:$0xf]  ;;  %v558_v39 = vor.u32 %v576_v27, %v557_v26  ;;  %v562_v40 = vor.u32 %v574_v28, %v559_v29  ;;  %v569_v41 = vld [vmem:[%s786_s26 + $0x4] sm:$0xf]  ;;  %v535_v42 = vld [vmem:[%s786_s26 + $0x10] sm:$0xf0] }
  0x30   : > { %v338_v32 = vsel %vm330_vm0, %v316_v22, 0  ;;  %v341_v33 = vsel %vm330_vm0, %v317_v23, 0  ;;  %v533_v37 = vld [vmem:[%s786_s26] sm:$0xf]  ;;  %v571_v38 = vld [vmem:[%s786_s26 + $0xc] sm:$0xf0]  ;;  %v538_v48 = vor.u32 %v569_v41, %v535_v42 }
  0x31   : > { %v332_v30 = vsel %vm330_vm0, %v314_v20, 0  ;;  %v335_v31 = vsel %vm330_vm0, %v315_v21, 0  ;;  %374 = vmatpush.bf16.msra.mxu2 %v338_v32  ;;  %387 = vmatpush.bf16.msra.mxu3 %v341_v33  ;;  %v541_v43 = vld [vmem:[%s786_s26 + $0x8] sm:$0xf]  ;;  %v572_v44 = vld [vmem:[%s786_s26 + $0x14] sm:$0xf0]  ;;  %v534_v47 = vor.u32 %v571_v38, %v533_v37 }
  0x32   : > { %348 = vmatpush.bf16.msra.mxu0 %v332_v30  ;;  %361 = vmatpush.bf16.msra.mxu1 %v335_v31  ;;  %v570_v45 = vld [vmem:[%s786_s26 + $0xc] sm:$0xf]  ;;  %v543_v46 = vld [vmem:[%s786_s26 + $0x18] sm:$0xf0]  ;;  %v542_v49 = vor.u32 %v572_v44, %v541_v43  ;;  %v265_v51 = vld [vmem:[%s843_s0] sm:$0x3] }
  0x33   : > { %v546_v50 = vor.u32 %v570_v45, %v543_v46  ;;  %vm326_vm1 = vcmask 293888   ;;  %s861_s18 = smov (!%p255_p10, %s680_s18), 1  ;;  %s863_s5 = smov (!%p257_p11, %s528_s5), 7  ;;  %vm421_vm2 = vcmask 1043456  }
  0x34   : > { %s529_s6 = sshll.u32 %s861_s18, 3 }
  0x35   : > { %408 = vperm.xlu0 %637, %v405_v34   ;;  %375 = vmatpush.bf16.msra.mxu2 %v558_v39  ;;  %s260_s7 = sadd.s32 %s529_s6, %s863_s5 }
  0x36   : > { %349 = vmatpush.bf16.msra.mxu0 %v550_v35  ;;  %362 = vmatpush.bf16.msra.mxu1 %v554_v36  ;;  %s530_s8 = sshll.u32 %s260_s7, 2 }
  0x37   : > { %388 = vmatpush.bf16.msra.mxu3 %v562_v40  ;;  %s262_s17 = scalar_lea.vmem %s847_s4, %s530_s8 }
  0x39   : > { %376 = vmatpush.bf16.msra.mxu2 %v542_v49 }
  0x3a   : > { %350 = vmatpush.bf16.msra.mxu0 %v534_v47  ;;  %363 = vmatpush.bf16.msra.mxu1 %v538_v48 }
  0x3b   : > { %389 = vmatpush.bf16.msra.mxu3 %v546_v50 }
  0x3c   : > { %565 = vmatmul.msk.bf16.vlgmr.msra.gmra.mxu2 %vm326_vm1, %v265_v51 }
  0x3d   : > { %563 = vmatmul.msk.bf16.vlgmr.msra.gmra.mxu0 %vm326_vm1, %v265_v51  ;;  %564 = vmatmul.msk.bf16.vlgmr.msra.gmra.mxu1 %vm326_vm1, %v265_v51 }
  0x3e   : > { %566 = vmatmul.msk.bf16.vlgmr.msra.gmra.mxu3 %vm326_vm1, %v265_v51 }
  0x9f   : > { %v399_v52 = vpop.permute.xlu0 %398 }
  0xa7   : > { %v409_v57 = vpop.permute.xlu0 %408 }
  0xba   : > { %v352_v53 = vpop.f32.mrf.mxu0  ;;  %v365_v54 = vpop.f32.mrf.mxu1 }
  0xbb   : > { %v401_v55 = vmul.f32 %v399_v52, %v352_v53  ;;  %v402_v56 = vmul.f32 %v399_v52, %v365_v54 }
  0xbd   : > { %v412_v58 = vadd.f32 %v409_v57, %v402_v56  ;;  %v411_v59 = vadd.f32 %v409_v57, %v401_v55 }
  0xbf   : > { %v419_v60 = vrot.slane %v412_v58, 4  ;;  %v378_v62 = vpop.f32.mrf.mxu2 }
  0xc0   : > { %v403_v0 = vmul.f32 %v399_v52, %v378_v62 }
  0xc1   : > { %v422_v61 = vsel %vm421_vm2, %v411_v59, %v419_v60  ;;  %v391_v63 = vpop.f32.mrf.mxu3 }
  0xc2   : > { %426 = vst [vmem:[%s262_s17] sm:$0xff] %v422_v61  ;;  %v404_v1 = vmul.f32 %v399_v52, %v391_v63  ;;  %v354_v2 = vpop.f32.mrf.mxu0  ;;  %v367_v3 = vpop.f32.mrf.mxu1  ;;  %v413_v5 = vadd.f32 %v409_v57, %v403_v0 }
  0xc4   : > { %v414_v4 = vadd.f32 %v409_v57, %v404_v1 }
  0xc6   : > { %v420_v6 = vrot.slane %v414_v4, 4 }
  0xc7   : > { %v380_v8 = vpop.f32.mrf.mxu2 }
  0xc8   : > { %v423_v7 = vsel %vm421_vm2, %v413_v5, %v420_v6 }
  0xc9   : > { %427 = vst [vmem:[%s262_s17 + $0x8] sm:$0xff] %v423_v7  ;;  %v393_v9 = vpop.f32.mrf.mxu3 }
  0xca PF: > { %s14_s21 = sadd.s32 1, %s692_s21   ;;  %s848_s15 = smov %s672_s16 }
  0xcb   : > { %p11_p12 = scmp.ge.s32.totalorder %s14_s21, 6   ;;  %s849_s16 = smov %s771_s28 }
  0xcc   : > { %s850_s17 = smov %s684_s19  ;;  %s851_s18 = smov %s688_s20 }
  0xcd   : > { %s852_s19 = smov %s855_s22  ;;  %s853_s20 = smov %s859_s23 }
  0xce   :  { %13 = sbr.rel (!%p11_p12) target bundleno = 4 (0x4), region = 94 }

// kernel: edg_forward.24
= control target key start
LH: loop header
LB: loop body
LE: loop exit
PB: predicated region body
PF: predicated region fallthrough
CT: control target
= control target key end

     0   :  { %s1163_s15 = smov 0   ;;  %s1165_s16 = smov 0   ;;  %s1465_s0 = inlined_call_operand.vmem [shape: bf16[16,144], index: 0, kind: input, shape index: {}]   ;;  %s1466_s1 = inlined_call_operand.vmem [shape: bf16[2,144,1024], index: 1, kind: input, shape index: {}]   ;;  %s1467_s2 = inlined_call_operand.vmem [shape: f32[16,1], index: 2, kind: input, shape index: {}]   ;;  %s1468_s3 = inlined_call_operand.vmem [shape: f32[16,1], index: 3, kind: input, shape index: {}]   ;;  %s1469_s4 = inlined_call_operand.vmem [shape: f32[2,16,1024], index: 4, kind: output, shape index: {}]  }
   0x1   :  { %s1167_s17 = smov 0   ;;  %s1169_s18 = smov 0  }
   0x2   :  { %s1171_s19 = smov 0   ;;  %s1173_s20 = smov 0  }
   0x3   :  { %s1175_s21 = smov 0  }
   0x4 LB: > { %s23_s22 = sadd.s32 1, %s1127_s19  ;;  %s26_s23 = sadd.s32 1, %s1131_s20  ;;  %s1135_s21 = sphi %s1175_s21, %s14_s21   ;;  %s1131_s20 = sphi %s1173_s20, %s1476_s20   ;;  %s1127_s19 = sphi %s1171_s19, %s1475_s19   ;;  %s1123_s18 = sphi %s1169_s18, %s1474_s18   ;;  %s1119_s17 = sphi %s1167_s17, %s1473_s17   ;;  %s1115_s16 = sphi %s1165_s16, %s1472_s16   ;;  %s1111_s15 = sphi %s1163_s15, %s1471_s15  }
   0x5   : > { %p24_p0 = scmp.ge.s32.totalorder %s23_s22, 2  ;;  %s811_s24 = sadd.s32 4294967295, %s1135_s21  }
   0x6   : > { %p63_p1 = scmp.ne.s32.totalorder %s1115_s16, %s1111_s15  ;;  %p64_p2 = scmp.eq.s32.totalorder %s1135_s21, 0 }
   0x7   : > { %s1478_s22 = smov (%p24_p0, %s23_s22), 0  ;;  %s1480_s23 = smov (!%p24_p0, %s26_s23), %s1131_s20 }
   0x8   : > { %p28_p3 = scmp.ge.s32.totalorder %s1480_s23, 2  ;;  %p137_p4 = scmp.eq.s32.totalorder %s811_s24, 3 }
   0x9   : > { %s52_s25 = ssub.s32 %s1127_s19, %s1478_s22  ;;  %p65_p5 = por %p64_p2, %p63_p1 }
   0xa   : > { %s1482_s23 = smov (%p28_p3, %s1480_s23), 0  ;;  %p1211_p6 = por %p137_p4, %p63_p1 }
   0xb   : > { %s51_s27 = ssub.s32 %s1131_s20, %s1482_s23  ;;  %s56_s29 = sadd.s32 1, %s1115_s16 }
   0xc   : > { %s53_s28 = sor.u32 %s52_s25, %s51_s27  ;;  %p814_p8 = scmp.ge.s32.totalorder %s1135_s21, 4 }
   0xd   : > { %p54_p7 = scmp.eq.s32.totalorder %s53_s28, 0 }
   0xe   : > { %168 = sbr.rel (%p814_p8) target bundleno = 63 (0x3f), region = 28 }
   0xf   : > { %s1219_s30 = scalar_select %p54_p7, %s1115_s16, %s56_s29  }
  0x13   : > { %171 = sbr.rel (!%p65_p5) target bundleno = 63 (0x3f), region = 32  ;;  %s173_s5 = sand.u32 (%p65_p5), 1, %s1115_s16  }
  0x14   : > { %s1019_s6 = smul.u32 (%p65_p5), 288, %s173_s5  ;;  %s815_s7 = sshll.u32 (%p65_p5), %s1127_s19, 2 }
  0x15   : > { %s1020_s8 = smul.u32 (%p65_p5), 144, %s1131_s20 }
  0x16   : > { %s1233_s14 = scalar_lea.vmem (%p65_p5), [#allocation2], %s1019_s6 }
  0x17   : > { %s178_s9 = sadd.s32 (%p65_p5), %s1020_s8, %s815_s7 }
  0x18   : > { %s816_s10 = sshll.u32 %s178_s9, 2 }
  0x19   : > { %s1228_s13 = scalar_lea.vmem %s1466_s1, %s816_s10 }
  0x1a   : > { %v193_v0 = vld [vmem:[%s1228_s13] sm:$0xff]  ;;  %v195_v1 = vld [vmem:[%s1228_s13 + $0x8] sm:$0xff] }
  0x1b   : > { %v197_v2 = vld [vmem:[%s1228_s13 + $0x20] sm:$0xff]  ;;  %194 = vst [vmem:[%s1233_s14] sm:$0xff] %v193_v0  ;;  %v199_v3 = vld [vmem:[%s1228_s13 + $0x28] sm:$0xff] }
  0x1c   : > { %196 = vst [vmem:[%s1233_s14 + $0x8] sm:$0xff] %v195_v1  ;;  %v201_v4 = vld [vmem:[%s1228_s13 + $0x40] sm:$0xff]  ;;  %v203_v5 = vld [vmem:[%s1228_s13 + $0x48] sm:$0xff] }
  0x1d   : > { %198 = vst [vmem:[%s1233_s14 + $0x10] sm:$0xff] %v197_v2  ;;  %v205_v6 = vld [vmem:[%s1228_s13 + $0x60] sm:$0xff]  ;;  %v207_v7 = vld [vmem:[%s1228_s13 + $0x68] sm:$0xff] }
  0x1e   : > { %200 = vst [vmem:[%s1233_s14 + $0x18] sm:$0xff] %v199_v3  ;;  %v209_v8 = vld [vmem:[%s1228_s13 + $0x80] sm:$0xff]  ;;  %v211_v9 = vld [vmem:[%s1228_s13 + $0x88] sm:$0xff] }
  0x1f   : > { %202 = vst [vmem:[%s1233_s14 + $0x20] sm:$0xff] %v201_v4  ;;  %v213_v10 = vld [vmem:[%s1228_s13 + $0xa0] sm:$0xff]  ;;  %v215_v11 = vld [vmem:[%s1228_s13 + $0xa8] sm:$0xff] }
  0x20   : > { %204 = vst [vmem:[%s1233_s14 + $0x28] sm:$0xff] %v203_v5  ;;  %v217_v12 = vld [vmem:[%s1228_s13 + $0xc0] sm:$0xff]  ;;  %v219_v13 = vld [vmem:[%s1228_s13 + $0xc8] sm:$0xff] }
  0x21   : > { %206 = vst [vmem:[%s1233_s14 + $0x30] sm:$0xff] %v205_v6  ;;  %v221_v14 = vld [vmem:[%s1228_s13 + $0xe0] sm:$0xff]  ;;  %v223_v15 = vld [vmem:[%s1228_s13 + $0xe8] sm:$0xff] }
  0x22   : > { %208 = vst [vmem:[%s1233_s14 + $0x38] sm:$0xff] %v207_v7  ;;  %v225_v16 = vld [vmem:[%s1228_s13 + $0x100] sm:$0xff]  ;;  %v227_v17 = vld [vmem:[%s1228_s13 + $0x108] sm:$0xff] }
  0x23   : > { %210 = vst [vmem:[%s1233_s14 + $0x40] sm:$0xff] %v209_v8  ;;  %v229_v18 = vld [vmem:[%s1228_s13 + $0x120] sm:$0xff]  ;;  %v231_v19 = vld [vmem:[%s1228_s13 + $0x128] sm:$0xff] }
  0x24   : > { %212 = vst [vmem:[%s1233_s14 + $0x48] sm:$0xff] %v211_v9  ;;  %v233_v20 = vld [vmem:[%s1228_s13 + $0x140] sm:$0xff]  ;;  %v235_v21 = vld [vmem:[%s1228_s13 + $0x148] sm:$0xff] }
  0x25   : > { %214 = vst [vmem:[%s1233_s14 + $0x50] sm:$0xff] %v213_v10  ;;  %v237_v22 = vld [vmem:[%s1228_s13 + $0x160] sm:$0xff]  ;;  %v239_v23 = vld [vmem:[%s1228_s13 + $0x168] sm:$0xff] }
  0x26   : > { %216 = vst [vmem:[%s1233_s14 + $0x58] sm:$0xff] %v215_v11  ;;  %v241_v24 = vld [vmem:[%s1228_s13 + $0x180] sm:$0xff]  ;;  %v243_v25 = vld [vmem:[%s1228_s13 + $0x188] sm:$0xff] }
  0x27   : > { %218 = vst [vmem:[%s1233_s14 + $0x60] sm:$0xff] %v217_v12  ;;  %v245_v26 = vld [vmem:[%s1228_s13 + $0x1a0] sm:$0xff]  ;;  %v247_v27 = vld [vmem:[%s1228_s13 + $0x1a8] sm:$0xff] }
  0x28   : > { %220 = vst [vmem:[%s1233_s14 + $0x68] sm:$0xff] %v219_v13  ;;  %v249_v28 = vld [vmem:[%s1228_s13 + $0x1c0] sm:$0xff]  ;;  %v251_v29 = vld [vmem:[%s1228_s13 + $0x1c8] sm:$0xff] }
  0x29   : > { %222 = vst [vmem:[%s1233_s14 + $0x70] sm:$0xff] %v221_v14  ;;  %v253_v30 = vld [vmem:[%s1228_s13 + $0x1e0] sm:$0xff]  ;;  %v255_v31 = vld [vmem:[%s1228_s13 + $0x1e8] sm:$0xff] }
  0x2a   : > { %224 = vst [vmem:[%s1233_s14 + $0x78] sm:$0xff] %v223_v15  ;;  %v257_v32 = vld [vmem:[%s1228_s13 + $0x200] sm:$0xff]  ;;  %v259_v33 = vld [vmem:[%s1228_s13 + $0x208] sm:$0xff] }
  0x2b   : > { %226 = vst [vmem:[%s1233_s14 + $0x80] sm:$0xff] %v225_v16  ;;  %v261_v34 = vld [vmem:[%s1228_s13 + $0x220] sm:$0xff]  ;;  %v263_v35 = vld [vmem:[%s1228_s13 + $0x228] sm:$0xff] }
  0x2c   : > { %228 = vst [vmem:[%s1233_s14 + $0x88] sm:$0xff] %v227_v17 }
  0x2d   : > { %230 = vst [vmem:[%s1233_s14 + $0x90] sm:$0xff] %v229_v18 }
  0x2e   : > { %232 = vst [vmem:[%s1233_s14 + $0x98] sm:$0xff] %v231_v19 }
  0x2f   : > { %234 = vst [vmem:[%s1233_s14 + $0xa0] sm:$0xff] %v233_v20 }
  0x30   : > { %236 = vst [vmem:[%s1233_s14 + $0xa8] sm:$0xff] %v235_v21 }
  0x31   : > { %238 = vst [vmem:[%s1233_s14 + $0xb0] sm:$0xff] %v237_v22 }
  0x32   : > { %240 = vst [vmem:[%s1233_s14 + $0xb8] sm:$0xff] %v239_v23 }
  0x33   : > { %242 = vst [vmem:[%s1233_s14 + $0xc0] sm:$0xff] %v241_v24 }
  0x34   : > { %244 = vst [vmem:[%s1233_s14 + $0xc8] sm:$0xff] %v243_v25 }
  0x35   : > { %246 = vst [vmem:[%s1233_s14 + $0xd0] sm:$0xff] %v245_v26 }
  0x36   : > { %248 = vst [vmem:[%s1233_s14 + $0xd8] sm:$0xff] %v247_v27 }
  0x37   : > { %250 = vst [vmem:[%s1233_s14 + $0xe0] sm:$0xff] %v249_v28 }
  0x38   : > { %252 = vst [vmem:[%s1233_s14 + $0xe8] sm:$0xff] %v251_v29 }
  0x39   : > { %254 = vst [vmem:[%s1233_s14 + $0xf0] sm:$0xff] %v253_v30 }
  0x3a   : > { %256 = vst [vmem:[%s1233_s14 + $0xf8] sm:$0xff] %v255_v31 }
  0x3b   : > { %258 = vst [vmem:[%s1233_s14 + $0x100] sm:$0xff] %v257_v32 }
  0x3c   : > { %260 = vst [vmem:[%s1233_s14 + $0x108] sm:$0xff] %v259_v33 }
  0x3d   : > { %262 = vst [vmem:[%s1233_s14 + $0x110] sm:$0xff] %v261_v34 }
  0x3e   : > { %264 = vst [vmem:[%s1233_s14 + $0x118] sm:$0xff] %v263_v35 }
  0x3f PF: > { %p817_p9 = scmp.ge.s32.totalorder %s1135_s21, 1  ;;  %p269_p10 = scmp.lt.s32.totalorder %s1135_s21, 5 }
  0x41   : > { %p270_p11 = pnand %p817_p9, %p269_p10 }
  0x42   : > { %s276_s24 = sand.u32 (!%p270_p11), 1, %s1111_s15  }
  0x43   : > { %273 = sbr.rel (%p270_p11) target bundleno = 280 (0x118), region = 55  ;;  %s818_s5 = sshll.u32 (!%p270_p11), %s276_s24, 6 }
  0x44   : > { %s1021_s25 = smul.u32 (!%p270_p11), 288, %s276_s24 }
  0x46   : > { %s1315_s6 = scalar_lea.vmem (!%p270_p11), [#allocation2], %s1021_s25 }
  0x48   : > { %v981_v36 = vld [vmem:[%s1465_s0 + $0x4] sm:$0xf]  ;;  %v823_v37 = vld [vmem:[%s1465_s0 + $0x8] sm:$0xf0]  ;;  %vm530_vm0 = vcmask 130048   ;;  %s976_s15 = sshll.u32 (%p1211_p6), %s1119_s17, 2 }
  0x49   : > { %v941_v38 = vld [vmem:[%s1315_s6 + $0xe0] sm:$0xf]  ;;  %v1013_v39 = vld [vmem:[%s1315_s6 + $0xec] sm:$0xf0]  ;;  %v1011_v43 = vld [vmem:[%s1315_s6 + $0xe4] sm:$0xf]  ;;  %v1329_v54 = vor.u32 %v981_v36, %v823_v37 }
  0x4a   : > { %v957_v40 = vld [vmem:[%s1315_s6 + $0x100] sm:$0xf]  ;;  %v942_v41 = vor.u32 %v1013_v39, %v941_v38  ;;  %v1017_v42 = vld [vmem:[%s1315_s6 + $0x10c] sm:$0xf0]  ;;  %v943_v44 = vld [vmem:[%s1315_s6 + $0xf0] sm:$0xf0] }
  0x4b   : > { %v958_v45 = vor.u32 %v1017_v42, %v957_v40  ;;  %v946_v46 = vor.u32 %v1011_v43, %v943_v44  ;;  %v949_v47 = vld [vmem:[%s1315_s6 + $0xe8] sm:$0xf]  ;;  %v1014_v48 = vld [vmem:[%s1315_s6 + $0xf4] sm:$0xf0]  ;;  %v925_v49 = vld [vmem:[%s1315_s6 + $0xc0] sm:$0xf] }
  0x4c   : > { %534 = vmatpush.bf16.msra.mxu0 %v942_v41  ;;  %v950_v50 = vor.u32 %v1014_v48, %v949_v47  ;;  %v1009_v51 = vld [vmem:[%s1315_s6 + $0xcc] sm:$0xf0]  ;;  %v1007_v52 = vld [vmem:[%s1315_s6 + $0xc4] sm:$0xf]  ;;  %v927_v53 = vld [vmem:[%s1315_s6 + $0xd0] sm:$0xf0] }
  0x4d   : > { %555 = vmatpush.bf16.msra.mxu1 %v958_v45  ;;  %562 = vmatpush.bf16.msra.mxu2 %v946_v46  ;;  %v926_v55 = vor.u32 %v1009_v51, %v925_v49  ;;  %v930_v56 = vor.u32 %v1007_v52, %v927_v53  ;;  %v933_v57 = vld [vmem:[%s1315_s6 + $0xc8] sm:$0xf]  ;;  %v1010_v58 = vld [vmem:[%s1315_s6 + $0xd4] sm:$0xf0]  ;;  %v909_v62 = vld [vmem:[%s1315_s6 + $0xa0] sm:$0xf] }
  0x4e   : > { %v965_v59 = vld [vmem:[%s1315_s6 + $0x108] sm:$0xf]  ;;  %v934_v60 = vor.u32 %v1010_v58, %v933_v57  ;;  %v1018_v61 = vld [vmem:[%s1315_s6 + $0x114] sm:$0xf0]  ;;  %v1005_v63 = vld [vmem:[%s1315_s6 + $0xac] sm:$0xf0] }
  0x4f   : > { %v966_v0 = vor.u32 %v1018_v61, %v965_v59  ;;  %v1003_v1 = vld [vmem:[%s1315_s6 + $0xa4] sm:$0xf]  ;;  %v911_v2 = vld [vmem:[%s1315_s6 + $0xb0] sm:$0xf0]  ;;  %v1012_v3 = vld [vmem:[%s1315_s6 + $0xec] sm:$0xf]  ;;  %v910_v4 = vor.u32 %v1005_v63, %v909_v62 }
  0x50   : > { %535 = vmatpush.bf16.msra.mxu0 %v926_v55  ;;  %v951_v5 = vld [vmem:[%s1315_s6 + $0xf8] sm:$0xf0]  ;;  %v917_v6 = vld [vmem:[%s1315_s6 + $0xa8] sm:$0xf]  ;;  %v1006_v7 = vld [vmem:[%s1315_s6 + $0xb4] sm:$0xf0]  ;;  %971 = vmatmul.msk.bf16.vlgmr.msra.gmra.mxu1 %vm530_vm0, %v1329_v54  ;;  %v914_v8 = vor.u32 %v1003_v1, %v911_v2 }
  0x51   : > { %590 = vmatpush.bf16.msrb.mxu1 %v950_v50  ;;  %563 = vmatpush.bf16.msra.mxu2 %v930_v56  ;;  %v954_v9 = vor.u32 %v1012_v3, %v951_v5  ;;  %v893_v10 = vld [vmem:[%s1315_s6 + $0x80] sm:$0xf]  ;;  %v1001_v11 = vld [vmem:[%s1315_s6 + $0x8c] sm:$0xf0]  ;;  %v999_v12 = vld [vmem:[%s1315_s6 + $0x84] sm:$0xf]  ;;  %v918_v13 = vor.u32 %v1006_v7, %v917_v6 }
  0x52   : > { %611 = vmatpush.bf16.msra.mxu3 %v966_v0  ;;  %v895_v14 = vld [vmem:[%s1315_s6 + $0x90] sm:$0xf0]  ;;  %v1008_v15 = vld [vmem:[%s1315_s6 + $0xcc] sm:$0xf]  ;;  %v935_v16 = vld [vmem:[%s1315_s6 + $0xd8] sm:$0xf0]  ;;  %v894_v20 = vor.u32 %v1001_v11, %v893_v10 }
  0x53   : > { %v938_v17 = vor.u32 %v1008_v15, %v935_v16  ;;  %v901_v18 = vld [vmem:[%s1315_s6 + $0x88] sm:$0xf]  ;;  %v1002_v19 = vld [vmem:[%s1315_s6 + $0x94] sm:$0xf0]  ;;  %v877_v21 = vld [vmem:[%s1315_s6 + $0x60] sm:$0xf]  ;;  %v898_v22 = vor.u32 %v999_v12, %v895_v14 }
  0x54   : > { %536 = vmatpush.bf16.msra.mxu0 %v910_v4  ;;  %v997_v23 = vld [vmem:[%s1315_s6 + $0x6c] sm:$0xf0]  ;;  %v1004_v24 = vld [vmem:[%s1315_s6 + $0xac] sm:$0xf]  ;;  %v919_v25 = vld [vmem:[%s1315_s6 + $0xb8] sm:$0xf0]  ;;  %v902_v26 = vor.u32 %v1002_v19, %v901_v18 }
  0x55   : > { %591 = vmatpush.bf16.msrb.mxu1 %v934_v60  ;;  %973 = vmatmul.msk.bf16.vlgmr.msra.gmra.mxu3 %vm530_vm0, %v1329_v54  ;;  %v995_v27 = vld [vmem:[%s1315_s6 + $0x64] sm:$0xf]  ;;  %v879_v28 = vld [vmem:[%s1315_s6 + $0x70] sm:$0xf0]  ;;  %v922_v29 = vor.u32 %v1004_v24, %v919_v25  ;;  %v885_v30 = vld [vmem:[%s1315_s6 + $0x68] sm:$0xf]  ;;  %v878_v32 = vor.u32 %v997_v23, %v877_v21 }
  0x56   : > { %618 = vmatpush.bf16.msrb.mxu3 %v954_v9  ;;  %564 = vmatpush.bf16.msra.mxu2 %v914_v8  ;;  %v998_v31 = vld [vmem:[%s1315_s6 + $0x74] sm:$0xf0]  ;;  %v1000_v33 = vld [vmem:[%s1315_s6 + $0x8c] sm:$0xf]  ;;  %v903_v34 = vld [vmem:[%s1315_s6 + $0x98] sm:$0xf0]  ;;  %v882_v35 = vor.u32 %v995_v27, %v879_v28 }
  0x57   : > { %v861_v36 = vld [vmem:[%s1315_s6 + $0x40] sm:$0xf]  ;;  %v993_v37 = vld [vmem:[%s1315_s6 + $0x4c] sm:$0xf0]  ;;  %v886_v38 = vor.u32 %v998_v31, %v885_v30  ;;  %v991_v39 = vld [vmem:[%s1315_s6 + $0x44] sm:$0xf]  ;;  %v906_v41 = vor.u32 %v1000_v33, %v903_v34 }
  0x58   : > { %537 = vmatpush.bf16.msra.mxu0 %v894_v20  ;;  %v863_v40 = vld [vmem:[%s1315_s6 + $0x50] sm:$0xf0]  ;;  %v869_v42 = vld [vmem:[%s1315_s6 + $0x48] sm:$0xf]  ;;  %v994_v43 = vld [vmem:[%s1315_s6 + $0x54] sm:$0xf0]  ;;  %v862_v44 = vor.u32 %v993_v37, %v861_v36 }
  0x59   : > { %592 = vmatpush.bf16.msrb.mxu1 %v918_v13  ;;  %v996_v45 = vld [vmem:[%s1315_s6 + $0x6c] sm:$0xf]  ;;  %v887_v46 = vld [vmem:[%s1315_s6 + $0x78] sm:$0xf0]  ;;  %v866_v47 = vor.u32 %v991_v39, %v863_v40  ;;  %v845_v48 = vld [vmem:[%s1315_s6 + $0x20] sm:$0xf]  ;;  %v870_v50 = vor.u32 %v994_v43, %v869_v42 }
  0x5a   : > { %619 = vmatpush.bf16.msrb.mxu3 %v938_v17  ;;  %565 = vmatpush.bf16.msra.mxu2 %v898_v22  ;;  %v989_v49 = vld [vmem:[%s1315_s6 + $0x2c] sm:$0xf0]  ;;  %v987_v51 = vld [vmem:[%s1315_s6 + $0x24] sm:$0xf]  ;;  %v847_v52 = vld [vmem:[%s1315_s6 + $0x30] sm:$0xf0]  ;;  %v890_v55 = vor.u32 %v996_v45, %v887_v46 }
  0x5b   : > { %v853_v53 = vld [vmem:[%s1315_s6 + $0x28] sm:$0xf]  ;;  %v990_v56 = vld [vmem:[%s1315_s6 + $0x34] sm:$0xf0]  ;;  %v829_v57 = vld [vmem:[%s1315_s6] sm:$0xf]  ;;  %v846_v59 = vor.u32 %v989_v49, %v845_v48  ;;  %v850_v0 = vor.u32 %v987_v51, %v847_v52 }
  0x5c   : > { %538 = vmatpush.bf16.msra.mxu0 %v878_v32  ;;  %v985_v58 = vld [vmem:[%s1315_s6 + $0xc] sm:$0xf0]  ;;  %v983_v60 = vld [vmem:[%s1315_s6 + $0x4] sm:$0xf]  ;;  %v831_v61 = vld [vmem:[%s1315_s6 + $0x10] sm:$0xf0]  ;;  %v854_v4 = vor.u32 %v990_v56, %v853_v53 }
  0x5d   : > { %593 = vmatpush.bf16.msrb.mxu1 %v902_v26  ;;  %v992_v62 = vld [vmem:[%s1315_s6 + $0x4c] sm:$0xf]  ;;  %v871_v63 = vld [vmem:[%s1315_s6 + $0x58] sm:$0xf0]  ;;  %v837_v1 = vld [vmem:[%s1315_s6 + $0x8] sm:$0xf]  ;;  %v830_v13 = vor.u32 %v985_v58, %v829_v57  ;;  %v834_v17 = vor.u32 %v983_v60, %v831_v61 }
  0x5e   : > { %620 = vmatpush.bf16.msrb.mxu3 %v922_v29  ;;  %566 = vmatpush.bf16.msra.mxu2 %v882_v35  ;;  %v986_v2 = vld [vmem:[%s1315_s6 + $0x14] sm:$0xf0]  ;;  %v646_v3 = vld [vmem:[%s1467_s2] sm:$0xff]  ;;  %v1016_v5 = vld [vmem:[%s1315_s6 + $0x10c] sm:$0xf]  ;;  %v1137_v7 = vmov 0   ;;  %v874_v9 = vor.u32 %v992_v62, %v871_v63 }
  0x5f   : > { %v967_v6 = vld [vmem:[%s1315_s6 + $0x118] sm:$0xf0]  ;;  %1079 = vset.pattern.permute.xlu0 %v1137_v7  ;;  %v666_v8 = vld [vmem:[%s1468_s3] sm:$0xff]  ;;  %v959_v12 = vld [vmem:[%s1315_s6 + $0x110] sm:$0xf0]  ;;  %1080 = vset.pattern.permute.xlu1 %v1137_v7  ;;  %v838_v19 = vor.u32 %v986_v2, %v837_v1  ;;  %s977_s24 = sshll.u32 (%p1211_p6), %s1123_s18, 4 }
  0x60   : > { %539 = vmatpush.bf16.msra.mxu0 %v862_v44  ;;  %v821_v10 = vld [vmem:[%s1465_s0] sm:$0xf]  ;;  %v1015_v11 = vld [vmem:[%s1315_s6 + $0x104] sm:$0xf]  ;;  %650 = vperm.xlu0 %1079, %v646_v3   ;;  %v982_v14 = vld [vmem:[%s1465_s0 + $0x4] sm:$0xf0]  ;;  %v970_v18 = vor.u32 %v1016_v5, %v967_v6  ;;  %s703_s7 = sadd.s32 (%p1211_p6), %s977_s24, %s976_s15 }
  0x61   : > { %594 = vmatpush.bf16.msrb.mxu1 %v886_v38  ;;  %v988_v15 = vld [vmem:[%s1315_s6 + $0x2c] sm:$0xf]  ;;  %v855_v16 = vld [vmem:[%s1315_s6 + $0x38] sm:$0xf0]  ;;  %670 = vperm.xlu1 %1080, %v666_v8   ;;  %v962_v20 = vor.u32 %v1015_v11, %v959_v12  ;;  %v822_v21 = vor.u32 %v982_v14, %v821_v10  ;;  %s978_s8 = sshll.u32 (%p1211_p6), %s703_s7, 3 }
  0x62   : > { %621 = vmatpush.bf16.msrb.mxu3 %v906_v41  ;;  %567 = vmatpush.bf16.msra.mxu2 %v866_v47  ;;  %v858_v22 = vor.u32 %v988_v15, %v855_v16  ;;  %v984_v23 = vld [vmem:[%s1315_s6 + $0xc] sm:$0xf]  ;;  %v839_v24 = vld [vmem:[%s1315_s6 + $0x18] sm:$0xf0]  ;;  %s1419_s6 = scalar_lea.vmem [#allocation3], %s818_s5  ;;  %s705_s26 = scalar_lea.vmem (%p1211_p6), %s1469_s4, %s978_s8 }
  0x63   : > { %v647_v25 = vld [vmem:[%s1467_s2 + $0x8] sm:$0xff]  ;;  %v842_v27 = vor.u32 %v984_v23, %v839_v24 }
  0x64   : > { %540 = vmatpush.bf16.msra.mxu0 %v846_v59  ;;  %v667_v26 = vld [vmem:[%s1468_s3 + $0x8] sm:$0xff] }
  0x65   : > { %595 = vmatpush.bf16.msrb.mxu1 %v870_v50 }
  0x66   : > { %622 = vmatpush.bf16.msrb.mxu3 %v890_v55  ;;  %568 = vmatpush.bf16.msra.mxu2 %v850_v0 }
  0x68   : > { %541 = vmatpush.bf16.msra.mxu0 %v830_v13  ;;  %655 = vperm.xlu0 %1079, %v647_v25  }
  0x69   : > { %596 = vmatpush.bf16.msrb.mxu1 %v854_v4  ;;  %675 = vperm.xlu1 %1080, %v667_v26  }
  0x6a   : > { %623 = vmatpush.bf16.msrb.mxu3 %v874_v9  ;;  %569 = vmatpush.bf16.msra.mxu2 %v834_v17 }
  0x6b   : > { %542 = vmatmul.bf16.vlgmr.msra.gmra.mxu0 %v822_v21 }
  0x6c   : > { %639 = vmatpush.bf16.msrb.mxu0 %v970_v18 }
  0x6d   : > { %597 = vmatpush.bf16.msrb.mxu1 %v838_v19  ;;  %570 = vmatmul.bf16.vlgmr.msra.gmra.mxu2 %v822_v21 }
  0x6e   : > { %583 = vmatpush.bf16.msrb.mxu2 %v962_v20  ;;  %624 = vmatpush.bf16.msrb.mxu3 %v858_v22 }
  0x70   : > { %598 = vmatmul.bf16.vlgmr.msrb.gmra.mxu1 %v822_v21 }
  0x72   : > { %625 = vmatpush.bf16.msrb.mxu3 %v842_v27 }
  0x75   : > { %626 = vmatmul.bf16.vlgmr.msrb.gmra.mxu3 %v822_v21 }
  0x7b   : > { %974 = vmatmul.msk.bf16.vlgmr.msrb.gmra.mxu0 %vm530_vm0, %v1329_v54 }
  0x7d   : > { %972 = vmatmul.msk.bf16.vlgmr.msrb.gmra.mxu2 %vm530_vm0, %v1329_v54 }
  0xcd   : > { %v557_v28 = vpop.f32.mrf.mxu1 }
  0xd2   : > { %v651_v31 = vpop.permute.xlu0 %650 }
  0xd3   : > { %v671_v33 = vpop.permute.xlu1 %670 }
  0xd5   : > { %v559_v29 = vpop.f32.mrf.mxu1 }
  0xd8   : > { %v613_v30 = vpop.f32.mrf.mxu3 }
  0xda   : > { %v656_v43 = vpop.permute.xlu0 %655 }
  0xdb   : > { %v676_v46 = vpop.permute.xlu1 %675 }
  0xe0   : > { %v615_v38 = vpop.f32.mrf.mxu3 }
  0xe8   : > { %v543_v32 = vpop.f32.mrf.mxu0 }
  0xe9   : > { %v558_v34 = vadd.f32 %v557_v28, %v543_v32 }
  0xeb   : > { %v658_v37 = vmul.f32 %v651_v31, %v558_v34 }
  0xed   : > { %v599_v35 = vpop.f32.mrf.mxu1  ;;  %v678_v40 = vadd.f32 %v671_v33, %v658_v37 }
  0xee   : > { %v614_v36 = vadd.f32 %v613_v30, %v599_v35 }
  0xef   : > { %686 = vst [vmem:[%s1419_s6] sm:$0xff] %v678_v40 }
  0xf0   : > { %v660_v39 = vmul.f32 %v651_v31, %v614_v36  ;;  %v571_v54 = vpop.f32.mrf.mxu2  ;;  %v545_v42 = vpop.f32.mrf.mxu0 }
  0xf1   : > { %v560_v44 = vadd.f32 %v559_v29, %v545_v42 }
  0xf2   : > { %v680_v41 = vadd.f32 %v671_v33, %v660_v39 }
  0xf3   : > { %v662_v48 = vmul.f32 %v656_v43, %v560_v44 }
  0xf4   : > { %688 = vst [vmem:[%s1419_s6 + $0x10] sm:$0xff] %v680_v41 }
  0xf5   : > { %v601_v45 = vpop.f32.mrf.mxu1  ;;  %v682_v50 = vadd.f32 %v676_v46, %v662_v48 }
  0xf6   : > { %v616_v47 = vadd.f32 %v615_v38, %v601_v45  ;;  %v718_v8 = vld [vmem:[%s1419_s6] sm:$0xff] (%p1211_p6) }
  0xf7   : > { %690 = vst [vmem:[%s1419_s6 + $0x20] sm:$0xff] %v682_v50 }
  0xf8   : > { %v664_v49 = vmul.f32 %v656_v43, %v616_v47  ;;  %v627_v51 = vpop.f32.mrf.mxu3  ;;  %v573_v53 = vpop.f32.mrf.mxu2  ;;  %719 = vst [vmem:[%s705_s26] sm:$0xff] (%p1211_p6), %v718_v8 }
  0xf9   : > { %v641_v55 = vpop.f32.mrf.mxu0 }
  0xfa   : > { %v684_v52 = vadd.f32 %v676_v46, %v664_v49  ;;  %v642_v56 = vadd.f32 %v641_v55, %v627_v51 }
  0xfb   : > { %v722_v10 = vld [vmem:[%s1419_s6 + $0x10] sm:$0xff] (%p1211_p6) }
  0xfc   : > { %692 = vst [vmem:[%s1419_s6 + $0x30] sm:$0xff] %v684_v52  ;;  %v661_v57 = vmul.f32 %v651_v31, %v642_v56 }
  0xfd   : > { %723 = vst [vmem:[%s705_s26 + $0x10] sm:$0xff] (%p1211_p6), %v722_v10 }
  0xfe   : > { %v681_v58 = vadd.f32 %v671_v33, %v661_v57  ;;  %v726_v12 = vld [vmem:[%s1419_s6 + $0x20] sm:$0xff] (%p1211_p6) }
  0xff   : > { %727 = vst [vmem:[%s705_s26 + $0x40] sm:$0xff] (%p1211_p6), %v726_v12 }
 0x100   : > { %689 = vst [vmem:[%s1419_s6 + $0x18] sm:$0xff] %v681_v58  ;;  %v585_v59 = vpop.f32.mrf.mxu2  ;;  %v629_v61 = vpop.f32.mrf.mxu3 }
 0x101   : > { %v586_v60 = vadd.f32 %v585_v59, %v571_v54  ;;  %v643_v62 = vpop.f32.mrf.mxu0 }
 0x102   : > { %v644_v63 = vadd.f32 %v643_v62, %v629_v61 }
 0x103   : > { %v659_v0 = vmul.f32 %v651_v31, %v586_v60  ;;  %v730_v14 = vld [vmem:[%s1419_s6 + $0x30] sm:$0xff] (%p1211_p6) }
 0x104   : > { %v665_v1 = vmul.f32 %v656_v43, %v644_v63  ;;  %731 = vst [vmem:[%s705_s26 + $0x50] sm:$0xff] (%p1211_p6), %v730_v14 }
 0x105   : > { %v679_v2 = vadd.f32 %v671_v33, %v659_v0 }
 0x106   : > { %v685_v3 = vadd.f32 %v676_v46, %v665_v1 }
 0x107   : > { %687 = vst [vmem:[%s1419_s6 + $0x8] sm:$0xff] %v679_v2  ;;  %v724_v11 = vld [vmem:[%s1419_s6 + $0x18] sm:$0xff] (%p1211_p6) }
 0x108   : > { %693 = vst [vmem:[%s1419_s6 + $0x38] sm:$0xff] %v685_v3  ;;  %v587_v4 = vpop.f32.mrf.mxu2 }
 0x109   : > { %v588_v5 = vadd.f32 %v587_v4, %v573_v53  ;;  %725 = vst [vmem:[%s705_s26 + $0x18] sm:$0xff] (%p1211_p6), %v724_v11 }
 0x10b   : > { %v663_v6 = vmul.f32 %v656_v43, %v588_v5  ;;  %700 = sbr.rel (!%p1211_p6) target bundleno = 280 (0x118), region = 63 }
 0x10d   : > { %v683_v7 = vadd.f32 %v676_v46, %v663_v6 }
 0x10e   : > { %v720_v9 = vld [vmem:[%s1419_s6 + $0x8] sm:$0xff] (%p1211_p6) }
 0x10f   : > { %691 = vst [vmem:[%s1419_s6 + $0x28] sm:$0xff] %v683_v7  ;;  %v732_v15 = vld [vmem:[%s1419_s6 + $0x38] sm:$0xff] (%p1211_p6) }
 0x110   : > { %721 = vst [vmem:[%s705_s26 + $0x8] sm:$0xff] %v720_v9 }
 0x111   : > { %733 = vst [vmem:[%s705_s26 + $0x58] sm:$0xff] %v732_v15 }
 0x116   : > { %v728_v13 = vld [vmem:[%s1419_s6 + $0x28] sm:$0xff] }
 0x117   : > { %729 = vst [vmem:[%s705_s26 + $0x48] sm:$0xff] %v728_v13 }
 0x118 PF: > { %s14_s21 = sadd.s32 1, %s1135_s21   ;;  %s1471_s15 = smov %s1115_s16 }
 0x119   : > { %p11_p12 = scmp.ge.s32.totalorder %s14_s21, 6   ;;  %s1472_s16 = smov %s1219_s30 }
 0x11a   : > { %s1473_s17 = smov %s1127_s19  ;;  %s1474_s18 = smov %s1131_s20 }
 0x11b   : > { %s1475_s19 = smov %s1478_s22  ;;  %s1476_s20 = smov %s1482_s23 }
 0x11c   :  { %13 = sbr.rel (!%p11_p12) target bundleno = 4 (0x4), region = 117 }

// kernel: edg_forward.25
= control target key start
LH: loop header
LB: loop body
LE: loop exit
PB: predicated region body
PF: predicated region fallthrough
CT: control target
= control target key end

     0   :  { %s947_s15 = smov 0   ;;  %s949_s16 = smov 0   ;;  %s1229_s0 = inlined_call_operand.vmem [shape: bf16[50,16], index: 0, kind: input, shape index: {}]   ;;  %s1230_s1 = inlined_call_operand.vmem [shape: bf16[2,16,1024], index: 1, kind: input, shape index: {}]   ;;  %s1231_s2 = inlined_call_operand.vmem [shape: f32[50,1], index: 2, kind: input, shape index: {}]   ;;  %s1232_s3 = inlined_call_operand.vmem [shape: f32[50,1], index: 3, kind: input, shape index: {}]   ;;  %s1233_s4 = inlined_call_operand.vmem [shape: f32[2,50,1024], index: 4, kind: output, shape index: {}]  }
   0x1   :  { %s951_s17 = smov 0   ;;  %s953_s18 = smov 0  }
   0x2   :  { %s955_s19 = smov 0   ;;  %s957_s20 = smov 0  }
   0x3   :  { %s959_s21 = smov 0  }
   0x4 LB: > { %s23_s22 = sadd.s32 1, %s911_s19  ;;  %s26_s23 = sadd.s32 1, %s915_s20  ;;  %s919_s21 = sphi %s959_s21, %s14_s21   ;;  %s915_s20 = sphi %s957_s20, %s1240_s20   ;;  %s911_s19 = sphi %s955_s19, %s1239_s19   ;;  %s907_s18 = sphi %s953_s18, %s1238_s18   ;;  %s903_s17 = sphi %s951_s17, %s1237_s17   ;;  %s899_s16 = sphi %s949_s16, %s1236_s16   ;;  %s895_s15 = sphi %s947_s15, %s1235_s15  }
   0x5   : > { %p24_p0 = scmp.ge.s32.totalorder %s23_s22, 2  ;;  %s738_s24 = sadd.s32 4294967295, %s919_s21  }
   0x6   : > { %p63_p1 = scmp.ne.s32.totalorder %s899_s16, %s895_s15  ;;  %p64_p2 = scmp.eq.s32.totalorder %s919_s21, 0 }
   0x7   : > { %s1242_s22 = smov (%p24_p0, %s23_s22), 0  ;;  %s1244_s23 = smov (!%p24_p0, %s26_s23), %s915_s20 }
   0x8   : > { %p28_p3 = scmp.ge.s32.totalorder %s1244_s23, 2  ;;  %p137_p4 = scmp.eq.s32.totalorder %s738_s24, 3 }
   0x9   : > { %s52_s25 = ssub.s32 %s911_s19, %s1242_s22  ;;  %p65_p5 = por %p64_p2, %p63_p1 }
   0xa   : > { %s1246_s23 = smov (%p28_p3, %s1244_s23), 0  ;;  %p995_p6 = por %p137_p4, %p63_p1 }
   0xb   : > { %s51_s27 = ssub.s32 %s915_s20, %s1246_s23  ;;  %s56_s29 = sadd.s32 1, %s899_s16 }
   0xc   : > { %s53_s28 = sor.u32 %s52_s25, %s51_s27  ;;  %p741_p8 = scmp.ge.s32.totalorder %s919_s21, 4 }
   0xd   : > { %p54_p7 = scmp.eq.s32.totalorder %s53_s28, 0 }
   0xe   : > { %168 = sbr.rel (%p741_p8) target bundleno = 30 (0x1e), region = 28 }
   0xf   : > { %s1003_s30 = scalar_select %p54_p7, %s899_s16, %s56_s29  }
  0x13   : > { %171 = sbr.rel (!%p65_p5) target bundleno = 30 (0x1e), region = 32  ;;  %s173_s5 = sand.u32 (%p65_p5), 1, %s899_s16  }
  0x14   : > { %s743_s6 = sshll.u32 (%p65_p5), %s911_s19, 2  ;;  %s742_s7 = sshll.u32 (%p65_p5), %s173_s5, 5 }
  0x15   : > { %s744_s8 = sshll.u32 (%p65_p5), %s915_s20, 4  ;;  %s175_s14 = scalar_lea.vmem (%p65_p5), [#allocation2], %s742_s7 }
  0x16   : > { %s178_s9 = sadd.s32 (%p65_p5), %s744_s8, %s743_s6 }
  0x17   : > { %s745_s10 = sshll.u32 (%p65_p5), %s178_s9, 2 }
  0x18   : > { %s180_s13 = scalar_lea.vmem %s1230_s1, %s745_s10 }
  0x19   : > { %v193_v0 = vld [vmem:[%s180_s13] sm:$0xff]  ;;  %v195_v1 = vld [vmem:[%s180_s13 + $0x8] sm:$0xff] }
  0x1a   : > { %v197_v2 = vld [vmem:[%s180_s13 + $0x20] sm:$0xff]  ;;  %194 = vst [vmem:[%s175_s14] sm:$0xff] %v193_v0  ;;  %v199_v3 = vld [vmem:[%s180_s13 + $0x28] sm:$0xff] }
  0x1b   : > { %196 = vst [vmem:[%s175_s14 + $0x8] sm:$0xff] %v195_v1 }
  0x1c   : > { %198 = vst [vmem:[%s175_s14 + $0x10] sm:$0xff] %v197_v2 }
  0x1d   : > { %200 = vst [vmem:[%s175_s14 + $0x18] sm:$0xff] %v199_v3 }
  0x1e PF: > { %p746_p9 = scmp.ge.s32.totalorder %s919_s21, 1  ;;  %p205_p10 = scmp.lt.s32.totalorder %s919_s21, 5 }
  0x20   : > { %p206_p11 = pnand %p746_p9, %p205_p10 }
  0x21   : > { %s212_s24 = sand.u32 (!%p206_p11), 1, %s895_s15  }
  0x22   : > { %209 = sbr.rel (%p206_p11) target bundleno = 242 (0xf2), region = 55  ;;  %s747_s5 = sshll.u32 (!%p206_p11), %s212_s24, 5 }
  0x23   : > { %s214_s8 = scalar_lea.vmem (!%p206_p11), [#allocation2], %s747_s5  ;;  %s803_s11 = smul.u32 (!%p206_p11), 224, %s212_s24 }
  0x25   : > { %s1095_s12 = scalar_lea.vmem (!%p206_p11), [#allocation3], %s803_s11 }
  0x27   : > { %v415_v4 = vld [vmem:[%s1231_s2 + $0x10] sm:$0xff]  ;;  %v413_v5 = vld [vmem:[%s1231_s2] sm:$0xff]  ;;  %v921_v6 = vmov 0   ;;  %v770_v14 = vld [vmem:[%s214_s8 + $0x8] sm:$0xf]  ;;  %vm288_vm0 = vcmask 130048  }
  0x28   : > { %863 = vset.pattern.permute.xlu1 %v921_v6  ;;  %862 = vset.pattern.permute.xlu0 %v921_v6  ;;  %v417_v7 = vld [vmem:[%s1231_s2 + $0x20] sm:$0xff]  ;;  %v801_v9 = vld [vmem:[%s214_s8 + $0xc] sm:$0xf0]  ;;  %v764_v13 = vld [vmem:[%s214_s8 + $0x10] sm:$0xf0]  ;;  %s792_s15 = sshll.u32 (%p995_p6), %s903_s17, 2 }
  0x29   : > { %432 = vperm.xlu1 %863, %v415_v4   ;;  %422 = vperm.xlu0 %862, %v413_v5   ;;  %v762_v8 = vld [vmem:[%s214_s8] sm:$0xf]  ;;  %v799_v12 = vld [vmem:[%s214_s8 + $0x4] sm:$0xf]  ;;  %v802_v16 = vld [vmem:[%s214_s8 + $0x14] sm:$0xf0] }
  0x2a   : > { %v796_v10 = vld [vmem:[%s1229_s0] sm:$0xff]  ;;  %864 = vset.pattern.permute.xlu2 %v921_v6  ;;  %v763_v11 = vor.u32 %v801_v9, %v762_v8  ;;  %v767_v15 = vor.u32 %v799_v12, %v764_v13  ;;  %v800_v17 = vld [vmem:[%s214_s8 + $0xc] sm:$0xf]  ;;  %v772_v18 = vld [vmem:[%s214_s8 + $0x18] sm:$0xf0]  ;;  %v771_v19 = vor.u32 %v802_v16, %v770_v14  ;;  %s804_s24 = smul.u32 (%p995_p6), 56, %s907_s18 }
  0x2b   : > { %442 = vperm.xlu2 %864, %v417_v7   ;;  %v775_v20 = vor.u32 %v800_v17, %v772_v18  ;;  %v416_v21 = vld [vmem:[%s1231_s2 + $0x18] sm:$0xff]  ;;  %v414_v22 = vld [vmem:[%s1231_s2 + $0x8] sm:$0xff]  ;;  %v483_v24 = vld [vmem:[%s1232_s3] sm:$0xff] }
  0x2c   : > { %308 = vmatpush.bf16.msra.mxu0 %v763_v11  ;;  %336 = vmatpush.bf16.msra.mxu1 %v767_v15  ;;  %v418_v23 = vld [vmem:[%s1231_s2 + $0x28] sm:$0xff]  ;;  %v419_v25 = vld [vmem:[%s1231_s2 + $0x30] sm:$0x3]  ;;  %v486_v28 = vld [vmem:[%s1232_s3 + $0x18] sm:$0xff]  ;;  %s590_s13 = sadd.s32 (%p995_p6), %s804_s24, %s792_s15 }
  0x2d   : > { %364 = vmatpush.bf16.msra.mxu2 %v771_v19  ;;  %392 = vmatpush.bf16.msra.mxu3 %v775_v20  ;;  %v484_v26 = vld [vmem:[%s1232_s3 + $0x8] sm:$0xff]  ;;  %v485_v29 = vld [vmem:[%s1232_s3 + $0x10] sm:$0xff]  ;;  %v487_v30 = vld [vmem:[%s1232_s3 + $0x20] sm:$0xff]  ;;  %s793_s14 = sshll.u32 (%p995_p6), %s590_s13, 3 }
  0x2e   : > { %v797_v27 = vld [vmem:[%s1229_s0 + $0x8] sm:$0xff]  ;;  %v489_v31 = vld [vmem:[%s1232_s3 + $0x30] sm:$0x3]  ;;  %v245_v34 = vld [vmem:[%s1229_s0 + $0x18] sm:$0x1]  ;;  %s1152_s27 = scalar_lea.vmem (%p995_p6), %s1233_s4, %s793_s14 }
  0x2f   : > { %776 = vmatmul.msk.bf16.vlgmr.msra.gmra.mxu0 %vm288_vm0, %v796_v10  ;;  %780 = vmatmul.msk.bf16.vlgmr.msra.gmra.mxu1 %vm288_vm0, %v796_v10  ;;  %v488_v32 = vld [vmem:[%s1232_s3 + $0x28] sm:$0xff]  ;;  %v798_v33 = vld [vmem:[%s1229_s0 + $0x10] sm:$0xff]  ;;  %v263_v35 = vunpack.c.l.b16 %v245_v34 }
  0x30   : > { %784 = vmatmul.msk.bf16.vlgmr.msra.gmra.mxu2 %vm288_vm0, %v796_v10  ;;  %788 = vmatmul.msk.bf16.vlgmr.msra.gmra.mxu3 %vm288_vm0, %v796_v10 }
  0x31   : > { %437 = vperm.xlu1 %863, %v416_v21   ;;  %427 = vperm.xlu0 %862, %v414_v22   ;;  %v267_v36 = vpack.c.b16 %v263_v35, %v263_v35 }
  0x33   : > { %447 = vperm.xlu2 %864, %v418_v23  }
  0x39   : > { %492 = vperm.xlu1 %863, %v483_v24   ;;  %452 = vperm.xlu0 %862, %v419_v25  }
  0x3b   : > { %497 = vperm.xlu2 %864, %v484_v26  }
  0x3f   : > { %777 = vmatmul.msk.bf16.gmra.mxu0 %vm288_vm0, %v797_v27  ;;  %781 = vmatmul.msk.bf16.gmra.mxu1 %vm288_vm0, %v797_v27 }
  0x40   : > { %785 = vmatmul.msk.bf16.gmra.mxu2 %vm288_vm0, %v797_v27  ;;  %789 = vmatmul.msk.bf16.gmra.mxu3 %vm288_vm0, %v797_v27 }
  0x41   : > { %507 = vperm.xlu1 %863, %v486_v28   ;;  %502 = vperm.xlu0 %862, %v485_v29  }
  0x43   : > { %512 = vperm.xlu2 %864, %v487_v30  }
  0x49   : > { %522 = vperm.xlu1 %863, %v489_v31   ;;  %517 = vperm.xlu0 %862, %v488_v32  }
  0x4f   : > { %778 = vmatmul.msk.bf16.gmra.mxu0 %vm288_vm0, %v798_v33  ;;  %782 = vmatmul.msk.bf16.gmra.mxu1 %vm288_vm0, %v798_v33 }
  0x50   : > { %786 = vmatmul.msk.bf16.gmra.mxu2 %vm288_vm0, %v798_v33  ;;  %790 = vmatmul.msk.bf16.gmra.mxu3 %vm288_vm0, %v798_v33 }
  0x5f   : > { %779 = vmatmul.msk.bf16.gmra.mxu0 %vm288_vm0, %v267_v36  ;;  %783 = vmatmul.msk.bf16.gmra.mxu1 %vm288_vm0, %v267_v36 }
  0x60   : > { %787 = vmatmul.msk.bf16.gmra.mxu2 %vm288_vm0, %v267_v36  ;;  %791 = vmatmul.msk.bf16.gmra.mxu3 %vm288_vm0, %v267_v36 }
  0x85   : > { %v1087_v38 = vpop.permute.xlu2 %442 }
  0x8d   : > { %v1091_v41 = vpop.permute.xlu2 %447 }
  0x95   : > { %v498_v50 = vpop.permute.xlu2 %497 }
  0x9b   : > { %v433_v37 = vpop.permute.xlu1 %432  ;;  %v423_v39 = vpop.permute.xlu0 %422 }
  0x9d   : > { %v513_v26 = vpop.permute.xlu2 %512 }
  0xa3   : > { %v1089_v40 = vpop.permute.xlu1 %437  ;;  %v428_v42 = vpop.permute.xlu0 %427 }
  0xab   : > { %v493_v44 = vpop.permute.xlu1 %492  ;;  %v1099_v51 = vpop.permute.xlu0 %452 }
  0xac   : > { %v310_v43 = vpop.f32.mrf.mxu0  ;;  %v338_v46 = vpop.f32.mrf.mxu1 }
  0xad   : > { %v455_v45 = vmul.f32 %v423_v39, %v310_v43  ;;  %v456_v47 = vmul.f32 %v423_v39, %v338_v46 }
  0xaf   : > { %v525_v48 = vadd.f32 %v493_v44, %v455_v45  ;;  %v526_v49 = vadd.f32 %v493_v44, %v456_v47 }
  0xb1   : > { %553 = vst [vmem:[%s1095_s12] sm:$0xff] %v525_v48 }
  0xb2   : > { %554 = vst [vmem:[%s1095_s12 + $0x8] sm:$0xff] %v526_v49 }
  0xb3   : > { %v366_v52 = vpop.f32.mrf.mxu2  ;;  %v394_v53 = vpop.f32.mrf.mxu3 }
  0xb4   : > { %v457_v54 = vmul.f32 %v423_v39, %v366_v52  ;;  %v458_v55 = vmul.f32 %v423_v39, %v394_v53  ;;  %v312_v56 = vpop.f32.mrf.mxu0  ;;  %v340_v57 = vpop.f32.mrf.mxu1 }
  0xb5   : > { %v459_v58 = vmul.f32 %v428_v42, %v312_v56  ;;  %v460_v59 = vmul.f32 %v428_v42, %v340_v57  ;;  %v503_v10 = vpop.permute.xlu0 %502  ;;  %v508_v21 = vpop.permute.xlu1 %507 }
  0xb6   : > { %v527_v60 = vadd.f32 %v493_v44, %v457_v54  ;;  %v528_v61 = vadd.f32 %v493_v44, %v458_v55 }
  0xb7   : > { %v529_v62 = vadd.f32 %v498_v50, %v459_v58  ;;  %v530_v63 = vadd.f32 %v498_v50, %v460_v59 }
  0xb8   : > { %555 = vst [vmem:[%s1095_s12 + $0x10] sm:$0xff] %v527_v60 }
  0xb9   : > { %556 = vst [vmem:[%s1095_s12 + $0x18] sm:$0xff] %v528_v61 }
  0xba   : > { %557 = vst [vmem:[%s1095_s12 + $0x20] sm:$0xff] %v529_v62 }
  0xbb   : > { %558 = vst [vmem:[%s1095_s12 + $0x28] sm:$0xff] %v530_v63  ;;  %v368_v0 = vpop.f32.mrf.mxu2  ;;  %v396_v1 = vpop.f32.mrf.mxu3 }
  0xbc   : > { %v461_v2 = vmul.f32 %v428_v42, %v368_v0  ;;  %v462_v3 = vmul.f32 %v428_v42, %v396_v1  ;;  %v315_v4 = vpop.f32.mrf.mxu0  ;;  %v343_v5 = vpop.f32.mrf.mxu1 }
  0xbd   : > { %v463_v6 = vmul.f32 %v433_v37, %v315_v4  ;;  %v464_v7 = vmul.f32 %v433_v37, %v343_v5  ;;  %v518_v49 = vpop.permute.xlu0 %517  ;;  %v523_v62 = vpop.permute.xlu1 %522 }
  0xbe   : > { %v531_v8 = vadd.f32 %v498_v50, %v461_v2  ;;  %v532_v9 = vadd.f32 %v498_v50, %v462_v3 }
  0xbf   : > { %v533_v11 = vadd.f32 %v503_v10, %v463_v6  ;;  %v534_v12 = vadd.f32 %v503_v10, %v464_v7 }
  0xc0   : > { %559 = vst [vmem:[%s1095_s12 + $0x30] sm:$0xff] %v531_v8 }
  0xc1   : > { %560 = vst [vmem:[%s1095_s12 + $0x38] sm:$0xff] %v532_v9 }
  0xc2   : > { %561 = vst [vmem:[%s1095_s12 + $0x40] sm:$0xff] %v533_v11 }
  0xc3   : > { %562 = vst [vmem:[%s1095_s12 + $0x48] sm:$0xff] %v534_v12  ;;  %v371_v13 = vpop.f32.mrf.mxu2  ;;  %v399_v14 = vpop.f32.mrf.mxu3  ;;  %v607_v12 = vld [vmem:[%s1095_s12 + $0x8] sm:$0xff] (%p995_p6) }
  0xc4   : > { %v465_v15 = vmul.f32 %v433_v37, %v371_v13  ;;  %v466_v16 = vmul.f32 %v433_v37, %v399_v14  ;;  %v317_v17 = vpop.f32.mrf.mxu0  ;;  %v345_v18 = vpop.f32.mrf.mxu1  ;;  %v609_v13 = vld [vmem:[%s1095_s12 + $0x10] sm:$0xff] (%p995_p6)  ;;  %v611_v14 = vld [vmem:[%s1095_s12 + $0x18] sm:$0xff] (%p995_p6)  ;;  %608 = vst [vmem:[%s1152_s27 + $0x8] sm:$0xff] (%p995_p6), %v607_v12 }
  0xc5   : > { %v467_v19 = vmul.f32 %v1089_v40, %v317_v17  ;;  %v468_v20 = vmul.f32 %v1089_v40, %v345_v18  ;;  %610 = vst [vmem:[%s1152_s27 + $0x10] sm:$0xff] (%p995_p6), %v609_v13 }
  0xc6   : > { %v535_v22 = vadd.f32 %v503_v10, %v465_v15  ;;  %v536_v23 = vadd.f32 %v503_v10, %v466_v16  ;;  %v613_v15 = vld [vmem:[%s1095_s12 + $0x20] sm:$0xff] (%p995_p6)  ;;  %v615_v16 = vld [vmem:[%s1095_s12 + $0x28] sm:$0xff] (%p995_p6)  ;;  %612 = vst [vmem:[%s1152_s27 + $0x18] sm:$0xff] (%p995_p6), %v611_v14 }
  0xc7   : > { %v537_v24 = vadd.f32 %v508_v21, %v467_v19  ;;  %v538_v25 = vadd.f32 %v508_v21, %v468_v20  ;;  %v617_v17 = vld [vmem:[%s1095_s12 + $0x30] sm:$0xff] (%p995_p6)  ;;  %614 = vst [vmem:[%s1152_s27 + $0x40] sm:$0xff] (%p995_p6), %v613_v15 }
  0xc8   : > { %563 = vst [vmem:[%s1095_s12 + $0x50] sm:$0xff] %v535_v22  ;;  %v619_v18 = vld [vmem:[%s1095_s12 + $0x38] sm:$0xff] (%p995_p6) }
  0xc9   : > { %564 = vst [vmem:[%s1095_s12 + $0x58] sm:$0xff] %v536_v23  ;;  %v621_v19 = vld [vmem:[%s1095_s12 + $0x40] sm:$0xff] (%p995_p6) }
  0xca   : > { %565 = vst [vmem:[%s1095_s12 + $0x60] sm:$0xff] %v537_v24  ;;  %v623_v20 = vld [vmem:[%s1095_s12 + $0x48] sm:$0xff] (%p995_p6) }
  0xcb   : > { %566 = vst [vmem:[%s1095_s12 + $0x68] sm:$0xff] %v538_v25  ;;  %v373_v27 = vpop.f32.mrf.mxu2  ;;  %v401_v28 = vpop.f32.mrf.mxu3 }
  0xcc   : > { %v469_v29 = vmul.f32 %v1089_v40, %v373_v27  ;;  %v470_v30 = vmul.f32 %v1089_v40, %v401_v28  ;;  %v320_v31 = vpop.f32.mrf.mxu0  ;;  %v348_v32 = vpop.f32.mrf.mxu1  ;;  %616 = vst [vmem:[%s1152_s27 + $0x48] sm:$0xff] (%p995_p6), %v615_v16 }
  0xcd   : > { %v471_v33 = vmul.f32 %v1087_v38, %v320_v31  ;;  %v472_v34 = vmul.f32 %v1087_v38, %v348_v32  ;;  %618 = vst [vmem:[%s1152_s27 + $0x50] sm:$0xff] (%p995_p6), %v617_v17 }
  0xce   : > { %v539_v35 = vadd.f32 %v508_v21, %v469_v29  ;;  %v540_v36 = vadd.f32 %v508_v21, %v470_v30  ;;  %620 = vst [vmem:[%s1152_s27 + $0x58] sm:$0xff] (%p995_p6), %v619_v18 }
  0xcf   : > { %v541_v37 = vadd.f32 %v513_v26, %v471_v33  ;;  %v542_v39 = vadd.f32 %v513_v26, %v472_v34  ;;  %v625_v21 = vld [vmem:[%s1095_s12 + $0x50] sm:$0xff] (%p995_p6)  ;;  %622 = vst [vmem:[%s1152_s27 + $0x80] sm:$0xff] (%p995_p6), %v621_v19 }
  0xd0   : > { %567 = vst [vmem:[%s1095_s12 + $0x70] sm:$0xff] %v539_v35  ;;  %v627_v22 = vld [vmem:[%s1095_s12 + $0x58] sm:$0xff] (%p995_p6) }
  0xd1   : > { %568 = vst [vmem:[%s1095_s12 + $0x78] sm:$0xff] %v540_v36  ;;  %v629_v23 = vld [vmem:[%s1095_s12 + $0x60] sm:$0xff] (%p995_p6) }
  0xd2   : > { %569 = vst [vmem:[%s1095_s12 + $0x80] sm:$0xff] %v541_v37  ;;  %v631_v24 = vld [vmem:[%s1095_s12 + $0x68] sm:$0xff] (%p995_p6) }
  0xd3   : > { %570 = vst [vmem:[%s1095_s12 + $0x88] sm:$0xff] %v542_v39  ;;  %v376_v42 = vpop.f32.mrf.mxu2  ;;  %v404_v40 = vpop.f32.mrf.mxu3 }
  0xd4   : > { %v473_v43 = vmul.f32 %v1087_v38, %v376_v42  ;;  %v474_v44 = vmul.f32 %v1087_v38, %v404_v40  ;;  %v322_v45 = vpop.f32.mrf.mxu0  ;;  %v350_v46 = vpop.f32.mrf.mxu1  ;;  %624 = vst [vmem:[%s1152_s27 + $0x88] sm:$0xff] (%p995_p6), %v623_v20 }
  0xd5   : > { %v475_v47 = vmul.f32 %v1091_v41, %v322_v45  ;;  %v476_v48 = vmul.f32 %v1091_v41, %v350_v46  ;;  %626 = vst [vmem:[%s1152_s27 + $0x90] sm:$0xff] (%p995_p6), %v625_v21 }
  0xd6   : > { %v543_v50 = vadd.f32 %v513_v26, %v473_v43  ;;  %v544_v52 = vadd.f32 %v513_v26, %v474_v44  ;;  %628 = vst [vmem:[%s1152_s27 + $0x98] sm:$0xff] (%p995_p6), %v627_v22 }
  0xd7   : > { %v545_v53 = vadd.f32 %v518_v49, %v475_v47  ;;  %v546_v54 = vadd.f32 %v518_v49, %v476_v48  ;;  %v633_v25 = vld [vmem:[%s1095_s12 + $0x70] sm:$0xff] (%p995_p6)  ;;  %630 = vst [vmem:[%s1152_s27 + $0xc0] sm:$0xff] (%p995_p6), %v629_v23 }
  0xd8   : > { %571 = vst [vmem:[%s1095_s12 + $0x90] sm:$0xff] %v543_v50  ;;  %v635_v26 = vld [vmem:[%s1095_s12 + $0x78] sm:$0xff] (%p995_p6) }
  0xd9   : > { %572 = vst [vmem:[%s1095_s12 + $0x98] sm:$0xff] %v544_v52  ;;  %v637_v27 = vld [vmem:[%s1095_s12 + $0x80] sm:$0xff] (%p995_p6) }
  0xda   : > { %573 = vst [vmem:[%s1095_s12 + $0xa0] sm:$0xff] %v545_v53  ;;  %v639_v28 = vld [vmem:[%s1095_s12 + $0x88] sm:$0xff] (%p995_p6) }
  0xdb   : > { %574 = vst [vmem:[%s1095_s12 + $0xa8] sm:$0xff] %v546_v54  ;;  %v378_v55 = vpop.f32.mrf.mxu2  ;;  %v406_v38 = vpop.f32.mrf.mxu3 }
  0xdc   : > { %v477_v56 = vmul.f32 %v1091_v41, %v378_v55  ;;  %v478_v57 = vmul.f32 %v1091_v41, %v406_v38  ;;  %v325_v58 = vpop.f32.mrf.mxu0  ;;  %v353_v59 = vpop.f32.mrf.mxu1  ;;  %632 = vst [vmem:[%s1152_s27 + $0xc8] sm:$0xff] (%p995_p6), %v631_v24 }
  0xdd   : > { %v479_v60 = vmul.f32 %v1099_v51, %v325_v58  ;;  %v480_v61 = vmul.f32 %v1099_v51, %v353_v59  ;;  %634 = vst [vmem:[%s1152_s27 + $0xd0] sm:$0xff] (%p995_p6), %v633_v25 }
  0xde   : > { %v547_v63 = vadd.f32 %v518_v49, %v477_v56  ;;  %v548_v0 = vadd.f32 %v518_v49, %v478_v57  ;;  %636 = vst [vmem:[%s1152_s27 + $0xd8] sm:$0xff] (%p995_p6), %v635_v26 }
  0xdf   : > { %v549_v1 = vadd.f32 %v523_v62, %v479_v60  ;;  %v550_v2 = vadd.f32 %v523_v62, %v480_v61  ;;  %v641_v29 = vld [vmem:[%s1095_s12 + $0x90] sm:$0xff] (%p995_p6)  ;;  %638 = vst [vmem:[%s1152_s27 + $0x100] sm:$0xff] (%p995_p6), %v637_v27 }
  0xe0   : > { %575 = vst [vmem:[%s1095_s12 + $0xb0] sm:$0xff] %v547_v63  ;;  %v643_v30 = vld [vmem:[%s1095_s12 + $0x98] sm:$0xff] (%p995_p6) }
  0xe1   : > { %576 = vst [vmem:[%s1095_s12 + $0xb8] sm:$0xff] %v548_v0  ;;  %v645_v31 = vld [vmem:[%s1095_s12 + $0xa0] sm:$0xff] (%p995_p6) }
  0xe2   : > { %577 = vst [vmem:[%s1095_s12 + $0xc0] sm:$0x3] %v549_v1  ;;  %v647_v32 = vld [vmem:[%s1095_s12 + $0xa8] sm:$0xff] (%p995_p6) }
  0xe3   : > { %578 = vst [vmem:[%s1095_s12 + $0xc8] sm:$0x3] %v550_v2  ;;  %v381_v3 = vpop.f32.mrf.mxu2  ;;  %v409_v4 = vpop.f32.mrf.mxu3 }
  0xe4   : > { %v481_v41 = vmul.f32 %v1099_v51, %v381_v3  ;;  %v482_v5 = vmul.f32 %v1099_v51, %v409_v4  ;;  %v327_v6 = vpop.f32.mrf.mxu0  ;;  %v355_v7 = vpop.f32.mrf.mxu1  ;;  %v605_v51 = vld [vmem:[%s1095_s12] sm:$0xff] (%p995_p6)  ;;  %640 = vst [vmem:[%s1152_s27 + $0x108] sm:$0xff] (%p995_p6), %v639_v28 }
  0xe5   : > { %606 = vst [vmem:[%s1152_s27] sm:$0xff] (%p995_p6), %v605_v51 }
  0xe6   : > { %v551_v8 = vadd.f32 %v523_v62, %v481_v41  ;;  %v552_v9 = vadd.f32 %v523_v62, %v482_v5  ;;  %642 = vst [vmem:[%s1152_s27 + $0x110] sm:$0xff] (%p995_p6), %v641_v29 }
  0xe7   : > { %587 = sbr.rel (!%p995_p6) target bundleno = 242 (0xf2), region = 63  ;;  %644 = vst [vmem:[%s1152_s27 + $0x118] sm:$0xff] (%p995_p6), %v643_v30  ;;  %v649_v33 = vld [vmem:[%s1095_s12 + $0xb0] sm:$0xff] (%p995_p6) }
  0xe8   : > { %579 = vst [vmem:[%s1095_s12 + $0xd0] sm:$0x3] %v551_v8  ;;  %v651_v34 = vld [vmem:[%s1095_s12 + $0xb8] sm:$0xff] (%p995_p6) }
  0xe9   : > { %580 = vst [vmem:[%s1095_s12 + $0xd8] sm:$0x3] %v552_v9  ;;  %v653_v35 = vld [vmem:[%s1095_s12 + $0xc0] sm:$0xff] (%p995_p6) }
  0xea   : > { %646 = vst [vmem:[%s1152_s27 + $0x140] sm:$0xff] (%p995_p6), %v645_v31  ;;  %v655_v36 = vld [vmem:[%s1095_s12 + $0xc8] sm:$0xff] (%p995_p6) }
  0xeb   : > { %v383_v10 = vpop.f32.mrf.mxu2  ;;  %v411_v11 = vpop.f32.mrf.mxu3  ;;  %648 = vst [vmem:[%s1152_s27 + $0x148] sm:$0xff] (%p995_p6), %v647_v32 }
  0xec   : > { %650 = vst [vmem:[%s1152_s27 + $0x150] sm:$0xff] %v649_v33 }
  0xed   : > { %652 = vst [vmem:[%s1152_s27 + $0x158] sm:$0xff] %v651_v34 }
  0xee   : > { %654 = vst [vmem:[%s1152_s27 + $0x180] sm:$0xff] %v653_v35 }
  0xef   : > { %v657_v37 = vld [vmem:[%s1095_s12 + $0xd0] sm:$0xff]  ;;  %656 = vst [vmem:[%s1152_s27 + $0x188] sm:$0xff] %v655_v36 }
  0xf0   : > { %v659_v39 = vld [vmem:[%s1095_s12 + $0xd8] sm:$0xff]  ;;  %658 = vst [vmem:[%s1152_s27 + $0x190] sm:$0xff] %v657_v37 }
  0xf1   : > { %660 = vst [vmem:[%s1152_s27 + $0x198] sm:$0xff] %v659_v39 }
  0xf2 PF: > { %s14_s21 = sadd.s32 1, %s919_s21   ;;  %s1235_s15 = smov %s899_s16 }
  0xf3   : > { %p11_p12 = scmp.ge.s32.totalorder %s14_s21, 6   ;;  %s1236_s16 = smov %s1003_s30 }
  0xf4   : > { %s1237_s17 = smov %s911_s19  ;;  %s1238_s18 = smov %s915_s20 }
  0xf5   : > { %s1239_s19 = smov %s1242_s22  ;;  %s1240_s20 = smov %s1246_s23 }
  0xf6   :  { %13 = sbr.rel (!%p11_p12) target bundleno = 4 (0x4), region = 117 }

</bundles_post_ra>
